<compile_context>
chip_gen: v7x
topology: tpu7x:2x2x1
jax: 0.10.0
libtpu: 0.0.40
codegen_flags: <defaults>
</compile_context>

<pallas_src>
import functools

import jax
import jax.numpy as jnp
from jax import lax
from jax.experimental import pallas as pl
from jax.experimental.pallas import tpu as pltpu

THRESH = 1.0          # spike threshold V_th
DECAY = 0.9           # membrane leak factor
FRAC_ORDER = 0.2      # "alpha" of the FLIF neuron (metadata only, see TODO above)


def _round_up(x, m):
    return (x + m - 1) // m * m


def _snn2_kernel(x_ref, w1_ref, b1_ref, w2_ref, b2_ref, w3_ref, b3_ref,
                 spk_ref, mem_ref,
                 cur1_sc, m1_sc, m2_sc, m3_sc, *, ts, unroll):
    t = pl.program_id(1)

    # `data` is constant across time, so hidden1_current is time-invariant:
    # compute it once per batch tile (first time tile) and keep it, together
    # with the membrane state, in persistent VMEM scratch across the
    # "arbitrary" time-tile axis.
    @pl.when(t == 0)
    def _init():
        cur1_sc[...] = (jnp.dot(x_ref[...], w1_ref[...],
                                preferred_element_type=jnp.float32)
                        + b1_ref[...])
        m1_sc[...] = jnp.zeros_like(m1_sc)
        m2_sc[...] = jnp.zeros_like(m2_sc)
        m3_sc[...] = jnp.zeros_like(m3_sc)

    cur1 = cur1_sc[...]
    w2 = w2_ref[...]            # already bf16 (pre-cast in the wrapper)
    w3 = w3_ref[...]
    b2 = b2_ref[...]            # (1, H2p): cheap sublane-broadcast add
    b3 = b3_ref[...]            # (1, Op)

    def step_fn(i, carry):
        m1, m2, m3 = carry

        # hidden1 FLIF: leaky integrate, threshold, subtractive reset (f32).
        m1 = DECAY * m1 + cur1
        s1 = m1 > THRESH
        m1 = jnp.where(s1, m1 - THRESH, m1)

        # hidden2 synapses + FLIF
        cur2 = jnp.dot(s1.astype(jnp.bfloat16), w2,
                       preferred_element_type=jnp.float32) + b2
        m2 = DECAY * m2 + cur2
        s2 = m2 > THRESH
        m2 = jnp.where(s2, m2 - THRESH, m2)

        # output synapses + FLIF
        cur3 = jnp.dot(s2.astype(jnp.bfloat16), w3,
                       preferred_element_type=jnp.float32) + b3
        m3 = DECAY * m3 + cur3
        s3 = m3 > THRESH
        m3 = jnp.where(s3, m3 - THRESH, m3)

        # Lane-dense stores: Op is a multiple of 128 (padded in the wrapper),
        # so these are unmasked vst and the HBM writeback is lane-dense.
        spk_ref[i] = s3.astype(jnp.float32)
        mem_ref[i] = m3
        return m1, m2, m3

    m1, m2, m3 = lax.fori_loop(
        0, ts, step_fn, (m1_sc[...], m2_sc[...], m3_sc[...]), unroll=unroll)
    m1_sc[...] = m1
    m2_sc[...] = m2
    m3_sc[...] = m3


def _pick_batch_tile(b_pad):
    """Batch tile: >=2 tiles whenever possible (so v7x's second TensorCore is
    used by the 'parallel' axis), capped at 256 rows to fill the MXU."""
    if b_pad < 16:
        return b_pad
    target = min(256, b_pad // 2)
    target -= target % 8
    for bt in range(target, 7, -8):
        if b_pad % bt == 0:
            return bt
    return b_pad


def _pick_time_tile(num_steps):
    """Largest divisor of num_steps <= 16: bounds the VMEM-resident trace
    blocks while keeping the fori_loop short enough to fully unroll."""
    for ts in range(min(num_steps, 16), 0, -1):
        if num_steps % ts == 0:
            return ts
    return 1


def _estimate_vmem_bytes(bt, ts, in_p, h1p, h2p, op):
    b = 0
    b += 2 * bt * in_p * 2                                 # x (bf16, 2 bufs)
    b += 2 * (in_p * h1p + h1p * h2p + h2p * op) * 2       # weights (bf16)
    b += 2 * 8 * (h1p + h2p + op) * 4                      # biases (sublane-padded)
    b += 2 * 2 * ts * bt * op * 4                          # spk+mem blocks (2 bufs)
    b += bt * (2 * h1p + h2p + op) * 4                     # persistent scratch
    return b


def _pallas_forward(x, w1, b1, w2, b2, w3, b3, *, num_steps, ts, bt,
                    single_buffer_weights):
    b_pad, in_p = x.shape
    h1p = w1.shape[1]
    h2p = w2.shape[1]
    op = w3.shape[1]
    nb = b_pad // bt
    nt = num_steps // ts

    unroll = True if ts <= 16 else 8
    kernel = functools.partial(_snn2_kernel, ts=ts, unroll=unroll)

    def replicated(shape):
        kwargs = {}
        if single_buffer_weights:
            # Block index never changes across the grid -> single-buffer to
            # halve the VMEM cost of the replicated weights/biases.
            kwargs["pipeline_mode"] = pl.Buffered(buffer_count=1)
        return pl.BlockSpec(shape, lambda b, t: (0,) * len(shape), **kwargs)

    in_specs = [
        pl.BlockSpec((bt, in_p), lambda b, t: (b, 0)),     # data: batch-tiled
        replicated(w1.shape), replicated(b1.shape),
        replicated(w2.shape), replicated(b2.shape),
        replicated(w3.shape), replicated(b3.shape),
    ]
    out_spec = pl.BlockSpec((ts, bt, op), lambda b, t: (t, b, 0))

    vmem_bytes = _estimate_vmem_bytes(bt, ts, in_p, h1p, h2p, op)
    vmem_limit = int(min(max(2 * vmem_bytes, 32 << 20), 64 << 20))

    return pl.pallas_call(
        kernel,
        out_shape=(
            jax.ShapeDtypeStruct((num_steps, b_pad, op), jnp.float32),
            jax.ShapeDtypeStruct((num_steps, b_pad, op), jnp.float32),
        ),
        grid=(nb, nt),
        in_specs=in_specs,
        out_specs=(out_spec, out_spec),
        scratch_shapes=[
            pltpu.VMEM((bt, h1p), jnp.float32),   # cur1 (time-invariant)
            pltpu.VMEM((bt, h1p), jnp.float32),   # m1
            pltpu.VMEM((bt, h2p), jnp.float32),   # m2
            pltpu.VMEM((bt, op), jnp.float32),    # m3
        ],
        compiler_params=pltpu.CompilerParams(
            dimension_semantics=("parallel", "arbitrary"),
            vmem_limit_bytes=vmem_limit),
    )(x, w1, b1, w2, b2, w3, b3)


def snn2_forward(data, w1, b1, w2, b2, w3, b3, num_steps):
    B, num_input = data.shape
    H1, H2, O = w1.shape[1], w2.shape[1], w3.shape[1]

    # Pad feature dims to 128 lanes (zero weights/biases for padded units make
    # this exact: padded neurons never integrate or spike) and batch to 8
    # sublanes -> MXU-aligned matmuls and lane-dense trace stores/writeback.
    in_p = _round_up(num_input, 128)
    h1p = _round_up(H1, 128)
    h2p = _round_up(H2, 128)
    op = _round_up(O, 128)
    b_pad = _round_up(B, 8)

    def pad2(a, rows, cols, dtype):
        return jnp.pad(a.astype(dtype),
                       ((0, rows - a.shape[0]), (0, cols - a.shape[1])))

    # Pre-cast matmul operands to bf16 in the wrapper (halves their HBM->VMEM
    # DMA bytes, removes the in-kernel cast).  Spikes are exactly 0/1 so the
    # bf16 path is lossless for them; biases / membrane state stay f32.
    x = pad2(data, b_pad, in_p, jnp.bfloat16)
    w1p = pad2(w1, in_p, h1p, jnp.bfloat16)
    w2p = pad2(w2, h1p, h2p, jnp.bfloat16)
    w3p = pad2(w3, h2p, op, jnp.bfloat16)
    b1p = pad2(b1, 1, h1p, jnp.float32)
    b2p = pad2(b2, 1, h2p, jnp.float32)
    b3p = pad2(b3, 1, op, jnp.float32)

    bt = _pick_batch_tile(b_pad)
    ts = _pick_time_tile(num_steps)

    args = (x, w1p, b1p, w2p, b2p, w3p, b3p)
    try:
        spk_p, mem_p = _pallas_forward(*args, num_steps=num_steps, ts=ts, bt=bt,
                                       single_buffer_weights=True)
    except Exception:
        # Fallback if pl.Buffered(buffer_count=1) single-buffering is not
        # supported by this jax version; everything else is identical.
        spk_p, mem_p = _pallas_forward(*args, num_steps=num_steps, ts=ts, bt=bt,
                                       single_buffer_weights=False)

    # Strip batch/feature padding back to the module's logical shapes.
    return spk_p[:, :B, :O], mem_p[:, :B, :O]


def reference_forward(data, w1, b1, w2, b2, w3, b3, num_steps):
    """Plain-JAX reference with the same precision recipe (bf16 matmul
    operands, f32 accumulate/state), for a sanity check."""
    B = data.shape[0]
    m1 = jnp.zeros((B, w1.shape[1]), jnp.float32)
    m2 = jnp.zeros((B, w2.shape[1]), jnp.float32)
    m3 = jnp.zeros((B, w3.shape[1]), jnp.float32)
    xb = data.astype(jnp.bfloat16)
    w1b, w2b, w3b = (w.astype(jnp.bfloat16) for w in (w1, w2, w3))
    c1 = jnp.dot(xb, w1b, preferred_element_type=jnp.float32) + b1
    spks, mems = [], []
    for _ in range(num_steps):
        m1 = DECAY * m1 + c1
        s1 = m1 > THRESH
        m1 = jnp.where(s1, m1 - THRESH, m1)
        c2 = jnp.dot(s1.astype(jnp.bfloat16), w2b,
                     preferred_element_type=jnp.float32) + b2
        m2 = DECAY * m2 + c2
        s2 = m2 > THRESH
        m2 = jnp.where(s2, m2 - THRESH, m2)
        c3 = jnp.dot(s2.astype(jnp.bfloat16), w3b,
                     preferred_element_type=jnp.float32) + b3
        m3 = DECAY * m3 + c3
        s3 = m3 > THRESH
        m3 = jnp.where(s3, m3 - THRESH, m3)
        spks.append(s3.astype(jnp.float32))
        mems.append(m3)
    return jnp.stack(spks, 0), jnp.stack(mems, 0)


if __name__ == "__main__":
    # Small shapes consistent with SNN2(num_input, num_hidden1, num_hidden2,
    # num_output, num_steps).
    batch = 2
    num_input, num_hidden1, num_hidden2, num_output = 16, 32, 32, 16
    num_steps = 8

    key = jax.random.PRNGKey(0)
    kd, k1, kb1, k2, kb2, k3, kb3 = jax.random.split(key, 7)

    data = jax.random.normal(kd, (batch, num_input), jnp.float32)

    # Deterministic synthetic Linear parameters (torch shape (out,in) stored
    # transposed as (in,out); biases stored as (1,out)).
    def lin_init(kw, kb, fan_in, fan_out):
        bound = 1.0 / jnp.sqrt(jnp.float32(fan_in))
        w = jax.random.uniform(kw, (fan_in, fan_out), jnp.float32, -bound, bound)
        b = jax.random.uniform(kb, (1, fan_out), jnp.float32, -bound, bound)
        return w, b

    w1, b1 = lin_init(k1, kb1, num_input, num_hidden1)
    w2, b2 = lin_init(k2, kb2, num_hidden1, num_hidden2)
    w3, b3 = lin_init(k3, kb3, num_hidden2, num_output)

    spk_trace, mem_trace = snn2_forward(data, w1, b1, w2, b2, w3, b3, num_steps)
    jax.block_until_ready((spk_trace, mem_trace))

    ref_spk, ref_mem = reference_forward(data, w1, b1, w2, b2, w3, b3, num_steps)
    assert spk_trace.shape == (num_steps, batch, num_output)
    assert mem_trace.shape == (num_steps, batch, num_output)
    assert jnp.allclose(spk_trace, ref_spk, atol=1e-4)
    assert jnp.allclose(mem_trace, ref_mem, rtol=1e-4, atol=1e-4)

    print("KERNEL_OK")
</pallas_src>

<mosaic_0001>
module attributes {stable_mosaic.version = 11 : i64} {
  func.func @_snn2_kernel(%arg0: i32, %arg1: i32, %arg2: memref<8x128xbf16, #tpu.memory_space<vmem>>, %arg3: memref<128x128xbf16, #tpu.memory_space<vmem>>, %arg4: memref<1x128xf32, #tpu.memory_space<vmem>>, %arg5: memref<128x128xbf16, #tpu.memory_space<vmem>>, %arg6: memref<1x128xf32, #tpu.memory_space<vmem>>, %arg7: memref<128x128xbf16, #tpu.memory_space<vmem>>, %arg8: memref<1x128xf32, #tpu.memory_space<vmem>>, %arg9: memref<8x8x128xf32, #tpu.memory_space<vmem>>, %arg10: memref<8x8x128xf32, #tpu.memory_space<vmem>>, %arg11: memref<8x128xf32, #tpu.memory_space<vmem>>, %arg12: memref<8x128xf32, #tpu.memory_space<vmem>>, %arg13: memref<8x128xf32, #tpu.memory_space<vmem>>, %arg14: memref<8x128xf32, #tpu.memory_space<vmem>>) attributes {dimension_semantics = [#tpu.dimension_semantics<parallel>, #tpu.dimension_semantics<arbitrary>], iteration_bounds = array<i64: 1, 1>, scalar_prefetch = 0 : i64, scratch_operands = 4 : i64, tpu.core_type = #tpu.core_type<tc>, window_params = [{transform_indices = @transform_0, window_bounds = array<i64: 8, 128>}, {pipeline_mode = #tpu.pipeline_mode<synchronous>, transform_indices = @transform_1, window_bounds = array<i64: 128, 128>}, {pipeline_mode = #tpu.pipeline_mode<synchronous>, transform_indices = @transform_2, window_bounds = array<i64: 1, 128>}, {pipeline_mode = #tpu.pipeline_mode<synchronous>, transform_indices = @transform_3, window_bounds = array<i64: 128, 128>}, {pipeline_mode = #tpu.pipeline_mode<synchronous>, transform_indices = @transform_4, window_bounds = array<i64: 1, 128>}, {pipeline_mode = #tpu.pipeline_mode<synchronous>, transform_indices = @transform_5, window_bounds = array<i64: 128, 128>}, {pipeline_mode = #tpu.pipeline_mode<synchronous>, transform_indices = @transform_6, window_bounds = array<i64: 1, 128>}, {transform_indices = @transform_7, window_bounds = array<i64: 8, 8, 128>}, {transform_indices = @transform_8, window_bounds = array<i64: 8, 8, 128>}]} {
    %c0_i32 = arith.constant 0 : i32
    %0 = arith.cmpi eq, %arg1, %c0_i32 : i32
    %1 = arith.extui %0 : i1 to i32
    %c0_i32_0 = arith.constant 0 : i32
    %2 = arith.cmpi ne, %1, %c0_i32_0 : i32
    scf.if %2 {
      %c0_142 = arith.constant 0 : index
      %c0_143 = arith.constant 0 : index
      %382 = vector.load %arg2[%c0_142, %c0_143] : memref<8x128xbf16, #tpu.memory_space<vmem>>, vector<8x128xbf16>
      %c0_144 = arith.constant 0 : index
      %c0_145 = arith.constant 0 : index
      %383 = vector.load %arg3[%c0_144, %c0_145] : memref<128x128xbf16, #tpu.memory_space<vmem>>, vector<128x128xbf16>
      %cst_146 = arith.constant dense<0.000000e+00> : vector<8x128xf32>
      %384 = tpu.matmul %382, %383, %cst_146 {dimension_numbers = #tpu.dot_dimension_numbers<[1], [0], [0], [1], [0, 0, 1, 1], [], []>} : vector<8x128xbf16>, vector<128x128xbf16>, vector<8x128xf32> -> vector<8x128xf32>
      %c0_147 = arith.constant 0 : index
      %c0_148 = arith.constant 0 : index
      %385 = vector.load %arg4[%c0_147, %c0_148] : memref<1x128xf32, #tpu.memory_space<vmem>>, vector<1x128xf32>
      %386 = vector.broadcast %385 : vector<1x128xf32> to vector<8x128xf32>
      %387 = arith.addf %384, %386 : vector<8x128xf32>
      %c0_149 = arith.constant 0 : index
      %c0_150 = arith.constant 0 : index
      %388 = vector.load %arg11[%c0_149, %c0_150] : memref<8x128xf32, #tpu.memory_space<vmem>>, vector<8x128xf32>
      tpu.vector_store %arg11[%c0_149, %c0_150], %387 {strides = array<i32>} : memref<8x128xf32, #tpu.memory_space<vmem>>, vector<8x128xf32>,
      %cst_151 = arith.constant 0.000000e+00 : f32
      %389 = vector.broadcast %cst_151 : f32 to vector<8x128xf32>
      %c0_152 = arith.constant 0 : index
      %c0_153 = arith.constant 0 : index
      %390 = vector.load %arg12[%c0_152, %c0_153] : memref<8x128xf32, #tpu.memory_space<vmem>>, vector<8x128xf32>
      tpu.vector_store %arg12[%c0_152, %c0_153], %389 {strides = array<i32>} : memref<8x128xf32, #tpu.memory_space<vmem>>, vector<8x128xf32>,
      %cst_154 = arith.constant 0.000000e+00 : f32
      %391 = vector.broadcast %cst_154 : f32 to vector<8x128xf32>
      %c0_155 = arith.constant 0 : index
      %c0_156 = arith.constant 0 : index
      %392 = vector.load %arg13[%c0_155, %c0_156] : memref<8x128xf32, #tpu.memory_space<vmem>>, vector<8x128xf32>
      tpu.vector_store %arg13[%c0_155, %c0_156], %391 {strides = array<i32>} : memref<8x128xf32, #tpu.memory_space<vmem>>, vector<8x128xf32>,
      %cst_157 = arith.constant 0.000000e+00 : f32
      %393 = vector.broadcast %cst_157 : f32 to vector<8x128xf32>
      %c0_158 = arith.constant 0 : index
      %c0_159 = arith.constant 0 : index
      %394 = vector.load %arg14[%c0_158, %c0_159] : memref<8x128xf32, #tpu.memory_space<vmem>>, vector<8x128xf32>
      tpu.vector_store %arg14[%c0_158, %c0_159], %393 {strides = array<i32>} : memref<8x128xf32, #tpu.memory_space<vmem>>, vector<8x128xf32>,
    } else {
    }
    %c0 = arith.constant 0 : index
    %c0_1 = arith.constant 0 : index
    %3 = vector.load %arg11[%c0, %c0_1] : memref<8x128xf32, #tpu.memory_space<vmem>>, vector<8x128xf32>
    %c0_2 = arith.constant 0 : index
    %c0_3 = arith.constant 0 : index
    %4 = vector.load %arg5[%c0_2, %c0_3] : memref<128x128xbf16, #tpu.memory_space<vmem>>, vector<128x128xbf16>
    %c0_4 = arith.constant 0 : index
    %c0_5 = arith.constant 0 : index
    %5 = vector.load %arg7[%c0_4, %c0_5] : memref<128x128xbf16, #tpu.memory_space<vmem>>, vector<128x128xbf16>
    %c0_6 = arith.constant 0 : index
    %c0_7 = arith.constant 0 : index
    %6 = vector.load %arg6[%c0_6, %c0_7] : memref<1x128xf32, #tpu.memory_space<vmem>>, vector<1x128xf32>
    %c0_8 = arith.constant 0 : index
    %c0_9 = arith.constant 0 : index
    %7 = vector.load %arg8[%c0_8, %c0_9] : memref<1x128xf32, #tpu.memory_space<vmem>>, vector<1x128xf32>
    %c0_10 = arith.constant 0 : index
    %c0_11 = arith.constant 0 : index
    %8 = vector.load %arg12[%c0_10, %c0_11] : memref<8x128xf32, #tpu.memory_space<vmem>>, vector<8x128xf32>
    %c0_12 = arith.constant 0 : index
    %c0_13 = arith.constant 0 : index
    %9 = vector.load %arg13[%c0_12, %c0_13] : memref<8x128xf32, #tpu.memory_space<vmem>>, vector<8x128xf32>
    %c0_14 = arith.constant 0 : index
    %c0_15 = arith.constant 0 : index
    %10 = vector.load %arg14[%c0_14, %c0_15] : memref<8x128xf32, #tpu.memory_space<vmem>>, vector<8x128xf32>
    %c0_i32_16 = arith.constant 0 : i32
    %cst = arith.constant 0.899999976 : f32
    %11 = vector.broadcast %cst : f32 to vector<8x128xf32>
    %12 = arith.mulf %11, %8 : vector<8x128xf32>
    %13 = arith.addf %12, %3 : vector<8x128xf32>
    %cst_17 = arith.constant 1.000000e+00 : f32
    %14 = vector.broadcast %cst_17 : f32 to vector<8x128xf32>
    %15 = arith.cmpf ogt, %13, %14 : vector<8x128xf32>
    %cst_18 = arith.constant 1.000000e+00 : f32
    %16 = vector.broadcast %cst_18 : f32 to vector<8x128xf32>
    %17 = arith.subf %13, %16 : vector<8x128xf32>
    %18 = arith.select %15, %17, %13 : vector<8x128xi1>, vector<8x128xf32>
    %19 = arith.extui %15 : vector<8x128xi1> to vector<8x128xi32>
    %20 = arith.sitofp %19 : vector<8x128xi32> to vector<8x128xf32>
    %21 = arith.truncf %20 : vector<8x128xf32> to vector<8x128xbf16>
    %cst_19 = arith.constant dense<0.000000e+00> : vector<8x128xf32>
    %22 = tpu.matmul %21, %4, %cst_19 {dimension_numbers = #tpu.dot_dimension_numbers<[1], [0], [0], [1], [0, 0, 1, 1], [], []>} : vector<8x128xbf16>, vector<128x128xbf16>, vector<8x128xf32> -> vector<8x128xf32>
    %23 = vector.broadcast %6 : vector<1x128xf32> to vector<8x128xf32>
    %24 = arith.addf %22, %23 : vector<8x128xf32>
    %cst_20 = arith.constant 0.899999976 : f32
    %25 = vector.broadcast %cst_20 : f32 to vector<8x128xf32>
    %26 = arith.mulf %25, %9 : vector<8x128xf32>
    %27 = arith.addf %26, %24 : vector<8x128xf32>
    %cst_21 = arith.constant 1.000000e+00 : f32
    %28 = vector.broadcast %cst_21 : f32 to vector<8x128xf32>
    %29 = arith.cmpf ogt, %27, %28 : vector<8x128xf32>
    %cst_22 = arith.constant 1.000000e+00 : f32
    %30 = vector.broadcast %cst_22 : f32 to vector<8x128xf32>
    %31 = arith.subf %27, %30 : vector<8x128xf32>
    %32 = arith.select %29, %31, %27 : vector<8x128xi1>, vector<8x128xf32>
    %33 = arith.extui %29 : vector<8x128xi1> to vector<8x128xi32>
    %34 = arith.sitofp %33 : vector<8x128xi32> to vector<8x128xf32>
    %35 = arith.truncf %34 : vector<8x128xf32> to vector<8x128xbf16>
    %cst_23 = arith.constant dense<0.000000e+00> : vector<8x128xf32>
    %36 = tpu.matmul %35, %5, %cst_23 {dimension_numbers = #tpu.dot_dimension_numbers<[1], [0], [0], [1], [0, 0, 1, 1], [], []>} : vector<8x128xbf16>, vector<128x128xbf16>, vector<8x128xf32> -> vector<8x128xf32>
    %37 = vector.broadcast %7 : vector<1x128xf32> to vector<8x128xf32>
    %38 = arith.addf %36, %37 : vector<8x128xf32>
    %cst_24 = arith.constant 0.899999976 : f32
    %39 = vector.broadcast %cst_24 : f32 to vector<8x128xf32>
    %40 = arith.mulf %39, %10 : vector<8x128xf32>
    %41 = arith.addf %40, %38 : vector<8x128xf32>
    %cst_25 = arith.constant 1.000000e+00 : f32
    %42 = vector.broadcast %cst_25 : f32 to vector<8x128xf32>
    %43 = arith.cmpf ogt, %41, %42 : vector<8x128xf32>
    %cst_26 = arith.constant 1.000000e+00 : f32
    %44 = vector.broadcast %cst_26 : f32 to vector<8x128xf32>
    %45 = arith.subf %41, %44 : vector<8x128xf32>
    %46 = arith.select %43, %45, %41 : vector<8x128xi1>, vector<8x128xf32>
    %47 = arith.extui %43 : vector<8x128xi1> to vector<8x128xi32>
    %48 = arith.sitofp %47 : vector<8x128xi32> to vector<8x128xf32>
    %49 = arith.index_cast %c0_i32_16 : i32 to index
    %c0_27 = arith.constant 0 : index
    %c0_28 = arith.constant 0 : index
    %50 = vector.load %arg9[%49, %c0_27, %c0_28] : memref<8x8x128xf32, #tpu.memory_space<vmem>>, vector<1x8x128xf32>
    %51 = vector.shape_cast %50 : vector<1x8x128xf32> to vector<8x128xf32>
    %52 = vector.shape_cast %48 : vector<8x128xf32> to vector<1x8x128xf32>
    tpu.vector_store %arg9[%49, %c0_27, %c0_28], %52 {strides = array<i32>} : memref<8x8x128xf32, #tpu.memory_space<vmem>>, vector<1x8x128xf32>,
    %53 = arith.index_cast %c0_i32_16 : i32 to index
    %c0_29 = arith.constant 0 : index
    %c0_30 = arith.constant 0 : index
    %54 = vector.load %arg10[%53, %c0_29, %c0_30] : memref<8x8x128xf32, #tpu.memory_space<vmem>>, vector<1x8x128xf32>
    %55 = vector.shape_cast %54 : vector<1x8x128xf32> to vector<8x128xf32>
    %56 = vector.shape_cast %46 : vector<8x128xf32> to vector<1x8x128xf32>
    tpu.vector_store %arg10[%53, %c0_29, %c0_30], %56 {strides = array<i32>} : memref<8x8x128xf32, #tpu.memory_space<vmem>>, vector<1x8x128xf32>,
    %c1_i32 = arith.constant 1 : i32
    %cst_31 = arith.constant 0.899999976 : f32
    %57 = vector.broadcast %cst_31 : f32 to vector<8x128xf32>
    %58 = arith.mulf %57, %18 : vector<8x128xf32>
    %59 = arith.addf %58, %3 : vector<8x128xf32>
    %cst_32 = arith.constant 1.000000e+00 : f32
    %60 = vector.broadcast %cst_32 : f32 to vector<8x128xf32>
    %61 = arith.cmpf ogt, %59, %60 : vector<8x128xf32>
    %cst_33 = arith.constant 1.000000e+00 : f32
    %62 = vector.broadcast %cst_33 : f32 to vector<8x128xf32>
    %63 = arith.subf %59, %62 : vector<8x128xf32>
    %64 = arith.select %61, %63, %59 : vector<8x128xi1>, vector<8x128xf32>
    %65 = arith.extui %61 : vector<8x128xi1> to vector<8x128xi32>
    %66 = arith.sitofp %65 : vector<8x128xi32> to vector<8x128xf32>
    %67 = arith.truncf %66 : vector<8x128xf32> to vector<8x128xbf16>
    %cst_34 = arith.constant dense<0.000000e+00> : vector<8x128xf32>
    %68 = tpu.matmul %67, %4, %cst_34 {dimension_numbers = #tpu.dot_dimension_numbers<[1], [0], [0], [1], [0, 0, 1, 1], [], []>} : vector<8x128xbf16>, vector<128x128xbf16>, vector<8x128xf32> -> vector<8x128xf32>
    %69 = vector.broadcast %6 : vector<1x128xf32> to vector<8x128xf32>
    %70 = arith.addf %68, %69 : vector<8x128xf32>
    %cst_35 = arith.constant 0.899999976 : f32
    %71 = vector.broadcast %cst_35 : f32 to vector<8x128xf32>
    %72 = arith.mulf %71, %32 : vector<8x128xf32>
    %73 = arith.addf %72, %70 : vector<8x128xf32>
    %cst_36 = arith.constant 1.000000e+00 : f32
    %74 = vector.broadcast %cst_36 : f32 to vector<8x128xf32>
    %75 = arith.cmpf ogt, %73, %74 : vector<8x128xf32>
    %cst_37 = arith.constant 1.000000e+00 : f32
    %76 = vector.broadcast %cst_37 : f32 to vector<8x128xf32>
    %77 = arith.subf %73, %76 : vector<8x128xf32>
    %78 = arith.select %75, %77, %73 : vector<8x128xi1>, vector<8x128xf32>
    %79 = arith.extui %75 : vector<8x128xi1> to vector<8x128xi32>
    %80 = arith.sitofp %79 : vector<8x128xi32> to vector<8x128xf32>
    %81 = arith.truncf %80 : vector<8x128xf32> to vector<8x128xbf16>
    %cst_38 = arith.constant dense<0.000000e+00> : vector<8x128xf32>
    %82 = tpu.matmul %81, %5, %cst_38 {dimension_numbers = #tpu.dot_dimension_numbers<[1], [0], [0], [1], [0, 0, 1, 1], [], []>} : vector<8x128xbf16>, vector<128x128xbf16>, vector<8x128xf32> -> vector<8x128xf32>
    %83 = vector.broadcast %7 : vector<1x128xf32> to vector<8x128xf32>
    %84 = arith.addf %82, %83 : vector<8x128xf32>
    %cst_39 = arith.constant 0.899999976 : f32
    %85 = vector.broadcast %cst_39 : f32 to vector<8x128xf32>
    %86 = arith.mulf %85, %46 : vector<8x128xf32>
    %87 = arith.addf %86, %84 : vector<8x128xf32>
    %cst_40 = arith.constant 1.000000e+00 : f32
    %88 = vector.broadcast %cst_40 : f32 to vector<8x128xf32>
    %89 = arith.cmpf ogt, %87, %88 : vector<8x128xf32>
    %cst_41 = arith.constant 1.000000e+00 : f32
    %90 = vector.broadcast %cst_41 : f32 to vector<8x128xf32>
    %91 = arith.subf %87, %90 : vector<8x128xf32>
    %92 = arith.select %89, %91, %87 : vector<8x128xi1>, vector<8x128xf32>
    %93 = arith.extui %89 : vector<8x128xi1> to vector<8x128xi32>
    %94 = arith.sitofp %93 : vector<8x128xi32> to vector<8x128xf32>
    %95 = arith.index_cast %c1_i32 : i32 to index
    %c0_42 = arith.constant 0 : index
    %c0_43 = arith.constant 0 : index
    %96 = vector.load %arg9[%95, %c0_42, %c0_43] : memref<8x8x128xf32, #tpu.memory_space<vmem>>, vector<1x8x128xf32>
    %97 = vector.shape_cast %96 : vector<1x8x128xf32> to vector<8x128xf32>
    %98 = vector.shape_cast %94 : vector<8x128xf32> to vector<1x8x128xf32>
    tpu.vector_store %arg9[%95, %c0_42, %c0_43], %98 {strides = array<i32>} : memref<8x8x128xf32, #tpu.memory_space<vmem>>, vector<1x8x128xf32>,
    %99 = arith.index_cast %c1_i32 : i32 to index
    %c0_44 = arith.constant 0 : index
    %c0_45 = arith.constant 0 : index
    %100 = vector.load %arg10[%99, %c0_44, %c0_45] : memref<8x8x128xf32, #tpu.memory_space<vmem>>, vector<1x8x128xf32>
    %101 = vector.shape_cast %100 : vector<1x8x128xf32> to vector<8x128xf32>
    %102 = vector.shape_cast %92 : vector<8x128xf32> to vector<1x8x128xf32>
    tpu.vector_store %arg10[%99, %c0_44, %c0_45], %102 {strides = array<i32>} : memref<8x8x128xf32, #tpu.memory_space<vmem>>, vector<1x8x128xf32>,
    %c2_i32 = arith.constant 2 : i32
    %cst_46 = arith.constant 0.899999976 : f32
    %103 = vector.broadcast %cst_46 : f32 to vector<8x128xf32>
    %104 = arith.mulf %103, %64 : vector<8x128xf32>
    %105 = arith.addf %104, %3 : vector<8x128xf32>
    %cst_47 = arith.constant 1.000000e+00 : f32
    %106 = vector.broadcast %cst_47 : f32 to vector<8x128xf32>
    %107 = arith.cmpf ogt, %105, %106 : vector<8x128xf32>
    %cst_48 = arith.constant 1.000000e+00 : f32
    %108 = vector.broadcast %cst_48 : f32 to vector<8x128xf32>
    %109 = arith.subf %105, %108 : vector<8x128xf32>
    %110 = arith.select %107, %109, %105 : vector<8x128xi1>, vector<8x128xf32>
    %111 = arith.extui %107 : vector<8x128xi1> to vector<8x128xi32>
    %112 = arith.sitofp %111 : vector<8x128xi32> to vector<8x128xf32>
    %113 = arith.truncf %112 : vector<8x128xf32> to vector<8x128xbf16>
    %cst_49 = arith.constant dense<0.000000e+00> : vector<8x128xf32>
    %114 = tpu.matmul %113, %4, %cst_49 {dimension_numbers = #tpu.dot_dimension_numbers<[1], [0], [0], [1], [0, 0, 1, 1], [], []>} : vector<8x128xbf16>, vector<128x128xbf16>, vector<8x128xf32> -> vector<8x128xf32>
    %115 = vector.broadcast %6 : vector<1x128xf32> to vector<8x128xf32>
    %116 = arith.addf %114, %115 : vector<8x128xf32>
    %cst_50 = arith.constant 0.899999976 : f32
    %117 = vector.broadcast %cst_50 : f32 to vector<8x128xf32>
    %118 = arith.mulf %117, %78 : vector<8x128xf32>
    %119 = arith.addf %118, %116 : vector<8x128xf32>
    %cst_51 = arith.constant 1.000000e+00 : f32
    %120 = vector.broadcast %cst_51 : f32 to vector<8x128xf32>
    %121 = arith.cmpf ogt, %119, %120 : vector<8x128xf32>
    %cst_52 = arith.constant 1.000000e+00 : f32
    %122 = vector.broadcast %cst_52 : f32 to vector<8x128xf32>
    %123 = arith.subf %119, %122 : vector<8x128xf32>
    %124 = arith.select %121, %123, %119 : vector<8x128xi1>, vector<8x128xf32>
    %125 = arith.extui %121 : vector<8x128xi1> to vector<8x128xi32>
    %126 = arith.sitofp %125 : vector<8x128xi32> to vector<8x128xf32>
    %127 = arith.truncf %126 : vector<8x128xf32> to vector<8x128xbf16>
    %cst_53 = arith.constant dense<0.000000e+00> : vector<8x128xf32>
    %128 = tpu.matmul %127, %5, %cst_53 {dimension_numbers = #tpu.dot_dimension_numbers<[1], [0], [0], [1], [0, 0, 1, 1], [], []>} : vector<8x128xbf16>, vector<128x128xbf16>, vector<8x128xf32> -> vector<8x128xf32>
    %129 = vector.broadcast %7 : vector<1x128xf32> to vector<8x128xf32>
    %130 = arith.addf %128, %129 : vector<8x128xf32>
    %cst_54 = arith.constant 0.899999976 : f32
    %131 = vector.broadcast %cst_54 : f32 to vector<8x128xf32>
    %132 = arith.mulf %131, %92 : vector<8x128xf32>
    %133 = arith.addf %132, %130 : vector<8x128xf32>
    %cst_55 = arith.constant 1.000000e+00 : f32
    %134 = vector.broadcast %cst_55 : f32 to vector<8x128xf32>
    %135 = arith.cmpf ogt, %133, %134 : vector<8x128xf32>
    %cst_56 = arith.constant 1.000000e+00 : f32
    %136 = vector.broadcast %cst_56 : f32 to vector<8x128xf32>
    %137 = arith.subf %133, %136 : vector<8x128xf32>
    %138 = arith.select %135, %137, %133 : vector<8x128xi1>, vector<8x128xf32>
    %139 = arith.extui %135 : vector<8x128xi1> to vector<8x128xi32>
    %140 = arith.sitofp %139 : vector<8x128xi32> to vector<8x128xf32>
    %141 = arith.index_cast %c2_i32 : i32 to index
    %c0_57 = arith.constant 0 : index
    %c0_58 = arith.constant 0 : index
    %142 = vector.load %arg9[%141, %c0_57, %c0_58] : memref<8x8x128xf32, #tpu.memory_space<vmem>>, vector<1x8x128xf32>
    %143 = vector.shape_cast %142 : vector<1x8x128xf32> to vector<8x128xf32>
    %144 = vector.shape_cast %140 : vector<8x128xf32> to vector<1x8x128xf32>
    tpu.vector_store %arg9[%141, %c0_57, %c0_58], %144 {strides = array<i32>} : memref<8x8x128xf32, #tpu.memory_space<vmem>>, vector<1x8x128xf32>,
    %145 = arith.index_cast %c2_i32 : i32 to index
    %c0_59 = arith.constant 0 : index
    %c0_60 = arith.constant 0 : index
    %146 = vector.load %arg10[%145, %c0_59, %c0_60] : memref<8x8x128xf32, #tpu.memory_space<vmem>>, vector<1x8x128xf32>
    %147 = vector.shape_cast %146 : vector<1x8x128xf32> to vector<8x128xf32>
    %148 = vector.shape_cast %138 : vector<8x128xf32> to vector<1x8x128xf32>
    tpu.vector_store %arg10[%145, %c0_59, %c0_60], %148 {strides = array<i32>} : memref<8x8x128xf32, #tpu.memory_space<vmem>>, vector<1x8x128xf32>,
    %c3_i32 = arith.constant 3 : i32
    %cst_61 = arith.constant 0.899999976 : f32
    %149 = vector.broadcast %cst_61 : f32 to vector<8x128xf32>
    %150 = arith.mulf %149, %110 : vector<8x128xf32>
    %151 = arith.addf %150, %3 : vector<8x128xf32>
    %cst_62 = arith.constant 1.000000e+00 : f32
    %152 = vector.broadcast %cst_62 : f32 to vector<8x128xf32>
    %153 = arith.cmpf ogt, %151, %152 : vector<8x128xf32>
    %cst_63 = arith.constant 1.000000e+00 : f32
    %154 = vector.broadcast %cst_63 : f32 to vector<8x128xf32>
    %155 = arith.subf %151, %154 : vector<8x128xf32>
    %156 = arith.select %153, %155, %151 : vector<8x128xi1>, vector<8x128xf32>
    %157 = arith.extui %153 : vector<8x128xi1> to vector<8x128xi32>
    %158 = arith.sitofp %157 : vector<8x128xi32> to vector<8x128xf32>
    %159 = arith.truncf %158 : vector<8x128xf32> to vector<8x128xbf16>
    %cst_64 = arith.constant dense<0.000000e+00> : vector<8x128xf32>
    %160 = tpu.matmul %159, %4, %cst_64 {dimension_numbers = #tpu.dot_dimension_numbers<[1], [0], [0], [1], [0, 0, 1, 1], [], []>} : vector<8x128xbf16>, vector<128x128xbf16>, vector<8x128xf32> -> vector<8x128xf32>
    %161 = vector.broadcast %6 : vector<1x128xf32> to vector<8x128xf32>
    %162 = arith.addf %160, %161 : vector<8x128xf32>
    %cst_65 = arith.constant 0.899999976 : f32
    %163 = vector.broadcast %cst_65 : f32 to vector<8x128xf32>
    %164 = arith.mulf %163, %124 : vector<8x128xf32>
    %165 = arith.addf %164, %162 : vector<8x128xf32>
    %cst_66 = arith.constant 1.000000e+00 : f32
    %166 = vector.broadcast %cst_66 : f32 to vector<8x128xf32>
    %167 = arith.cmpf ogt, %165, %166 : vector<8x128xf32>
    %cst_67 = arith.constant 1.000000e+00 : f32
    %168 = vector.broadcast %cst_67 : f32 to vector<8x128xf32>
    %169 = arith.subf %165, %168 : vector<8x128xf32>
    %170 = arith.select %167, %169, %165 : vector<8x128xi1>, vector<8x128xf32>
    %171 = arith.extui %167 : vector<8x128xi1> to vector<8x128xi32>
    %172 = arith.sitofp %171 : vector<8x128xi32> to vector<8x128xf32>
    %173 = arith.truncf %172 : vector<8x128xf32> to vector<8x128xbf16>
    %cst_68 = arith.constant dense<0.000000e+00> : vector<8x128xf32>
    %174 = tpu.matmul %173, %5, %cst_68 {dimension_numbers = #tpu.dot_dimension_numbers<[1], [0], [0], [1], [0, 0, 1, 1], [], []>} : vector<8x128xbf16>, vector<128x128xbf16>, vector<8x128xf32> -> vector<8x128xf32>
    %175 = vector.broadcast %7 : vector<1x128xf32> to vector<8x128xf32>
    %176 = arith.addf %174, %175 : vector<8x128xf32>
    %cst_69 = arith.constant 0.899999976 : f32
    %177 = vector.broadcast %cst_69 : f32 to vector<8x128xf32>
    %178 = arith.mulf %177, %138 : vector<8x128xf32>
    %179 = arith.addf %178, %176 : vector<8x128xf32>
    %cst_70 = arith.constant 1.000000e+00 : f32
    %180 = vector.broadcast %cst_70 : f32 to vector<8x128xf32>
    %181 = arith.cmpf ogt, %179, %180 : vector<8x128xf32>
    %cst_71 = arith.constant 1.000000e+00 : f32
    %182 = vector.broadcast %cst_71 : f32 to vector<8x128xf32>
    %183 = arith.subf %179, %182 : vector<8x128xf32>
    %184 = arith.select %181, %183, %179 : vector<8x128xi1>, vector<8x128xf32>
    %185 = arith.extui %181 : vector<8x128xi1> to vector<8x128xi32>
    %186 = arith.sitofp %185 : vector<8x128xi32> to vector<8x128xf32>
    %187 = arith.index_cast %c3_i32 : i32 to index
    %c0_72 = arith.constant 0 : index
    %c0_73 = arith.constant 0 : index
    %188 = vector.load %arg9[%187, %c0_72, %c0_73] : memref<8x8x128xf32, #tpu.memory_space<vmem>>, vector<1x8x128xf32>
    %189 = vector.shape_cast %188 : vector<1x8x128xf32> to vector<8x128xf32>
    %190 = vector.shape_cast %186 : vector<8x128xf32> to vector<1x8x128xf32>
    tpu.vector_store %arg9[%187, %c0_72, %c0_73], %190 {strides = array<i32>} : memref<8x8x128xf32, #tpu.memory_space<vmem>>, vector<1x8x128xf32>,
    %191 = arith.index_cast %c3_i32 : i32 to index
    %c0_74 = arith.constant 0 : index
    %c0_75 = arith.constant 0 : index
    %192 = vector.load %arg10[%191, %c0_74, %c0_75] : memref<8x8x128xf32, #tpu.memory_space<vmem>>, vector<1x8x128xf32>
    %193 = vector.shape_cast %192 : vector<1x8x128xf32> to vector<8x128xf32>
    %194 = vector.shape_cast %184 : vector<8x128xf32> to vector<1x8x128xf32>
    tpu.vector_store %arg10[%191, %c0_74, %c0_75], %194 {strides = array<i32>} : memref<8x8x128xf32, #tpu.memory_space<vmem>>, vector<1x8x128xf32>,
    %c4_i32 = arith.constant 4 : i32
    %cst_76 = arith.constant 0.899999976 : f32
    %195 = vector.broadcast %cst_76 : f32 to vector<8x128xf32>
    %196 = arith.mulf %195, %156 : vector<8x128xf32>
    %197 = arith.addf %196, %3 : vector<8x128xf32>
    %cst_77 = arith.constant 1.000000e+00 : f32
    %198 = vector.broadcast %cst_77 : f32 to vector<8x128xf32>
    %199 = arith.cmpf ogt, %197, %198 : vector<8x128xf32>
    %cst_78 = arith.constant 1.000000e+00 : f32
    %200 = vector.broadcast %cst_78 : f32 to vector<8x128xf32>
    %201 = arith.subf %197, %200 : vector<8x128xf32>
    %202 = arith.select %199, %201, %197 : vector<8x128xi1>, vector<8x128xf32>
    %203 = arith.extui %199 : vector<8x128xi1> to vector<8x128xi32>
    %204 = arith.sitofp %203 : vector<8x128xi32> to vector<8x128xf32>
    %205 = arith.truncf %204 : vector<8x128xf32> to vector<8x128xbf16>
    %cst_79 = arith.constant dense<0.000000e+00> : vector<8x128xf32>
    %206 = tpu.matmul %205, %4, %cst_79 {dimension_numbers = #tpu.dot_dimension_numbers<[1], [0], [0], [1], [0, 0, 1, 1], [], []>} : vector<8x128xbf16>, vector<128x128xbf16>, vector<8x128xf32> -> vector<8x128xf32>
    %207 = vector.broadcast %6 : vector<1x128xf32> to vector<8x128xf32>
    %208 = arith.addf %206, %207 : vector<8x128xf32>
    %cst_80 = arith.constant 0.899999976 : f32
    %209 = vector.broadcast %cst_80 : f32 to vector<8x128xf32>
    %210 = arith.mulf %209, %170 : vector<8x128xf32>
    %211 = arith.addf %210, %208 : vector<8x128xf32>
    %cst_81 = arith.constant 1.000000e+00 : f32
    %212 = vector.broadcast %cst_81 : f32 to vector<8x128xf32>
    %213 = arith.cmpf ogt, %211, %212 : vector<8x128xf32>
    %cst_82 = arith.constant 1.000000e+00 : f32
    %214 = vector.broadcast %cst_82 : f32 to vector<8x128xf32>
    %215 = arith.subf %211, %214 : vector<8x128xf32>
    %216 = arith.select %213, %215, %211 : vector<8x128xi1>, vector<8x128xf32>
    %217 = arith.extui %213 : vector<8x128xi1> to vector<8x128xi32>
    %218 = arith.sitofp %217 : vector<8x128xi32> to vector<8x128xf32>
    %219 = arith.truncf %218 : vector<8x128xf32> to vector<8x128xbf16>
    %cst_83 = arith.constant dense<0.000000e+00> : vector<8x128xf32>
    %220 = tpu.matmul %219, %5, %cst_83 {dimension_numbers = #tpu.dot_dimension_numbers<[1], [0], [0], [1], [0, 0, 1, 1], [], []>} : vector<8x128xbf16>, vector<128x128xbf16>, vector<8x128xf32> -> vector<8x128xf32>
    %221 = vector.broadcast %7 : vector<1x128xf32> to vector<8x128xf32>
    %222 = arith.addf %220, %221 : vector<8x128xf32>
    %cst_84 = arith.constant 0.899999976 : f32
    %223 = vector.broadcast %cst_84 : f32 to vector<8x128xf32>
    %224 = arith.mulf %223, %184 : vector<8x128xf32>
    %225 = arith.addf %224, %222 : vector<8x128xf32>
    %cst_85 = arith.constant 1.000000e+00 : f32
    %226 = vector.broadcast %cst_85 : f32 to vector<8x128xf32>
    %227 = arith.cmpf ogt, %225, %226 : vector<8x128xf32>
    %cst_86 = arith.constant 1.000000e+00 : f32
    %228 = vector.broadcast %cst_86 : f32 to vector<8x128xf32>
    %229 = arith.subf %225, %228 : vector<8x128xf32>
    %230 = arith.select %227, %229, %225 : vector<8x128xi1>, vector<8x128xf32>
    %231 = arith.extui %227 : vector<8x128xi1> to vector<8x128xi32>
    %232 = arith.sitofp %231 : vector<8x128xi32> to vector<8x128xf32>
    %233 = arith.index_cast %c4_i32 : i32 to index
    %c0_87 = arith.constant 0 : index
    %c0_88 = arith.constant 0 : index
    %234 = vector.load %arg9[%233, %c0_87, %c0_88] : memref<8x8x128xf32, #tpu.memory_space<vmem>>, vector<1x8x128xf32>
    %235 = vector.shape_cast %234 : vector<1x8x128xf32> to vector<8x128xf32>
    %236 = vector.shape_cast %232 : vector<8x128xf32> to vector<1x8x128xf32>
    tpu.vector_store %arg9[%233, %c0_87, %c0_88], %236 {strides = array<i32>} : memref<8x8x128xf32, #tpu.memory_space<vmem>>, vector<1x8x128xf32>,
    %237 = arith.index_cast %c4_i32 : i32 to index
    %c0_89 = arith.constant 0 : index
    %c0_90 = arith.constant 0 : index
    %238 = vector.load %arg10[%237, %c0_89, %c0_90] : memref<8x8x128xf32, #tpu.memory_space<vmem>>, vector<1x8x128xf32>
    %239 = vector.shape_cast %238 : vector<1x8x128xf32> to vector<8x128xf32>
    %240 = vector.shape_cast %230 : vector<8x128xf32> to vector<1x8x128xf32>
    tpu.vector_store %arg10[%237, %c0_89, %c0_90], %240 {strides = array<i32>} : memref<8x8x128xf32, #tpu.memory_space<vmem>>, vector<1x8x128xf32>,
    %c5_i32 = arith.constant 5 : i32
    %cst_91 = arith.constant 0.899999976 : f32
    %241 = vector.broadcast %cst_91 : f32 to vector<8x128xf32>
    %242 = arith.mulf %241, %202 : vector<8x128xf32>
    %243 = arith.addf %242, %3 : vector<8x128xf32>
    %cst_92 = arith.constant 1.000000e+00 : f32
    %244 = vector.broadcast %cst_92 : f32 to vector<8x128xf32>
    %245 = arith.cmpf ogt, %243, %244 : vector<8x128xf32>
    %cst_93 = arith.constant 1.000000e+00 : f32
    %246 = vector.broadcast %cst_93 : f32 to vector<8x128xf32>
    %247 = arith.subf %243, %246 : vector<8x128xf32>
    %248 = arith.select %245, %247, %243 : vector<8x128xi1>, vector<8x128xf32>
    %249 = arith.extui %245 : vector<8x128xi1> to vector<8x128xi32>
    %250 = arith.sitofp %249 : vector<8x128xi32> to vector<8x128xf32>
    %251 = arith.truncf %250 : vector<8x128xf32> to vector<8x128xbf16>
    %cst_94 = arith.constant dense<0.000000e+00> : vector<8x128xf32>
    %252 = tpu.matmul %251, %4, %cst_94 {dimension_numbers = #tpu.dot_dimension_numbers<[1], [0], [0], [1], [0, 0, 1, 1], [], []>} : vector<8x128xbf16>, vector<128x128xbf16>, vector<8x128xf32> -> vector<8x128xf32>
    %253 = vector.broadcast %6 : vector<1x128xf32> to vector<8x128xf32>
    %254 = arith.addf %252, %253 : vector<8x128xf32>
    %cst_95 = arith.constant 0.899999976 : f32
    %255 = vector.broadcast %cst_95 : f32 to vector<8x128xf32>
    %256 = arith.mulf %255, %216 : vector<8x128xf32>
    %257 = arith.addf %256, %254 : vector<8x128xf32>
    %cst_96 = arith.constant 1.000000e+00 : f32
    %258 = vector.broadcast %cst_96 : f32 to vector<8x128xf32>
    %259 = arith.cmpf ogt, %257, %258 : vector<8x128xf32>
    %cst_97 = arith.constant 1.000000e+00 : f32
    %260 = vector.broadcast %cst_97 : f32 to vector<8x128xf32>
    %261 = arith.subf %257, %260 : vector<8x128xf32>
    %262 = arith.select %259, %261, %257 : vector<8x128xi1>, vector<8x128xf32>
    %263 = arith.extui %259 : vector<8x128xi1> to vector<8x128xi32>
    %264 = arith.sitofp %263 : vector<8x128xi32> to vector<8x128xf32>
    %265 = arith.truncf %264 : vector<8x128xf32> to vector<8x128xbf16>
    %cst_98 = arith.constant dense<0.000000e+00> : vector<8x128xf32>
    %266 = tpu.matmul %265, %5, %cst_98 {dimension_numbers = #tpu.dot_dimension_numbers<[1], [0], [0], [1], [0, 0, 1, 1], [], []>} : vector<8x128xbf16>, vector<128x128xbf16>, vector<8x128xf32> -> vector<8x128xf32>
    %267 = vector.broadcast %7 : vector<1x128xf32> to vector<8x128xf32>
    %268 = arith.addf %266, %267 : vector<8x128xf32>
    %cst_99 = arith.constant 0.899999976 : f32
    %269 = vector.broadcast %cst_99 : f32 to vector<8x128xf32>
    %270 = arith.mulf %269, %230 : vector<8x128xf32>
    %271 = arith.addf %270, %268 : vector<8x128xf32>
    %cst_100 = arith.constant 1.000000e+00 : f32
    %272 = vector.broadcast %cst_100 : f32 to vector<8x128xf32>
    %273 = arith.cmpf ogt, %271, %272 : vector<8x128xf32>
    %cst_101 = arith.constant 1.000000e+00 : f32
    %274 = vector.broadcast %cst_101 : f32 to vector<8x128xf32>
    %275 = arith.subf %271, %274 : vector<8x128xf32>
    %276 = arith.select %273, %275, %271 : vector<8x128xi1>, vector<8x128xf32>
    %277 = arith.extui %273 : vector<8x128xi1> to vector<8x128xi32>
    %278 = arith.sitofp %277 : vector<8x128xi32> to vector<8x128xf32>
    %279 = arith.index_cast %c5_i32 : i32 to index
    %c0_102 = arith.constant 0 : index
    %c0_103 = arith.constant 0 : index
    %280 = vector.load %arg9[%279, %c0_102, %c0_103] : memref<8x8x128xf32, #tpu.memory_space<vmem>>, vector<1x8x128xf32>
    %281 = vector.shape_cast %280 : vector<1x8x128xf32> to vector<8x128xf32>
    %282 = vector.shape_cast %278 : vector<8x128xf32> to vector<1x8x128xf32>
    tpu.vector_store %arg9[%279, %c0_102, %c0_103], %282 {strides = array<i32>} : memref<8x8x128xf32, #tpu.memory_space<vmem>>, vector<1x8x128xf32>,
    %283 = arith.index_cast %c5_i32 : i32 to index
    %c0_104 = arith.constant 0 : index
    %c0_105 = arith.constant 0 : index
    %284 = vector.load %arg10[%283, %c0_104, %c0_105] : memref<8x8x128xf32, #tpu.memory_space<vmem>>, vector<1x8x128xf32>
    %285 = vector.shape_cast %284 : vector<1x8x128xf32> to vector<8x128xf32>
    %286 = vector.shape_cast %276 : vector<8x128xf32> to vector<1x8x128xf32>
    tpu.vector_store %arg10[%283, %c0_104, %c0_105], %286 {strides = array<i32>} : memref<8x8x128xf32, #tpu.memory_space<vmem>>, vector<1x8x128xf32>,
    %c6_i32 = arith.constant 6 : i32
    %cst_106 = arith.constant 0.899999976 : f32
    %287 = vector.broadcast %cst_106 : f32 to vector<8x128xf32>
    %288 = arith.mulf %287, %248 : vector<8x128xf32>
    %289 = arith.addf %288, %3 : vector<8x128xf32>
    %cst_107 = arith.constant 1.000000e+00 : f32
    %290 = vector.broadcast %cst_107 : f32 to vector<8x128xf32>
    %291 = arith.cmpf ogt, %289, %290 : vector<8x128xf32>
    %cst_108 = arith.constant 1.000000e+00 : f32
    %292 = vector.broadcast %cst_108 : f32 to vector<8x128xf32>
    %293 = arith.subf %289, %292 : vector<8x128xf32>
    %294 = arith.select %291, %293, %289 : vector<8x128xi1>, vector<8x128xf32>
    %295 = arith.extui %291 : vector<8x128xi1> to vector<8x128xi32>
    %296 = arith.sitofp %295 : vector<8x128xi32> to vector<8x128xf32>
    %297 = arith.truncf %296 : vector<8x128xf32> to vector<8x128xbf16>
    %cst_109 = arith.constant dense<0.000000e+00> : vector<8x128xf32>
    %298 = tpu.matmul %297, %4, %cst_109 {dimension_numbers = #tpu.dot_dimension_numbers<[1], [0], [0], [1], [0, 0, 1, 1], [], []>} : vector<8x128xbf16>, vector<128x128xbf16>, vector<8x128xf32> -> vector<8x128xf32>
    %299 = vector.broadcast %6 : vector<1x128xf32> to vector<8x128xf32>
    %300 = arith.addf %298, %299 : vector<8x128xf32>
    %cst_110 = arith.constant 0.899999976 : f32
    %301 = vector.broadcast %cst_110 : f32 to vector<8x128xf32>
    %302 = arith.mulf %301, %262 : vector<8x128xf32>
    %303 = arith.addf %302, %300 : vector<8x128xf32>
    %cst_111 = arith.constant 1.000000e+00 : f32
    %304 = vector.broadcast %cst_111 : f32 to vector<8x128xf32>
    %305 = arith.cmpf ogt, %303, %304 : vector<8x128xf32>
    %cst_112 = arith.constant 1.000000e+00 : f32
    %306 = vector.broadcast %cst_112 : f32 to vector<8x128xf32>
    %307 = arith.subf %303, %306 : vector<8x128xf32>
    %308 = arith.select %305, %307, %303 : vector<8x128xi1>, vector<8x128xf32>
    %309 = arith.extui %305 : vector<8x128xi1> to vector<8x128xi32>
    %310 = arith.sitofp %309 : vector<8x128xi32> to vector<8x128xf32>
    %311 = arith.truncf %310 : vector<8x128xf32> to vector<8x128xbf16>
    %cst_113 = arith.constant dense<0.000000e+00> : vector<8x128xf32>
    %312 = tpu.matmul %311, %5, %cst_113 {dimension_numbers = #tpu.dot_dimension_numbers<[1], [0], [0], [1], [0, 0, 1, 1], [], []>} : vector<8x128xbf16>, vector<128x128xbf16>, vector<8x128xf32> -> vector<8x128xf32>
    %313 = vector.broadcast %7 : vector<1x128xf32> to vector<8x128xf32>
    %314 = arith.addf %312, %313 : vector<8x128xf32>
    %cst_114 = arith.constant 0.899999976 : f32
    %315 = vector.broadcast %cst_114 : f32 to vector<8x128xf32>
    %316 = arith.mulf %315, %276 : vector<8x128xf32>
    %317 = arith.addf %316, %314 : vector<8x128xf32>
    %cst_115 = arith.constant 1.000000e+00 : f32
    %318 = vector.broadcast %cst_115 : f32 to vector<8x128xf32>
    %319 = arith.cmpf ogt, %317, %318 : vector<8x128xf32>
    %cst_116 = arith.constant 1.000000e+00 : f32
    %320 = vector.broadcast %cst_116 : f32 to vector<8x128xf32>
    %321 = arith.subf %317, %320 : vector<8x128xf32>
    %322 = arith.select %319, %321, %317 : vector<8x128xi1>, vector<8x128xf32>
    %323 = arith.extui %319 : vector<8x128xi1> to vector<8x128xi32>
    %324 = arith.sitofp %323 : vector<8x128xi32> to vector<8x128xf32>
    %325 = arith.index_cast %c6_i32 : i32 to index
    %c0_117 = arith.constant 0 : index
    %c0_118 = arith.constant 0 : index
    %326 = vector.load %arg9[%325, %c0_117, %c0_118] : memref<8x8x128xf32, #tpu.memory_space<vmem>>, vector<1x8x128xf32>
    %327 = vector.shape_cast %326 : vector<1x8x128xf32> to vector<8x128xf32>
    %328 = vector.shape_cast %324 : vector<8x128xf32> to vector<1x8x128xf32>
    tpu.vector_store %arg9[%325, %c0_117, %c0_118], %328 {strides = array<i32>} : memref<8x8x128xf32, #tpu.memory_space<vmem>>, vector<1x8x128xf32>,
    %329 = arith.index_cast %c6_i32 : i32 to index
    %c0_119 = arith.constant 0 : index
    %c0_120 = arith.constant 0 : index
    %330 = vector.load %arg10[%329, %c0_119, %c0_120] : memref<8x8x128xf32, #tpu.memory_space<vmem>>, vector<1x8x128xf32>
    %331 = vector.shape_cast %330 : vector<1x8x128xf32> to vector<8x128xf32>
    %332 = vector.shape_cast %322 : vector<8x128xf32> to vector<1x8x128xf32>
    tpu.vector_store %arg10[%329, %c0_119, %c0_120], %332 {strides = array<i32>} : memref<8x8x128xf32, #tpu.memory_space<vmem>>, vector<1x8x128xf32>,
    %c7_i32 = arith.constant 7 : i32
    %cst_121 = arith.constant 0.899999976 : f32
    %333 = vector.broadcast %cst_121 : f32 to vector<8x128xf32>
    %334 = arith.mulf %333, %294 : vector<8x128xf32>
    %335 = arith.addf %334, %3 : vector<8x128xf32>
    %cst_122 = arith.constant 1.000000e+00 : f32
    %336 = vector.broadcast %cst_122 : f32 to vector<8x128xf32>
    %337 = arith.cmpf ogt, %335, %336 : vector<8x128xf32>
    %cst_123 = arith.constant 1.000000e+00 : f32
    %338 = vector.broadcast %cst_123 : f32 to vector<8x128xf32>
    %339 = arith.subf %335, %338 : vector<8x128xf32>
    %340 = arith.select %337, %339, %335 : vector<8x128xi1>, vector<8x128xf32>
    %341 = arith.extui %337 : vector<8x128xi1> to vector<8x128xi32>
    %342 = arith.sitofp %341 : vector<8x128xi32> to vector<8x128xf32>
    %343 = arith.truncf %342 : vector<8x128xf32> to vector<8x128xbf16>
    %cst_124 = arith.constant dense<0.000000e+00> : vector<8x128xf32>
    %344 = tpu.matmul %343, %4, %cst_124 {dimension_numbers = #tpu.dot_dimension_numbers<[1], [0], [0], [1], [0, 0, 1, 1], [], []>} : vector<8x128xbf16>, vector<128x128xbf16>, vector<8x128xf32> -> vector<8x128xf32>
    %345 = vector.broadcast %6 : vector<1x128xf32> to vector<8x128xf32>
    %346 = arith.addf %344, %345 : vector<8x128xf32>
    %cst_125 = arith.constant 0.899999976 : f32
    %347 = vector.broadcast %cst_125 : f32 to vector<8x128xf32>
    %348 = arith.mulf %347, %308 : vector<8x128xf32>
    %349 = arith.addf %348, %346 : vector<8x128xf32>
    %cst_126 = arith.constant 1.000000e+00 : f32
    %350 = vector.broadcast %cst_126 : f32 to vector<8x128xf32>
    %351 = arith.cmpf ogt, %349, %350 : vector<8x128xf32>
    %cst_127 = arith.constant 1.000000e+00 : f32
    %352 = vector.broadcast %cst_127 : f32 to vector<8x128xf32>
    %353 = arith.subf %349, %352 : vector<8x128xf32>
    %354 = arith.select %351, %353, %349 : vector<8x128xi1>, vector<8x128xf32>
    %355 = arith.extui %351 : vector<8x128xi1> to vector<8x128xi32>
    %356 = arith.sitofp %355 : vector<8x128xi32> to vector<8x128xf32>
    %357 = arith.truncf %356 : vector<8x128xf32> to vector<8x128xbf16>
    %cst_128 = arith.constant dense<0.000000e+00> : vector<8x128xf32>
    %358 = tpu.matmul %357, %5, %cst_128 {dimension_numbers = #tpu.dot_dimension_numbers<[1], [0], [0], [1], [0, 0, 1, 1], [], []>} : vector<8x128xbf16>, vector<128x128xbf16>, vector<8x128xf32> -> vector<8x128xf32>
    %359 = vector.broadcast %7 : vector<1x128xf32> to vector<8x128xf32>
    %360 = arith.addf %358, %359 : vector<8x128xf32>
    %cst_129 = arith.constant 0.899999976 : f32
    %361 = vector.broadcast %cst_129 : f32 to vector<8x128xf32>
    %362 = arith.mulf %361, %322 : vector<8x128xf32>
    %363 = arith.addf %362, %360 : vector<8x128xf32>
    %cst_130 = arith.constant 1.000000e+00 : f32
    %364 = vector.broadcast %cst_130 : f32 to vector<8x128xf32>
    %365 = arith.cmpf ogt, %363, %364 : vector<8x128xf32>
    %cst_131 = arith.constant 1.000000e+00 : f32
    %366 = vector.broadcast %cst_131 : f32 to vector<8x128xf32>
    %367 = arith.subf %363, %366 : vector<8x128xf32>
    %368 = arith.select %365, %367, %363 : vector<8x128xi1>, vector<8x128xf32>
    %369 = arith.extui %365 : vector<8x128xi1> to vector<8x128xi32>
    %370 = arith.sitofp %369 : vector<8x128xi32> to vector<8x128xf32>
    %371 = arith.index_cast %c7_i32 : i32 to index
    %c0_132 = arith.constant 0 : index
    %c0_133 = arith.constant 0 : index
    %372 = vector.load %arg9[%371, %c0_132, %c0_133] : memref<8x8x128xf32, #tpu.memory_space<vmem>>, vector<1x8x128xf32>
    %373 = vector.shape_cast %372 : vector<1x8x128xf32> to vector<8x128xf32>
    %374 = vector.shape_cast %370 : vector<8x128xf32> to vector<1x8x128xf32>
    tpu.vector_store %arg9[%371, %c0_132, %c0_133], %374 {strides = array<i32>} : memref<8x8x128xf32, #tpu.memory_space<vmem>>, vector<1x8x128xf32>,
    %375 = arith.index_cast %c7_i32 : i32 to index
    %c0_134 = arith.constant 0 : index
    %c0_135 = arith.constant 0 : index
    %376 = vector.load %arg10[%375, %c0_134, %c0_135] : memref<8x8x128xf32, #tpu.memory_space<vmem>>, vector<1x8x128xf32>
    %377 = vector.shape_cast %376 : vector<1x8x128xf32> to vector<8x128xf32>
    %378 = vector.shape_cast %368 : vector<8x128xf32> to vector<1x8x128xf32>
    tpu.vector_store %arg10[%375, %c0_134, %c0_135], %378 {strides = array<i32>} : memref<8x8x128xf32, #tpu.memory_space<vmem>>, vector<1x8x128xf32>,
    %c8_i32 = arith.constant 8 : i32
    %c0_136 = arith.constant 0 : index
    %c0_137 = arith.constant 0 : index
    %379 = vector.load %arg12[%c0_136, %c0_137] : memref<8x128xf32, #tpu.memory_space<vmem>>, vector<8x128xf32>
    tpu.vector_store %arg12[%c0_136, %c0_137], %340 {strides = array<i32>} : memref<8x128xf32, #tpu.memory_space<vmem>>, vector<8x128xf32>,
    %c0_138 = arith.constant 0 : index
    %c0_139 = arith.constant 0 : index
    %380 = vector.load %arg13[%c0_138, %c0_139] : memref<8x128xf32, #tpu.memory_space<vmem>>, vector<8x128xf32>
    tpu.vector_store %arg13[%c0_138, %c0_139], %354 {strides = array<i32>} : memref<8x128xf32, #tpu.memory_space<vmem>>, vector<8x128xf32>,
    %c0_140 = arith.constant 0 : index
    %c0_141 = arith.constant 0 : index
    %381 = vector.load %arg14[%c0_140, %c0_141] : memref<8x128xf32, #tpu.memory_space<vmem>>, vector<8x128xf32>
    tpu.vector_store %arg14[%c0_140, %c0_141], %368 {strides = array<i32>} : memref<8x128xf32, #tpu.memory_space<vmem>>, vector<8x128xf32>,
    return
  }
  func.func @transform_0(%arg0: i32, %arg1: i32) -> (i32, i32) {
    %c0_i32 = arith.constant 0 : i32
    %c0_i32_0 = arith.constant 0 : i32
    return %arg0, %c0_i32 : i32, i32
  }
  func.func @transform_1(%arg0: i32, %arg1: i32) -> (i32, i32) {
    %c0_i32 = arith.constant 0 : i32
    %c0_i32_0 = arith.constant 0 : i32
    %c0_i32_1 = arith.constant 0 : i32
    return %c0_i32, %c0_i32_0 : i32, i32
  }
  func.func @transform_2(%arg0: i32, %arg1: i32) -> (i32, i32) {
    %c0_i32 = arith.constant 0 : i32
    %c0_i32_0 = arith.constant 0 : i32
    %c0_i32_1 = arith.constant 0 : i32
    return %c0_i32, %c0_i32_0 : i32, i32
  }
  func.func @transform_3(%arg0: i32, %arg1: i32) -> (i32, i32) {
    %c0_i32 = arith.constant 0 : i32
    %c0_i32_0 = arith.constant 0 : i32
    %c0_i32_1 = arith.constant 0 : i32
    return %c0_i32, %c0_i32_0 : i32, i32
  }
  func.func @transform_4(%arg0: i32, %arg1: i32) -> (i32, i32) {
    %c0_i32 = arith.constant 0 : i32
    %c0_i32_0 = arith.constant 0 : i32
    %c0_i32_1 = arith.constant 0 : i32
    return %c0_i32, %c0_i32_0 : i32, i32
  }
  func.func @transform_5(%arg0: i32, %arg1: i32) -> (i32, i32) {
    %c0_i32 = arith.constant 0 : i32
    %c0_i32_0 = arith.constant 0 : i32
    %c0_i32_1 = arith.constant 0 : i32
    return %c0_i32, %c0_i32_0 : i32, i32
  }
  func.func @transform_6(%arg0: i32, %arg1: i32) -> (i32, i32) {
    %c0_i32 = arith.constant 0 : i32
    %c0_i32_0 = arith.constant 0 : i32
    %c0_i32_1 = arith.constant 0 : i32
    return %c0_i32, %c0_i32_0 : i32, i32
  }
  func.func @transform_7(%arg0: i32, %arg1: i32) -> (i32, i32, i32) {
    %c0_i32 = arith.constant 0 : i32
    %c0_i32_0 = arith.constant 0 : i32
    return %arg1, %arg0, %c0_i32 : i32, i32, i32
  }
  func.func @transform_8(%arg0: i32, %arg1: i32) -> (i32, i32, i32) {
    %c0_i32 = arith.constant 0 : i32
    %c0_i32_0 = arith.constant 0 : i32
    return %arg1, %arg0, %c0_i32 : i32, i32, i32
  }
}

module attributes {stable_mosaic.version = 11 : i64} {
  func.func @_snn2_kernel(%arg0: i32, %arg1: i32, %arg2: memref<8x128xbf16, #tpu.memory_space<vmem>>, %arg3: memref<128x128xbf16, #tpu.memory_space<vmem>>, %arg4: memref<1x128xf32, #tpu.memory_space<vmem>>, %arg5: memref<128x128xbf16, #tpu.memory_space<vmem>>, %arg6: memref<1x128xf32, #tpu.memory_space<vmem>>, %arg7: memref<128x128xbf16, #tpu.memory_space<vmem>>, %arg8: memref<1x128xf32, #tpu.memory_space<vmem>>, %arg9: memref<8x8x128xf32, #tpu.memory_space<vmem>>, %arg10: memref<8x8x128xf32, #tpu.memory_space<vmem>>, %arg11: memref<8x128xf32, #tpu.memory_space<vmem>>, %arg12: memref<8x128xf32, #tpu.memory_space<vmem>>, %arg13: memref<8x128xf32, #tpu.memory_space<vmem>>, %arg14: memref<8x128xf32, #tpu.memory_space<vmem>>) attributes {dimension_semantics = [#tpu.dimension_semantics<parallel>, #tpu.dimension_semantics<arbitrary>], iteration_bounds = array<i64: 1, 1>, scalar_prefetch = 0 : i64, scratch_operands = 4 : i64, tpu.core_type = #tpu.core_type<tc>, window_params = [{transform_indices = @transform_0, window_bounds = array<i64: 8, 128>}, {pipeline_mode = #tpu.pipeline_mode<synchronous>, transform_indices = @transform_1, window_bounds = array<i64: 128, 128>}, {pipeline_mode = #tpu.pipeline_mode<synchronous>, transform_indices = @transform_2, window_bounds = array<i64: 1, 128>}, {pipeline_mode = #tpu.pipeline_mode<synchronous>, transform_indices = @transform_3, window_bounds = array<i64: 128, 128>}, {pipeline_mode = #tpu.pipeline_mode<synchronous>, transform_indices = @transform_4, window_bounds = array<i64: 1, 128>}, {pipeline_mode = #tpu.pipeline_mode<synchronous>, transform_indices = @transform_5, window_bounds = array<i64: 128, 128>}, {pipeline_mode = #tpu.pipeline_mode<synchronous>, transform_indices = @transform_6, window_bounds = array<i64: 1, 128>}, {transform_indices = @transform_7, window_bounds = array<i64: 8, 8, 128>}, {transform_indices = @transform_8, window_bounds = array<i64: 8, 8, 128>}]} {
    %c0_i32 = arith.constant 0 : i32
    %0 = arith.cmpi eq, %arg1, %c0_i32 : i32
    %1 = arith.extui %0 : i1 to i32
    %c0_i32_0 = arith.constant 0 : i32
    %2 = arith.cmpi ne, %1, %c0_i32_0 : i32
    scf.if %2 {
      %c0_142 = arith.constant 0 : index
      %c0_143 = arith.constant 0 : index
      %382 = vector.load %arg2[%c0_142, %c0_143] : memref<8x128xbf16, #tpu.memory_space<vmem>>, vector<8x128xbf16>
      %c0_144 = arith.constant 0 : index
      %c0_145 = arith.constant 0 : index
      %383 = vector.load %arg3[%c0_144, %c0_145] : memref<128x128xbf16, #tpu.memory_space<vmem>>, vector<128x128xbf16>
      %cst_146 = arith.constant dense<0.000000e+00> : vector<8x128xf32>
      %384 = tpu.matmul %382, %383, %cst_146 {dimension_numbers = #tpu.dot_dimension_numbers<[1], [0], [0], [1], [0, 0, 1, 1], [], []>} : vector<8x128xbf16>, vector<128x128xbf16>, vector<8x128xf32> -> vector<8x128xf32>
      %c0_147 = arith.constant 0 : index
      %c0_148 = arith.constant 0 : index
      %385 = vector.load %arg4[%c0_147, %c0_148] : memref<1x128xf32, #tpu.memory_space<vmem>>, vector<1x128xf32>
      %386 = vector.broadcast %385 : vector<1x128xf32> to vector<8x128xf32>
      %387 = arith.addf %384, %386 : vector<8x128xf32>
      %c0_149 = arith.constant 0 : index
      %c0_150 = arith.constant 0 : index
      %388 = vector.load %arg11[%c0_149, %c0_150] : memref<8x128xf32, #tpu.memory_space<vmem>>, vector<8x128xf32>
      tpu.vector_store %arg11[%c0_149, %c0_150], %387 {strides = array<i32>} : memref<8x128xf32, #tpu.memory_space<vmem>>, vector<8x128xf32>,
      %cst_151 = arith.constant 0.000000e+00 : f32
      %389 = vector.broadcast %cst_151 : f32 to vector<8x128xf32>
      %c0_152 = arith.constant 0 : index
      %c0_153 = arith.constant 0 : index
      %390 = vector.load %arg12[%c0_152, %c0_153] : memref<8x128xf32, #tpu.memory_space<vmem>>, vector<8x128xf32>
      tpu.vector_store %arg12[%c0_152, %c0_153], %389 {strides = array<i32>} : memref<8x128xf32, #tpu.memory_space<vmem>>, vector<8x128xf32>,
      %cst_154 = arith.constant 0.000000e+00 : f32
      %391 = vector.broadcast %cst_154 : f32 to vector<8x128xf32>
      %c0_155 = arith.constant 0 : index
      %c0_156 = arith.constant 0 : index
      %392 = vector.load %arg13[%c0_155, %c0_156] : memref<8x128xf32, #tpu.memory_space<vmem>>, vector<8x128xf32>
      tpu.vector_store %arg13[%c0_155, %c0_156], %391 {strides = array<i32>} : memref<8x128xf32, #tpu.memory_space<vmem>>, vector<8x128xf32>,
      %cst_157 = arith.constant 0.000000e+00 : f32
      %393 = vector.broadcast %cst_157 : f32 to vector<8x128xf32>
      %c0_158 = arith.constant 0 : index
      %c0_159 = arith.constant 0 : index
      %394 = vector.load %arg14[%c0_158, %c0_159] : memref<8x128xf32, #tpu.memory_space<vmem>>, vector<8x128xf32>
      tpu.vector_store %arg14[%c0_158, %c0_159], %393 {strides = array<i32>} : memref<8x128xf32, #tpu.memory_space<vmem>>, vector<8x128xf32>,
    } else {
    }
    %c0 = arith.constant 0 : index
    %c0_1 = arith.constant 0 : index
    %3 = vector.load %arg11[%c0, %c0_1] : memref<8x128xf32, #tpu.memory_space<vmem>>, vector<8x128xf32>
    %c0_2 = arith.constant 0 : index
    %c0_3 = arith.constant 0 : index
    %4 = vector.load %arg5[%c0_2, %c0_3] : memref<128x128xbf16, #tpu.memory_space<vmem>>, vector<128x128xbf16>
    %c0_4 = arith.constant 0 : index
    %c0_5 = arith.constant 0 : index
    %5 = vector.load %arg7[%c0_4, %c0_5] : memref<128x128xbf16, #tpu.memory_space<vmem>>, vector<128x128xbf16>
    %c0_6 = arith.constant 0 : index
    %c0_7 = arith.constant 0 : index
    %6 = vector.load %arg6[%c0_6, %c0_7] : memref<1x128xf32, #tpu.memory_space<vmem>>, vector<1x128xf32>
    %c0_8 = arith.constant 0 : index
    %c0_9 = arith.constant 0 : index
    %7 = vector.load %arg8[%c0_8, %c0_9] : memref<1x128xf32, #tpu.memory_space<vmem>>, vector<1x128xf32>
    %c0_10 = arith.constant 0 : index
    %c0_11 = arith.constant 0 : index
    %8 = vector.load %arg12[%c0_10, %c0_11] : memref<8x128xf32, #tpu.memory_space<vmem>>, vector<8x128xf32>
    %c0_12 = arith.constant 0 : index
    %c0_13 = arith.constant 0 : index
    %9 = vector.load %arg13[%c0_12, %c0_13] : memref<8x128xf32, #tpu.memory_space<vmem>>, vector<8x128xf32>
    %c0_14 = arith.constant 0 : index
    %c0_15 = arith.constant 0 : index
    %10 = vector.load %arg14[%c0_14, %c0_15] : memref<8x128xf32, #tpu.memory_space<vmem>>, vector<8x128xf32>
    %c0_i32_16 = arith.constant 0 : i32
    %cst = arith.constant 0.899999976 : f32
    %11 = vector.broadcast %cst : f32 to vector<8x128xf32>
    %12 = arith.mulf %11, %8 : vector<8x128xf32>
    %13 = arith.addf %12, %3 : vector<8x128xf32>
    %cst_17 = arith.constant 1.000000e+00 : f32
    %14 = vector.broadcast %cst_17 : f32 to vector<8x128xf32>
    %15 = arith.cmpf ogt, %13, %14 : vector<8x128xf32>
    %cst_18 = arith.constant 1.000000e+00 : f32
    %16 = vector.broadcast %cst_18 : f32 to vector<8x128xf32>
    %17 = arith.subf %13, %16 : vector<8x128xf32>
    %18 = arith.select %15, %17, %13 : vector<8x128xi1>, vector<8x128xf32>
    %19 = arith.extui %15 : vector<8x128xi1> to vector<8x128xi32>
    %20 = arith.sitofp %19 : vector<8x128xi32> to vector<8x128xf32>
    %21 = arith.truncf %20 : vector<8x128xf32> to vector<8x128xbf16>
    %cst_19 = arith.constant dense<0.000000e+00> : vector<8x128xf32>
    %22 = tpu.matmul %21, %4, %cst_19 {dimension_numbers = #tpu.dot_dimension_numbers<[1], [0], [0], [1], [0, 0, 1, 1], [], []>} : vector<8x128xbf16>, vector<128x128xbf16>, vector<8x128xf32> -> vector<8x128xf32>
    %23 = vector.broadcast %6 : vector<1x128xf32> to vector<8x128xf32>
    %24 = arith.addf %22, %23 : vector<8x128xf32>
    %cst_20 = arith.constant 0.899999976 : f32
    %25 = vector.broadcast %cst_20 : f32 to vector<8x128xf32>
    %26 = arith.mulf %25, %9 : vector<8x128xf32>
    %27 = arith.addf %26, %24 : vector<8x128xf32>
    %cst_21 = arith.constant 1.000000e+00 : f32
    %28 = vector.broadcast %cst_21 : f32 to vector<8x128xf32>
    %29 = arith.cmpf ogt, %27, %28 : vector<8x128xf32>
    %cst_22 = arith.constant 1.000000e+00 : f32
    %30 = vector.broadcast %cst_22 : f32 to vector<8x128xf32>
    %31 = arith.subf %27, %30 : vector<8x128xf32>
    %32 = arith.select %29, %31, %27 : vector<8x128xi1>, vector<8x128xf32>
    %33 = arith.extui %29 : vector<8x128xi1> to vector<8x128xi32>
    %34 = arith.sitofp %33 : vector<8x128xi32> to vector<8x128xf32>
    %35 = arith.truncf %34 : vector<8x128xf32> to vector<8x128xbf16>
    %cst_23 = arith.constant dense<0.000000e+00> : vector<8x128xf32>
    %36 = tpu.matmul %35, %5, %cst_23 {dimension_numbers = #tpu.dot_dimension_numbers<[1], [0], [0], [1], [0, 0, 1, 1], [], []>} : vector<8x128xbf16>, vector<128x128xbf16>, vector<8x128xf32> -> vector<8x128xf32>
    %37 = vector.broadcast %7 : vector<1x128xf32> to vector<8x128xf32>
    %38 = arith.addf %36, %37 : vector<8x128xf32>
    %cst_24 = arith.constant 0.899999976 : f32
    %39 = vector.broadcast %cst_24 : f32 to vector<8x128xf32>
    %40 = arith.mulf %39, %10 : vector<8x128xf32>
    %41 = arith.addf %40, %38 : vector<8x128xf32>
    %cst_25 = arith.constant 1.000000e+00 : f32
    %42 = vector.broadcast %cst_25 : f32 to vector<8x128xf32>
    %43 = arith.cmpf ogt, %41, %42 : vector<8x128xf32>
    %cst_26 = arith.constant 1.000000e+00 : f32
    %44 = vector.broadcast %cst_26 : f32 to vector<8x128xf32>
    %45 = arith.subf %41, %44 : vector<8x128xf32>
    %46 = arith.select %43, %45, %41 : vector<8x128xi1>, vector<8x128xf32>
    %47 = arith.extui %43 : vector<8x128xi1> to vector<8x128xi32>
    %48 = arith.sitofp %47 : vector<8x128xi32> to vector<8x128xf32>
    %49 = arith.index_cast %c0_i32_16 : i32 to index
    %c0_27 = arith.constant 0 : index
    %c0_28 = arith.constant 0 : index
    %50 = vector.load %arg9[%49, %c0_27, %c0_28] : memref<8x8x128xf32, #tpu.memory_space<vmem>>, vector<1x8x128xf32>
    %51 = vector.shape_cast %50 : vector<1x8x128xf32> to vector<8x128xf32>
    %52 = vector.shape_cast %48 : vector<8x128xf32> to vector<1x8x128xf32>
    tpu.vector_store %arg9[%49, %c0_27, %c0_28], %52 {strides = array<i32>} : memref<8x8x128xf32, #tpu.memory_space<vmem>>, vector<1x8x128xf32>,
    %53 = arith.index_cast %c0_i32_16 : i32 to index
    %c0_29 = arith.constant 0 : index
    %c0_30 = arith.constant 0 : index
    %54 = vector.load %arg10[%53, %c0_29, %c0_30] : memref<8x8x128xf32, #tpu.memory_space<vmem>>, vector<1x8x128xf32>
    %55 = vector.shape_cast %54 : vector<1x8x128xf32> to vector<8x128xf32>
    %56 = vector.shape_cast %46 : vector<8x128xf32> to vector<1x8x128xf32>
    tpu.vector_store %arg10[%53, %c0_29, %c0_30], %56 {strides = array<i32>} : memref<8x8x128xf32, #tpu.memory_space<vmem>>, vector<1x8x128xf32>,
    %c1_i32 = arith.constant 1 : i32
    %cst_31 = arith.constant 0.899999976 : f32
    %57 = vector.broadcast %cst_31 : f32 to vector<8x128xf32>
    %58 = arith.mulf %57, %18 : vector<8x128xf32>
    %59 = arith.addf %58, %3 : vector<8x128xf32>
    %cst_32 = arith.constant 1.000000e+00 : f32
    %60 = vector.broadcast %cst_32 : f32 to vector<8x128xf32>
    %61 = arith.cmpf ogt, %59, %60 : vector<8x128xf32>
    %cst_33 = arith.constant 1.000000e+00 : f32
    %62 = vector.broadcast %cst_33 : f32 to vector<8x128xf32>
    %63 = arith.subf %59, %62 : vector<8x128xf32>
    %64 = arith.select %61, %63, %59 : vector<8x128xi1>, vector<8x128xf32>
    %65 = arith.extui %61 : vector<8x128xi1> to vector<8x128xi32>
    %66 = arith.sitofp %65 : vector<8x128xi32> to vector<8x128xf32>
    %67 = arith.truncf %66 : vector<8x128xf32> to vector<8x128xbf16>
    %cst_34 = arith.constant dense<0.000000e+00> : vector<8x128xf32>
    %68 = tpu.matmul %67, %4, %cst_34 {dimension_numbers = #tpu.dot_dimension_numbers<[1], [0], [0], [1], [0, 0, 1, 1], [], []>} : vector<8x128xbf16>, vector<128x128xbf16>, vector<8x128xf32> -> vector<8x128xf32>
    %69 = vector.broadcast %6 : vector<1x128xf32> to vector<8x128xf32>
    %70 = arith.addf %68, %69 : vector<8x128xf32>
    %cst_35 = arith.constant 0.899999976 : f32
    %71 = vector.broadcast %cst_35 : f32 to vector<8x128xf32>
    %72 = arith.mulf %71, %32 : vector<8x128xf32>
    %73 = arith.addf %72, %70 : vector<8x128xf32>
    %cst_36 = arith.constant 1.000000e+00 : f32
    %74 = vector.broadcast %cst_36 : f32 to vector<8x128xf32>
    %75 = arith.cmpf ogt, %73, %74 : vector<8x128xf32>
    %cst_37 = arith.constant 1.000000e+00 : f32
    %76 = vector.broadcast %cst_37 : f32 to vector<8x128xf32>
    %77 = arith.subf %73, %76 : vector<8x128xf32>
    %78 = arith.select %75, %77, %73 : vector<8x128xi1>, vector<8x128xf32>
    %79 = arith.extui %75 : vector<8x128xi1> to vector<8x128xi32>
    %80 = arith.sitofp %79 : vector<8x128xi32> to vector<8x128xf32>
    %81 = arith.truncf %80 : vector<8x128xf32> to vector<8x128xbf16>
    %cst_38 = arith.constant dense<0.000000e+00> : vector<8x128xf32>
    %82 = tpu.matmul %81, %5, %cst_38 {dimension_numbers = #tpu.dot_dimension_numbers<[1], [0], [0], [1], [0, 0, 1, 1], [], []>} : vector<8x128xbf16>, vector<128x128xbf16>, vector<8x128xf32> -> vector<8x128xf32>
    %83 = vector.broadcast %7 : vector<1x128xf32> to vector<8x128xf32>
    %84 = arith.addf %82, %83 : vector<8x128xf32>
    %cst_39 = arith.constant 0.899999976 : f32
    %85 = vector.broadcast %cst_39 : f32 to vector<8x128xf32>
    %86 = arith.mulf %85, %46 : vector<8x128xf32>
    %87 = arith.addf %86, %84 : vector<8x128xf32>
    %cst_40 = arith.constant 1.000000e+00 : f32
    %88 = vector.broadcast %cst_40 : f32 to vector<8x128xf32>
    %89 = arith.cmpf ogt, %87, %88 : vector<8x128xf32>
    %cst_41 = arith.constant 1.000000e+00 : f32
    %90 = vector.broadcast %cst_41 : f32 to vector<8x128xf32>
    %91 = arith.subf %87, %90 : vector<8x128xf32>
    %92 = arith.select %89, %91, %87 : vector<8x128xi1>, vector<8x128xf32>
    %93 = arith.extui %89 : vector<8x128xi1> to vector<8x128xi32>
    %94 = arith.sitofp %93 : vector<8x128xi32> to vector<8x128xf32>
    %95 = arith.index_cast %c1_i32 : i32 to index
    %c0_42 = arith.constant 0 : index
    %c0_43 = arith.constant 0 : index
    %96 = vector.load %arg9[%95, %c0_42, %c0_43] : memref<8x8x128xf32, #tpu.memory_space<vmem>>, vector<1x8x128xf32>
    %97 = vector.shape_cast %96 : vector<1x8x128xf32> to vector<8x128xf32>
    %98 = vector.shape_cast %94 : vector<8x128xf32> to vector<1x8x128xf32>
    tpu.vector_store %arg9[%95, %c0_42, %c0_43], %98 {strides = array<i32>} : memref<8x8x128xf32, #tpu.memory_space<vmem>>, vector<1x8x128xf32>,
    %99 = arith.index_cast %c1_i32 : i32 to index
    %c0_44 = arith.constant 0 : index
    %c0_45 = arith.constant 0 : index
    %100 = vector.load %arg10[%99, %c0_44, %c0_45] : memref<8x8x128xf32, #tpu.memory_space<vmem>>, vector<1x8x128xf32>
    %101 = vector.shape_cast %100 : vector<1x8x128xf32> to vector<8x128xf32>
    %102 = vector.shape_cast %92 : vector<8x128xf32> to vector<1x8x128xf32>
    tpu.vector_store %arg10[%99, %c0_44, %c0_45], %102 {strides = array<i32>} : memref<8x8x128xf32, #tpu.memory_space<vmem>>, vector<1x8x128xf32>,
    %c2_i32 = arith.constant 2 : i32
    %cst_46 = arith.constant 0.899999976 : f32
    %103 = vector.broadcast %cst_46 : f32 to vector<8x128xf32>
    %104 = arith.mulf %103, %64 : vector<8x128xf32>
    %105 = arith.addf %104, %3 : vector<8x128xf32>
    %cst_47 = arith.constant 1.000000e+00 : f32
    %106 = vector.broadcast %cst_47 : f32 to vector<8x128xf32>
    %107 = arith.cmpf ogt, %105, %106 : vector<8x128xf32>
    %cst_48 = arith.constant 1.000000e+00 : f32
    %108 = vector.broadcast %cst_48 : f32 to vector<8x128xf32>
    %109 = arith.subf %105, %108 : vector<8x128xf32>
    %110 = arith.select %107, %109, %105 : vector<8x128xi1>, vector<8x128xf32>
    %111 = arith.extui %107 : vector<8x128xi1> to vector<8x128xi32>
    %112 = arith.sitofp %111 : vector<8x128xi32> to vector<8x128xf32>
    %113 = arith.truncf %112 : vector<8x128xf32> to vector<8x128xbf16>
    %cst_49 = arith.constant dense<0.000000e+00> : vector<8x128xf32>
    %114 = tpu.matmul %113, %4, %cst_49 {dimension_numbers = #tpu.dot_dimension_numbers<[1], [0], [0], [1], [0, 0, 1, 1], [], []>} : vector<8x128xbf16>, vector<128x128xbf16>, vector<8x128xf32> -> vector<8x128xf32>
    %115 = vector.broadcast %6 : vector<1x128xf32> to vector<8x128xf32>
    %116 = arith.addf %114, %115 : vector<8x128xf32>
    %cst_50 = arith.constant 0.899999976 : f32
    %117 = vector.broadcast %cst_50 : f32 to vector<8x128xf32>
    %118 = arith.mulf %117, %78 : vector<8x128xf32>
    %119 = arith.addf %118, %116 : vector<8x128xf32>
    %cst_51 = arith.constant 1.000000e+00 : f32
    %120 = vector.broadcast %cst_51 : f32 to vector<8x128xf32>
    %121 = arith.cmpf ogt, %119, %120 : vector<8x128xf32>
    %cst_52 = arith.constant 1.000000e+00 : f32
    %122 = vector.broadcast %cst_52 : f32 to vector<8x128xf32>
    %123 = arith.subf %119, %122 : vector<8x128xf32>
    %124 = arith.select %121, %123, %119 : vector<8x128xi1>, vector<8x128xf32>
    %125 = arith.extui %121 : vector<8x128xi1> to vector<8x128xi32>
    %126 = arith.sitofp %125 : vector<8x128xi32> to vector<8x128xf32>
    %127 = arith.truncf %126 : vector<8x128xf32> to vector<8x128xbf16>
    %cst_53 = arith.constant dense<0.000000e+00> : vector<8x128xf32>
    %128 = tpu.matmul %127, %5, %cst_53 {dimension_numbers = #tpu.dot_dimension_numbers<[1], [0], [0], [1], [0, 0, 1, 1], [], []>} : vector<8x128xbf16>, vector<128x128xbf16>, vector<8x128xf32> -> vector<8x128xf32>
    %129 = vector.broadcast %7 : vector<1x128xf32> to vector<8x128xf32>
    %130 = arith.addf %128, %129 : vector<8x128xf32>
    %cst_54 = arith.constant 0.899999976 : f32
    %131 = vector.broadcast %cst_54 : f32 to vector<8x128xf32>
    %132 = arith.mulf %131, %92 : vector<8x128xf32>
    %133 = arith.addf %132, %130 : vector<8x128xf32>
    %cst_55 = arith.constant 1.000000e+00 : f32
    %134 = vector.broadcast %cst_55 : f32 to vector<8x128xf32>
    %135 = arith.cmpf ogt, %133, %134 : vector<8x128xf32>
    %cst_56 = arith.constant 1.000000e+00 : f32
    %136 = vector.broadcast %cst_56 : f32 to vector<8x128xf32>
    %137 = arith.subf %133, %136 : vector<8x128xf32>
    %138 = arith.select %135, %137, %133 : vector<8x128xi1>, vector<8x128xf32>
    %139 = arith.extui %135 : vector<8x128xi1> to vector<8x128xi32>
    %140 = arith.sitofp %139 : vector<8x128xi32> to vector<8x128xf32>
    %141 = arith.index_cast %c2_i32 : i32 to index
    %c0_57 = arith.constant 0 : index
    %c0_58 = arith.constant 0 : index
    %142 = vector.load %arg9[%141, %c0_57, %c0_58] : memref<8x8x128xf32, #tpu.memory_space<vmem>>, vector<1x8x128xf32>
    %143 = vector.shape_cast %142 : vector<1x8x128xf32> to vector<8x128xf32>
    %144 = vector.shape_cast %140 : vector<8x128xf32> to vector<1x8x128xf32>
    tpu.vector_store %arg9[%141, %c0_57, %c0_58], %144 {strides = array<i32>} : memref<8x8x128xf32, #tpu.memory_space<vmem>>, vector<1x8x128xf32>,
    %145 = arith.index_cast %c2_i32 : i32 to index
    %c0_59 = arith.constant 0 : index
    %c0_60 = arith.constant 0 : index
    %146 = vector.load %arg10[%145, %c0_59, %c0_60] : memref<8x8x128xf32, #tpu.memory_space<vmem>>, vector<1x8x128xf32>
    %147 = vector.shape_cast %146 : vector<1x8x128xf32> to vector<8x128xf32>
    %148 = vector.shape_cast %138 : vector<8x128xf32> to vector<1x8x128xf32>
    tpu.vector_store %arg10[%145, %c0_59, %c0_60], %148 {strides = array<i32>} : memref<8x8x128xf32, #tpu.memory_space<vmem>>, vector<1x8x128xf32>,
    %c3_i32 = arith.constant 3 : i32
    %cst_61 = arith.constant 0.899999976 : f32
    %149 = vector.broadcast %cst_61 : f32 to vector<8x128xf32>
    %150 = arith.mulf %149, %110 : vector<8x128xf32>
    %151 = arith.addf %150, %3 : vector<8x128xf32>
    %cst_62 = arith.constant 1.000000e+00 : f32
    %152 = vector.broadcast %cst_62 : f32 to vector<8x128xf32>
    %153 = arith.cmpf ogt, %151, %152 : vector<8x128xf32>
    %cst_63 = arith.constant 1.000000e+00 : f32
    %154 = vector.broadcast %cst_63 : f32 to vector<8x128xf32>
    %155 = arith.subf %151, %154 : vector<8x128xf32>
    %156 = arith.select %153, %155, %151 : vector<8x128xi1>, vector<8x128xf32>
    %157 = arith.extui %153 : vector<8x128xi1> to vector<8x128xi32>
    %158 = arith.sitofp %157 : vector<8x128xi32> to vector<8x128xf32>
    %159 = arith.truncf %158 : vector<8x128xf32> to vector<8x128xbf16>
    %cst_64 = arith.constant dense<0.000000e+00> : vector<8x128xf32>
    %160 = tpu.matmul %159, %4, %cst_64 {dimension_numbers = #tpu.dot_dimension_numbers<[1], [0], [0], [1], [0, 0, 1, 1], [], []>} : vector<8x128xbf16>, vector<128x128xbf16>, vector<8x128xf32> -> vector<8x128xf32>
    %161 = vector.broadcast %6 : vector<1x128xf32> to vector<8x128xf32>
    %162 = arith.addf %160, %161 : vector<8x128xf32>
    %cst_65 = arith.constant 0.899999976 : f32
    %163 = vector.broadcast %cst_65 : f32 to vector<8x128xf32>
    %164 = arith.mulf %163, %124 : vector<8x128xf32>
    %165 = arith.addf %164, %162 : vector<8x128xf32>
    %cst_66 = arith.constant 1.000000e+00 : f32
    %166 = vector.broadcast %cst_66 : f32 to vector<8x128xf32>
    %167 = arith.cmpf ogt, %165, %166 : vector<8x128xf32>
    %cst_67 = arith.constant 1.000000e+00 : f32
    %168 = vector.broadcast %cst_67 : f32 to vector<8x128xf32>
    %169 = arith.subf %165, %168 : vector<8x128xf32>
    %170 = arith.select %167, %169, %165 : vector<8x128xi1>, vector<8x128xf32>
    %171 = arith.extui %167 : vector<8x128xi1> to vector<8x128xi32>
    %172 = arith.sitofp %171 : vector<8x128xi32> to vector<8x128xf32>
    %173 = arith.truncf %172 : vector<8x128xf32> to vector<8x128xbf16>
    %cst_68 = arith.constant dense<0.000000e+00> : vector<8x128xf32>
    %174 = tpu.matmul %173, %5, %cst_68 {dimension_numbers = #tpu.dot_dimension_numbers<[1], [0], [0], [1], [0, 0, 1, 1], [], []>} : vector<8x128xbf16>, vector<128x128xbf16>, vector<8x128xf32> -> vector<8x128xf32>
    %175 = vector.broadcast %7 : vector<1x128xf32> to vector<8x128xf32>
    %176 = arith.addf %174, %175 : vector<8x128xf32>
    %cst_69 = arith.constant 0.899999976 : f32
    %177 = vector.broadcast %cst_69 : f32 to vector<8x128xf32>
    %178 = arith.mulf %177, %138 : vector<8x128xf32>
    %179 = arith.addf %178, %176 : vector<8x128xf32>
    %cst_70 = arith.constant 1.000000e+00 : f32
    %180 = vector.broadcast %cst_70 : f32 to vector<8x128xf32>
    %181 = arith.cmpf ogt, %179, %180 : vector<8x128xf32>
    %cst_71 = arith.constant 1.000000e+00 : f32
    %182 = vector.broadcast %cst_71 : f32 to vector<8x128xf32>
    %183 = arith.subf %179, %182 : vector<8x128xf32>
    %184 = arith.select %181, %183, %179 : vector<8x128xi1>, vector<8x128xf32>
    %185 = arith.extui %181 : vector<8x128xi1> to vector<8x128xi32>
    %186 = arith.sitofp %185 : vector<8x128xi32> to vector<8x128xf32>
    %187 = arith.index_cast %c3_i32 : i32 to index
    %c0_72 = arith.constant 0 : index
    %c0_73 = arith.constant 0 : index
    %188 = vector.load %arg9[%187, %c0_72, %c0_73] : memref<8x8x128xf32, #tpu.memory_space<vmem>>, vector<1x8x128xf32>
    %189 = vector.shape_cast %188 : vector<1x8x128xf32> to vector<8x128xf32>
    %190 = vector.shape_cast %186 : vector<8x128xf32> to vector<1x8x128xf32>
    tpu.vector_store %arg9[%187, %c0_72, %c0_73], %190 {strides = array<i32>} : memref<8x8x128xf32, #tpu.memory_space<vmem>>, vector<1x8x128xf32>,
    %191 = arith.index_cast %c3_i32 : i32 to index
    %c0_74 = arith.constant 0 : index
    %c0_75 = arith.constant 0 : index
    %192 = vector.load %arg10[%191, %c0_74, %c0_75] : memref<8x8x128xf32, #tpu.memory_space<vmem>>, vector<1x8x128xf32>
    %193 = vector.shape_cast %192 : vector<1x8x128xf32> to vector<8x128xf32>
    %194 = vector.shape_cast %184 : vector<8x128xf32> to vector<1x8x128xf32>
    tpu.vector_store %arg10[%191, %c0_74, %c0_75], %194 {strides = array<i32>} : memref<8x8x128xf32, #tpu.memory_space<vmem>>, vector<1x8x128xf32>,
    %c4_i32 = arith.constant 4 : i32
    %cst_76 = arith.constant 0.899999976 : f32
    %195 = vector.broadcast %cst_76 : f32 to vector<8x128xf32>
    %196 = arith.mulf %195, %156 : vector<8x128xf32>
    %197 = arith.addf %196, %3 : vector<8x128xf32>
    %cst_77 = arith.constant 1.000000e+00 : f32
    %198 = vector.broadcast %cst_77 : f32 to vector<8x128xf32>
    %199 = arith.cmpf ogt, %197, %198 : vector<8x128xf32>
    %cst_78 = arith.constant 1.000000e+00 : f32
    %200 = vector.broadcast %cst_78 : f32 to vector<8x128xf32>
    %201 = arith.subf %197, %200 : vector<8x128xf32>
    %202 = arith.select %199, %201, %197 : vector<8x128xi1>, vector<8x128xf32>
    %203 = arith.extui %199 : vector<8x128xi1> to vector<8x128xi32>
    %204 = arith.sitofp %203 : vector<8x128xi32> to vector<8x128xf32>
    %205 = arith.truncf %204 : vector<8x128xf32> to vector<8x128xbf16>
    %cst_79 = arith.constant dense<0.000000e+00> : vector<8x128xf32>
    %206 = tpu.matmul %205, %4, %cst_79 {dimension_numbers = #tpu.dot_dimension_numbers<[1], [0], [0], [1], [0, 0, 1, 1], [], []>} : vector<8x128xbf16>, vector<128x128xbf16>, vector<8x128xf32> -> vector<8x128xf32>
    %207 = vector.broadcast %6 : vector<1x128xf32> to vector<8x128xf32>
    %208 = arith.addf %206, %207 : vector<8x128xf32>
    %cst_80 = arith.constant 0.899999976 : f32
    %209 = vector.broadcast %cst_80 : f32 to vector<8x128xf32>
    %210 = arith.mulf %209, %170 : vector<8x128xf32>
    %211 = arith.addf %210, %208 : vector<8x128xf32>
    %cst_81 = arith.constant 1.000000e+00 : f32
    %212 = vector.broadcast %cst_81 : f32 to vector<8x128xf32>
    %213 = arith.cmpf ogt, %211, %212 : vector<8x128xf32>
    %cst_82 = arith.constant 1.000000e+00 : f32
    %214 = vector.broadcast %cst_82 : f32 to vector<8x128xf32>
    %215 = arith.subf %211, %214 : vector<8x128xf32>
    %216 = arith.select %213, %215, %211 : vector<8x128xi1>, vector<8x128xf32>
    %217 = arith.extui %213 : vector<8x128xi1> to vector<8x128xi32>
    %218 = arith.sitofp %217 : vector<8x128xi32> to vector<8x128xf32>
    %219 = arith.truncf %218 : vector<8x128xf32> to vector<8x128xbf16>
    %cst_83 = arith.constant dense<0.000000e+00> : vector<8x128xf32>
    %220 = tpu.matmul %219, %5, %cst_83 {dimension_numbers = #tpu.dot_dimension_numbers<[1], [0], [0], [1], [0, 0, 1, 1], [], []>} : vector<8x128xbf16>, vector<128x128xbf16>, vector<8x128xf32> -> vector<8x128xf32>
    %221 = vector.broadcast %7 : vector<1x128xf32> to vector<8x128xf32>
    %222 = arith.addf %220, %221 : vector<8x128xf32>
    %cst_84 = arith.constant 0.899999976 : f32
    %223 = vector.broadcast %cst_84 : f32 to vector<8x128xf32>
    %224 = arith.mulf %223, %184 : vector<8x128xf32>
    %225 = arith.addf %224, %222 : vector<8x128xf32>
    %cst_85 = arith.constant 1.000000e+00 : f32
    %226 = vector.broadcast %cst_85 : f32 to vector<8x128xf32>
    %227 = arith.cmpf ogt, %225, %226 : vector<8x128xf32>
    %cst_86 = arith.constant 1.000000e+00 : f32
    %228 = vector.broadcast %cst_86 : f32 to vector<8x128xf32>
    %229 = arith.subf %225, %228 : vector<8x128xf32>
    %230 = arith.select %227, %229, %225 : vector<8x128xi1>, vector<8x128xf32>
    %231 = arith.extui %227 : vector<8x128xi1> to vector<8x128xi32>
    %232 = arith.sitofp %231 : vector<8x128xi32> to vector<8x128xf32>
    %233 = arith.index_cast %c4_i32 : i32 to index
    %c0_87 = arith.constant 0 : index
    %c0_88 = arith.constant 0 : index
    %234 = vector.load %arg9[%233, %c0_87, %c0_88] : memref<8x8x128xf32, #tpu.memory_space<vmem>>, vector<1x8x128xf32>
    %235 = vector.shape_cast %234 : vector<1x8x128xf32> to vector<8x128xf32>
    %236 = vector.shape_cast %232 : vector<8x128xf32> to vector<1x8x128xf32>
    tpu.vector_store %arg9[%233, %c0_87, %c0_88], %236 {strides = array<i32>} : memref<8x8x128xf32, #tpu.memory_space<vmem>>, vector<1x8x128xf32>,
    %237 = arith.index_cast %c4_i32 : i32 to index
    %c0_89 = arith.constant 0 : index
    %c0_90 = arith.constant 0 : index
    %238 = vector.load %arg10[%237, %c0_89, %c0_90] : memref<8x8x128xf32, #tpu.memory_space<vmem>>, vector<1x8x128xf32>
    %239 = vector.shape_cast %238 : vector<1x8x128xf32> to vector<8x128xf32>
    %240 = vector.shape_cast %230 : vector<8x128xf32> to vector<1x8x128xf32>
    tpu.vector_store %arg10[%237, %c0_89, %c0_90], %240 {strides = array<i32>} : memref<8x8x128xf32, #tpu.memory_space<vmem>>, vector<1x8x128xf32>,
    %c5_i32 = arith.constant 5 : i32
    %cst_91 = arith.constant 0.899999976 : f32
    %241 = vector.broadcast %cst_91 : f32 to vector<8x128xf32>
    %242 = arith.mulf %241, %202 : vector<8x128xf32>
    %243 = arith.addf %242, %3 : vector<8x128xf32>
    %cst_92 = arith.constant 1.000000e+00 : f32
    %244 = vector.broadcast %cst_92 : f32 to vector<8x128xf32>
    %245 = arith.cmpf ogt, %243, %244 : vector<8x128xf32>
    %cst_93 = arith.constant 1.000000e+00 : f32
    %246 = vector.broadcast %cst_93 : f32 to vector<8x128xf32>
    %247 = arith.subf %243, %246 : vector<8x128xf32>
    %248 = arith.select %245, %247, %243 : vector<8x128xi1>, vector<8x128xf32>
    %249 = arith.extui %245 : vector<8x128xi1> to vector<8x128xi32>
    %250 = arith.sitofp %249 : vector<8x128xi32> to vector<8x128xf32>
    %251 = arith.truncf %250 : vector<8x128xf32> to vector<8x128xbf16>
    %cst_94 = arith.constant dense<0.000000e+00> : vector<8x128xf32>
    %252 = tpu.matmul %251, %4, %cst_94 {dimension_numbers = #tpu.dot_dimension_numbers<[1], [0], [0], [1], [0, 0, 1, 1], [], []>} : vector<8x128xbf16>, vector<128x128xbf16>, vector<8x128xf32> -> vector<8x128xf32>
    %253 = vector.broadcast %6 : vector<1x128xf32> to vector<8x128xf32>
    %254 = arith.addf %252, %253 : vector<8x128xf32>
    %cst_95 = arith.constant 0.899999976 : f32
    %255 = vector.broadcast %cst_95 : f32 to vector<8x128xf32>
    %256 = arith.mulf %255, %216 : vector<8x128xf32>
    %257 = arith.addf %256, %254 : vector<8x128xf32>
    %cst_96 = arith.constant 1.000000e+00 : f32
    %258 = vector.broadcast %cst_96 : f32 to vector<8x128xf32>
    %259 = arith.cmpf ogt, %257, %258 : vector<8x128xf32>
    %cst_97 = arith.constant 1.000000e+00 : f32
    %260 = vector.broadcast %cst_97 : f32 to vector<8x128xf32>
    %261 = arith.subf %257, %260 : vector<8x128xf32>
    %262 = arith.select %259, %261, %257 : vector<8x128xi1>, vector<8x128xf32>
    %263 = arith.extui %259 : vector<8x128xi1> to vector<8x128xi32>
    %264 = arith.sitofp %263 : vector<8x128xi32> to vector<8x128xf32>
    %265 = arith.truncf %264 : vector<8x128xf32> to vector<8x128xbf16>
    %cst_98 = arith.constant dense<0.000000e+00> : vector<8x128xf32>
    %266 = tpu.matmul %265, %5, %cst_98 {dimension_numbers = #tpu.dot_dimension_numbers<[1], [0], [0], [1], [0, 0, 1, 1], [], []>} : vector<8x128xbf16>, vector<128x128xbf16>, vector<8x128xf32> -> vector<8x128xf32>
    %267 = vector.broadcast %7 : vector<1x128xf32> to vector<8x128xf32>
    %268 = arith.addf %266, %267 : vector<8x128xf32>
    %cst_99 = arith.constant 0.899999976 : f32
    %269 = vector.broadcast %cst_99 : f32 to vector<8x128xf32>
    %270 = arith.mulf %269, %230 : vector<8x128xf32>
    %271 = arith.addf %270, %268 : vector<8x128xf32>
    %cst_100 = arith.constant 1.000000e+00 : f32
    %272 = vector.broadcast %cst_100 : f32 to vector<8x128xf32>
    %273 = arith.cmpf ogt, %271, %272 : vector<8x128xf32>
    %cst_101 = arith.constant 1.000000e+00 : f32
    %274 = vector.broadcast %cst_101 : f32 to vector<8x128xf32>
    %275 = arith.subf %271, %274 : vector<8x128xf32>
    %276 = arith.select %273, %275, %271 : vector<8x128xi1>, vector<8x128xf32>
    %277 = arith.extui %273 : vector<8x128xi1> to vector<8x128xi32>
    %278 = arith.sitofp %277 : vector<8x128xi32> to vector<8x128xf32>
    %279 = arith.index_cast %c5_i32 : i32 to index
    %c0_102 = arith.constant 0 : index
    %c0_103 = arith.constant 0 : index
    %280 = vector.load %arg9[%279, %c0_102, %c0_103] : memref<8x8x128xf32, #tpu.memory_space<vmem>>, vector<1x8x128xf32>
    %281 = vector.shape_cast %280 : vector<1x8x128xf32> to vector<8x128xf32>
    %282 = vector.shape_cast %278 : vector<8x128xf32> to vector<1x8x128xf32>
    tpu.vector_store %arg9[%279, %c0_102, %c0_103], %282 {strides = array<i32>} : memref<8x8x128xf32, #tpu.memory_space<vmem>>, vector<1x8x128xf32>,
    %283 = arith.index_cast %c5_i32 : i32 to index
    %c0_104 = arith.constant 0 : index
    %c0_105 = arith.constant 0 : index
    %284 = vector.load %arg10[%283, %c0_104, %c0_105] : memref<8x8x128xf32, #tpu.memory_space<vmem>>, vector<1x8x128xf32>
    %285 = vector.shape_cast %284 : vector<1x8x128xf32> to vector<8x128xf32>
    %286 = vector.shape_cast %276 : vector<8x128xf32> to vector<1x8x128xf32>
    tpu.vector_store %arg10[%283, %c0_104, %c0_105], %286 {strides = array<i32>} : memref<8x8x128xf32, #tpu.memory_space<vmem>>, vector<1x8x128xf32>,
    %c6_i32 = arith.constant 6 : i32
    %cst_106 = arith.constant 0.899999976 : f32
    %287 = vector.broadcast %cst_106 : f32 to vector<8x128xf32>
    %288 = arith.mulf %287, %248 : vector<8x128xf32>
    %289 = arith.addf %288, %3 : vector<8x128xf32>
    %cst_107 = arith.constant 1.000000e+00 : f32
    %290 = vector.broadcast %cst_107 : f32 to vector<8x128xf32>
    %291 = arith.cmpf ogt, %289, %290 : vector<8x128xf32>
    %cst_108 = arith.constant 1.000000e+00 : f32
    %292 = vector.broadcast %cst_108 : f32 to vector<8x128xf32>
    %293 = arith.subf %289, %292 : vector<8x128xf32>
    %294 = arith.select %291, %293, %289 : vector<8x128xi1>, vector<8x128xf32>
    %295 = arith.extui %291 : vector<8x128xi1> to vector<8x128xi32>
    %296 = arith.sitofp %295 : vector<8x128xi32> to vector<8x128xf32>
    %297 = arith.truncf %296 : vector<8x128xf32> to vector<8x128xbf16>
    %cst_109 = arith.constant dense<0.000000e+00> : vector<8x128xf32>
    %298 = tpu.matmul %297, %4, %cst_109 {dimension_numbers = #tpu.dot_dimension_numbers<[1], [0], [0], [1], [0, 0, 1, 1], [], []>} : vector<8x128xbf16>, vector<128x128xbf16>, vector<8x128xf32> -> vector<8x128xf32>
    %299 = vector.broadcast %6 : vector<1x128xf32> to vector<8x128xf32>
    %300 = arith.addf %298, %299 : vector<8x128xf32>
    %cst_110 = arith.constant 0.899999976 : f32
    %301 = vector.broadcast %cst_110 : f32 to vector<8x128xf32>
    %302 = arith.mulf %301, %262 : vector<8x128xf32>
    %303 = arith.addf %302, %300 : vector<8x128xf32>
    %cst_111 = arith.constant 1.000000e+00 : f32
    %304 = vector.broadcast %cst_111 : f32 to vector<8x128xf32>
    %305 = arith.cmpf ogt, %303, %304 : vector<8x128xf32>
    %cst_112 = arith.constant 1.000000e+00 : f32
    %306 = vector.broadcast %cst_112 : f32 to vector<8x128xf32>
    %307 = arith.subf %303, %306 : vector<8x128xf32>
    %308 = arith.select %305, %307, %303 : vector<8x128xi1>, vector<8x128xf32>
    %309 = arith.extui %305 : vector<8x128xi1> to vector<8x128xi32>
    %310 = arith.sitofp %309 : vector<8x128xi32> to vector<8x128xf32>
    %311 = arith.truncf %310 : vector<8x128xf32> to vector<8x128xbf16>
    %cst_113 = arith.constant dense<0.000000e+00> : vector<8x128xf32>
    %312 = tpu.matmul %311, %5, %cst_113 {dimension_numbers = #tpu.dot_dimension_numbers<[1], [0], [0], [1], [0, 0, 1, 1], [], []>} : vector<8x128xbf16>, vector<128x128xbf16>, vector<8x128xf32> -> vector<8x128xf32>
    %313 = vector.broadcast %7 : vector<1x128xf32> to vector<8x128xf32>
    %314 = arith.addf %312, %313 : vector<8x128xf32>
    %cst_114 = arith.constant 0.899999976 : f32
    %315 = vector.broadcast %cst_114 : f32 to vector<8x128xf32>
    %316 = arith.mulf %315, %276 : vector<8x128xf32>
    %317 = arith.addf %316, %314 : vector<8x128xf32>
    %cst_115 = arith.constant 1.000000e+00 : f32
    %318 = vector.broadcast %cst_115 : f32 to vector<8x128xf32>
    %319 = arith.cmpf ogt, %317, %318 : vector<8x128xf32>
    %cst_116 = arith.constant 1.000000e+00 : f32
    %320 = vector.broadcast %cst_116 : f32 to vector<8x128xf32>
    %321 = arith.subf %317, %320 : vector<8x128xf32>
    %322 = arith.select %319, %321, %317 : vector<8x128xi1>, vector<8x128xf32>
    %323 = arith.extui %319 : vector<8x128xi1> to vector<8x128xi32>
    %324 = arith.sitofp %323 : vector<8x128xi32> to vector<8x128xf32>
    %325 = arith.index_cast %c6_i32 : i32 to index
    %c0_117 = arith.constant 0 : index
    %c0_118 = arith.constant 0 : index
    %326 = vector.load %arg9[%325, %c0_117, %c0_118] : memref<8x8x128xf32, #tpu.memory_space<vmem>>, vector<1x8x128xf32>
    %327 = vector.shape_cast %326 : vector<1x8x128xf32> to vector<8x128xf32>
    %328 = vector.shape_cast %324 : vector<8x128xf32> to vector<1x8x128xf32>
    tpu.vector_store %arg9[%325, %c0_117, %c0_118], %328 {strides = array<i32>} : memref<8x8x128xf32, #tpu.memory_space<vmem>>, vector<1x8x128xf32>,
    %329 = arith.index_cast %c6_i32 : i32 to index
    %c0_119 = arith.constant 0 : index
    %c0_120 = arith.constant 0 : index
    %330 = vector.load %arg10[%329, %c0_119, %c0_120] : memref<8x8x128xf32, #tpu.memory_space<vmem>>, vector<1x8x128xf32>
    %331 = vector.shape_cast %330 : vector<1x8x128xf32> to vector<8x128xf32>
    %332 = vector.shape_cast %322 : vector<8x128xf32> to vector<1x8x128xf32>
    tpu.vector_store %arg10[%329, %c0_119, %c0_120], %332 {strides = array<i32>} : memref<8x8x128xf32, #tpu.memory_space<vmem>>, vector<1x8x128xf32>,
    %c7_i32 = arith.constant 7 : i32
    %cst_121 = arith.constant 0.899999976 : f32
    %333 = vector.broadcast %cst_121 : f32 to vector<8x128xf32>
    %334 = arith.mulf %333, %294 : vector<8x128xf32>
    %335 = arith.addf %334, %3 : vector<8x128xf32>
    %cst_122 = arith.constant 1.000000e+00 : f32
    %336 = vector.broadcast %cst_122 : f32 to vector<8x128xf32>
    %337 = arith.cmpf ogt, %335, %336 : vector<8x128xf32>
    %cst_123 = arith.constant 1.000000e+00 : f32
    %338 = vector.broadcast %cst_123 : f32 to vector<8x128xf32>
    %339 = arith.subf %335, %338 : vector<8x128xf32>
    %340 = arith.select %337, %339, %335 : vector<8x128xi1>, vector<8x128xf32>
    %341 = arith.extui %337 : vector<8x128xi1> to vector<8x128xi32>
    %342 = arith.sitofp %341 : vector<8x128xi32> to vector<8x128xf32>
    %343 = arith.truncf %342 : vector<8x128xf32> to vector<8x128xbf16>
    %cst_124 = arith.constant dense<0.000000e+00> : vector<8x128xf32>
    %344 = tpu.matmul %343, %4, %cst_124 {dimension_numbers = #tpu.dot_dimension_numbers<[1], [0], [0], [1], [0, 0, 1, 1], [], []>} : vector<8x128xbf16>, vector<128x128xbf16>, vector<8x128xf32> -> vector<8x128xf32>
    %345 = vector.broadcast %6 : vector<1x128xf32> to vector<8x128xf32>
    %346 = arith.addf %344, %345 : vector<8x128xf32>
    %cst_125 = arith.constant 0.899999976 : f32
    %347 = vector.broadcast %cst_125 : f32 to vector<8x128xf32>
    %348 = arith.mulf %347, %308 : vector<8x128xf32>
    %349 = arith.addf %348, %346 : vector<8x128xf32>
    %cst_126 = arith.constant 1.000000e+00 : f32
    %350 = vector.broadcast %cst_126 : f32 to vector<8x128xf32>
    %351 = arith.cmpf ogt, %349, %350 : vector<8x128xf32>
    %cst_127 = arith.constant 1.000000e+00 : f32
    %352 = vector.broadcast %cst_127 : f32 to vector<8x128xf32>
    %353 = arith.subf %349, %352 : vector<8x128xf32>
    %354 = arith.select %351, %353, %349 : vector<8x128xi1>, vector<8x128xf32>
    %355 = arith.extui %351 : vector<8x128xi1> to vector<8x128xi32>
    %356 = arith.sitofp %355 : vector<8x128xi32> to vector<8x128xf32>
    %357 = arith.truncf %356 : vector<8x128xf32> to vector<8x128xbf16>
    %cst_128 = arith.constant dense<0.000000e+00> : vector<8x128xf32>
    %358 = tpu.matmul %357, %5, %cst_128 {dimension_numbers = #tpu.dot_dimension_numbers<[1], [0], [0], [1], [0, 0, 1, 1], [], []>} : vector<8x128xbf16>, vector<128x128xbf16>, vector<8x128xf32> -> vector<8x128xf32>
    %359 = vector.broadcast %7 : vector<1x128xf32> to vector<8x128xf32>
    %360 = arith.addf %358, %359 : vector<8x128xf32>
    %cst_129 = arith.constant 0.899999976 : f32
    %361 = vector.broadcast %cst_129 : f32 to vector<8x128xf32>
    %362 = arith.mulf %361, %322 : vector<8x128xf32>
    %363 = arith.addf %362, %360 : vector<8x128xf32>
    %cst_130 = arith.constant 1.000000e+00 : f32
    %364 = vector.broadcast %cst_130 : f32 to vector<8x128xf32>
    %365 = arith.cmpf ogt, %363, %364 : vector<8x128xf32>
    %cst_131 = arith.constant 1.000000e+00 : f32
    %366 = vector.broadcast %cst_131 : f32 to vector<8x128xf32>
    %367 = arith.subf %363, %366 : vector<8x128xf32>
    %368 = arith.select %365, %367, %363 : vector<8x128xi1>, vector<8x128xf32>
    %369 = arith.extui %365 : vector<8x128xi1> to vector<8x128xi32>
    %370 = arith.sitofp %369 : vector<8x128xi32> to vector<8x128xf32>
    %371 = arith.index_cast %c7_i32 : i32 to index
    %c0_132 = arith.constant 0 : index
    %c0_133 = arith.constant 0 : index
    %372 = vector.load %arg9[%371, %c0_132, %c0_133] : memref<8x8x128xf32, #tpu.memory_space<vmem>>, vector<1x8x128xf32>
    %373 = vector.shape_cast %372 : vector<1x8x128xf32> to vector<8x128xf32>
    %374 = vector.shape_cast %370 : vector<8x128xf32> to vector<1x8x128xf32>
    tpu.vector_store %arg9[%371, %c0_132, %c0_133], %374 {strides = array<i32>} : memref<8x8x128xf32, #tpu.memory_space<vmem>>, vector<1x8x128xf32>,
    %375 = arith.index_cast %c7_i32 : i32 to index
    %c0_134 = arith.constant 0 : index
    %c0_135 = arith.constant 0 : index
    %376 = vector.load %arg10[%375, %c0_134, %c0_135] : memref<8x8x128xf32, #tpu.memory_space<vmem>>, vector<1x8x128xf32>
    %377 = vector.shape_cast %376 : vector<1x8x128xf32> to vector<8x128xf32>
    %378 = vector.shape_cast %368 : vector<8x128xf32> to vector<1x8x128xf32>
    tpu.vector_store %arg10[%375, %c0_134, %c0_135], %378 {strides = array<i32>} : memref<8x8x128xf32, #tpu.memory_space<vmem>>, vector<1x8x128xf32>,
    %c8_i32 = arith.constant 8 : i32
    %c0_136 = arith.constant 0 : index
    %c0_137 = arith.constant 0 : index
    %379 = vector.load %arg12[%c0_136, %c0_137] : memref<8x128xf32, #tpu.memory_space<vmem>>, vector<8x128xf32>
    tpu.vector_store %arg12[%c0_136, %c0_137], %340 {strides = array<i32>} : memref<8x128xf32, #tpu.memory_space<vmem>>, vector<8x128xf32>,
    %c0_138 = arith.constant 0 : index
    %c0_139 = arith.constant 0 : index
    %380 = vector.load %arg13[%c0_138, %c0_139] : memref<8x128xf32, #tpu.memory_space<vmem>>, vector<8x128xf32>
    tpu.vector_store %arg13[%c0_138, %c0_139], %354 {strides = array<i32>} : memref<8x128xf32, #tpu.memory_space<vmem>>, vector<8x128xf32>,
    %c0_140 = arith.constant 0 : index
    %c0_141 = arith.constant 0 : index
    %381 = vector.load %arg14[%c0_140, %c0_141] : memref<8x128xf32, #tpu.memory_space<vmem>>, vector<8x128xf32>
    tpu.vector_store %arg14[%c0_140, %c0_141], %368 {strides = array<i32>} : memref<8x128xf32, #tpu.memory_space<vmem>>, vector<8x128xf32>,
    return
  }
  func.func @transform_0(%arg0: i32, %arg1: i32) -> (i32, i32) {
    %c0_i32 = arith.constant 0 : i32
    %c0_i32_0 = arith.constant 0 : i32
    return %arg0, %c0_i32 : i32, i32
  }
  func.func @transform_1(%arg0: i32, %arg1: i32) -> (i32, i32) {
    %c0_i32 = arith.constant 0 : i32
    %c0_i32_0 = arith.constant 0 : i32
    %c0_i32_1 = arith.constant 0 : i32
    return %c0_i32, %c0_i32_0 : i32, i32
  }
  func.func @transform_2(%arg0: i32, %arg1: i32) -> (i32, i32) {
    %c0_i32 = arith.constant 0 : i32
    %c0_i32_0 = arith.constant 0 : i32
    %c0_i32_1 = arith.constant 0 : i32
    return %c0_i32, %c0_i32_0 : i32, i32
  }
  func.func @transform_3(%arg0: i32, %arg1: i32) -> (i32, i32) {
    %c0_i32 = arith.constant 0 : i32
    %c0_i32_0 = arith.constant 0 : i32
    %c0_i32_1 = arith.constant 0 : i32
    return %c0_i32, %c0_i32_0 : i32, i32
  }
  func.func @transform_4(%arg0: i32, %arg1: i32) -> (i32, i32) {
    %c0_i32 = arith.constant 0 : i32
    %c0_i32_0 = arith.constant 0 : i32
    %c0_i32_1 = arith.constant 0 : i32
    return %c0_i32, %c0_i32_0 : i32, i32
  }
  func.func @transform_5(%arg0: i32, %arg1: i32) -> (i32, i32) {
    %c0_i32 = arith.constant 0 : i32
    %c0_i32_0 = arith.constant 0 : i32
    %c0_i32_1 = arith.constant 0 : i32
    return %c0_i32, %c0_i32_0 : i32, i32
  }
  func.func @transform_6(%arg0: i32, %arg1: i32) -> (i32, i32) {
    %c0_i32 = arith.constant 0 : i32
    %c0_i32_0 = arith.constant 0 : i32
    %c0_i32_1 = arith.constant 0 : i32
    return %c0_i32, %c0_i32_0 : i32, i32
  }
  func.func @transform_7(%arg0: i32, %arg1: i32) -> (i32, i32, i32) {
    %c0_i32 = arith.constant 0 : i32
    %c0_i32_0 = arith.constant 0 : i32
    return %arg1, %arg0, %c0_i32 : i32, i32, i32
  }
  func.func @transform_8(%arg0: i32, %arg1: i32) -> (i32, i32, i32) {
    %c0_i32 = arith.constant 0 : i32
    %c0_i32_0 = arith.constant 0 : i32
    return %arg1, %arg0, %c0_i32 : i32, i32, i32
  }
}

</mosaic_0001>

<bundles_post_ra>
// kernel: tpu_custom_call.1
= control target key start
LH: loop header
LB: loop body
LE: loop exit
PB: predicated region body
PF: predicated region fallthrough
CT: control target
= control target key end

     0   :  { %14 = vsyncpa [#allocation7], 0  ;;  %s2632_s0 = inlined_call_operand.hbm [shape: bf16[8,128], index: 0, kind: input, shape index: {}]   ;;  %s2633_s1 = inlined_call_operand.hbm [shape: bf16[128,128], index: 1, kind: input, shape index: {}]   ;;  %s2634_s2 = inlined_call_operand.vmem [shape: f32[1,128], index: 2, kind: input, shape index: {}]   ;;  %s2635_s3 = inlined_call_operand.hbm [shape: bf16[128,128], index: 3, kind: input, shape index: {}]   ;;  %s2636_s4 = inlined_call_operand.vmem [shape: f32[1,128], index: 4, kind: input, shape index: {}]   ;;  %s2637_s5 = inlined_call_operand.hbm [shape: bf16[128,128], index: 5, kind: input, shape index: {}]   ;;  %s2638_s6 = inlined_call_operand.vmem [shape: f32[1,128], index: 6, kind: input, shape index: {}]   ;;  %s2639_s7 = inlined_call_operand.hbm [shape: f32[8,8,128], index: 7, kind: output, shape index: {0}]   ;;  %s2640_s8 = inlined_call_operand.hbm [shape: f32[8,8,128], index: 8, kind: output, shape index: {1}]  }
   0x1   :  { %15 = vsyncpa [#allocation10], 0 }
   0x2   :  { %16 = vsyncpa [#allocation13], 0 }
   0x3   :  { %17 = vsyncpa [#allocation8], 0 }
   0x4   :  { %18 = vsyncpa [#allocation16], 0  ;;  %s2021_s27 = smov [#allocation9]   ;;  %s1879_s9 = scalar_lea.hbm %s2633_s1, 1024 }
   0x5   :  { %s34_s28 = sshll.u32 %s2021_s27, 4  ;;  %p1880_p0 = scmp.ne.s32.totalorder %s2633_s1, %s1879_s9  ;;  %s35_s28 = int_to_ptr.vmem [resolvable:$true] %s34_s28 }
   0x6   :  { %p1883_p1 = scmp.lt.u32.totalorder %s1879_s9, %s2633_s1 }
   0x8   :  { %p1885_p2 = pnand %p1883_p1, %p1880_p0 }
   0xa   :  { %1888 = shalt.err (!%p1885_p2)
}
   0xb   :  { %s1889_s14 = scalar_lea.vmem %s35_s28, 1024  ;;  %p1894_p4 = scmp.lt.s32.totalorder %s35_s28, %s35_s28 }
   0xc   :  { %p1890_p3 = scmp.ne.s32.totalorder %s35_s28, %s1889_s14  ;;  %p1895_p5 = scmp.lt.s32.totalorder %s1889_s14, %s1889_s14 }
   0xe   :  { %p1896_p6 = por %p1895_p5, %p1894_p4 }
  0x10   :  { %p1897_p7 = pnand %p1896_p6, %p1890_p3 }
  0x12   :  { %1900 = shalt.err (!%p1897_p7)
}
  0x13   :  { %s2022_s15 = smov 64   ;;  %s2023_s16 = smov 4  }
  0x14   :  { %40 = dma.hbm_to_vmem [thread:$0]  %s2633_s1, 1024, %s35_s28, [#allocation10], %s2022_s15, %s2022_s15, %s2023_s16  }
  0x15   :  { %s2024_s19 = smov [#allocation6]   ;;  %s2025_s21 = smov [#allocation11]  }
  0x16   :  { %s25_s20 = sshll.u32 %s2024_s19, 4  ;;  %s48_s22 = sshll.u32 %s2025_s21, 4  ;;  %s26_s20 = int_to_ptr.vmem [resolvable:$true] %s25_s20  ;;  %s49_s22 = int_to_ptr.vmem [resolvable:$true] %s48_s22 }
  0x17   :  { %s1901_s25 = scalar_lea.hbm %s2632_s0, 64 }
  0x18   :  { %p1902_p8 = scmp.ne.s32.totalorder %s2632_s0, %s1901_s25  ;;  %p1905_p9 = scmp.lt.u32.totalorder %s1901_s25, %s2632_s0 }
  0x1a   :  { %p1907_p10 = pnand %p1905_p9, %p1902_p8 }
  0x1c   :  { %1910 = shalt.err (!%p1907_p10)
}
  0x1d   :  { %s1911_s1 = scalar_lea.vmem %s26_s20, 64  ;;  %p1916_p12 = scmp.lt.s32.totalorder %s26_s20, %s26_s20 }
  0x1e   :  { %p1912_p11 = scmp.ne.s32.totalorder %s26_s20, %s1911_s1  ;;  %p1917_p13 = scmp.lt.s32.totalorder %s1911_s1, %s1911_s1 }
  0x20   :  { %p1918_p0 = por %p1917_p13, %p1916_p12 }
  0x22   :  { %p1919_p1 = pnand %p1918_p0, %p1912_p11 }
  0x24   :  { %1922 = shalt.err (!%p1919_p1)
}
  0x25   :  { %28 = dma.hbm_to_vmem [thread:$0]  %s2632_s0, 64, %s26_s20, [#allocation7]  }
  0x26   :  { %s1923_s12 = scalar_lea.hbm %s2635_s3, 1024 }
  0x27   :  { %p1924_p2 = scmp.ne.s32.totalorder %s2635_s3, %s1923_s12  ;;  %p1927_p3 = scmp.lt.u32.totalorder %s1923_s12, %s2635_s3 }
  0x29   :  { %p1929_p4 = pnand %p1927_p3, %p1924_p2 }
  0x2b   :  { %1932 = shalt.err (!%p1929_p4)
}
  0x2c   :  { %s1933_s19 = scalar_lea.vmem %s49_s22, 1024  ;;  %p1938_p6 = scmp.lt.s32.totalorder %s49_s22, %s49_s22 }
  0x2d   :  { %p1934_p5 = scmp.ne.s32.totalorder %s49_s22, %s1933_s19  ;;  %p1939_p7 = scmp.lt.s32.totalorder %s1933_s19, %s1933_s19 }
  0x2f   :  { %p1940_p8 = por %p1939_p7, %p1938_p6 }
  0x31   :  { %p1941_p9 = pnand %p1940_p8, %p1934_p5 }
  0x33   :  { %1944 = shalt.err (!%p1941_p9)
}
  0x34   :  { %54 = dma.hbm_to_vmem [thread:$0]  %s2635_s3, 1024, %s49_s22, [#allocation10], %s2022_s15, %s2022_s15, %s2023_s16  }
  0x35   :  { %s2026_s21 = smov [#allocation12]   ;;  %s1945_s26 = scalar_lea.hbm %s2637_s5, 1024 }
  0x36   :  { %s62_s23 = sshll.u32 %s2026_s21, 4  ;;  %p1946_p10 = scmp.ne.s32.totalorder %s2637_s5, %s1945_s26  ;;  %s63_s23 = int_to_ptr.vmem [resolvable:$true] %s62_s23 }
  0x37   :  { %p1949_p11 = scmp.lt.u32.totalorder %s1945_s26, %s2637_s5 }
  0x39   :  { %p1951_p12 = pnand %p1949_p11, %p1946_p10 }
  0x3b   :  { %1954 = shalt.err (!%p1951_p12)
}
  0x3c   :  { %s1955_s28 = scalar_lea.vmem %s63_s23, 1024  ;;  %p1960_p0 = scmp.lt.s32.totalorder %s63_s23, %s63_s23 }
  0x3d   :  { %p1956_p13 = scmp.ne.s32.totalorder %s63_s23, %s1955_s28  ;;  %p1961_p1 = scmp.lt.s32.totalorder %s1955_s28, %s1955_s28 }
  0x3f   :  { %p1962_p2 = por %p1961_p1, %p1960_p0 }
  0x41   :  { %p1963_p3 = pnand %p1962_p2, %p1956_p13 }
  0x43   :  { %1966 = shalt.err (!%p1963_p3)
}
  0x44   :  { %68 = dma.hbm_to_vmem [thread:$0]  %s2637_s5, 1024, %s63_s23, [#allocation13], %s2022_s15, %s2022_s15, %s2023_s16  }
  0x45   :  { %2011 = dma.done.wait [#allocation7], 64  }
  0x46   :  { %2012 = vsyncadd [#allocation7], 4294967232 }
  0x47   :  { %2013 = dma.done.wait [#allocation10], 2048  }
  0x48   :  { %2014 = vsyncadd [#allocation10], 4294965248 }
  0x49   :  { %2015 = dma.done.wait [#allocation13], 1024  }
  0x4a   :  { %2016 = vsyncadd [#allocation13], 4294966272  ;;  %v2027_v0 = vmov 0.0   ;;  %vm2028_vm0 = vmmov 0   ;;  %v1855_v1 = vld [vmem:[#allocation9] sm:$0xff]   ;;  %v1856_v2 = vld [vmem:[#allocation9 + $0x8] sm:$0xff]  }
  0x4b   :  { %1502 = vmatprep.subr.bf16.mxu0 %v2027_v0  ;;  %1518 = vmatprep.mubr.msk.bf16.mxu0 %vm2028_vm0, %v2027_v0  ;;  %v1857_v3 = vld [vmem:[#allocation9 + $0x10] sm:$0xff]   ;;  %v2144_v4 = vld [vmem:[#allocation11] sm:$0xff]   ;;  %v1858_v5 = vld [vmem:[#allocation9 + $0x18] sm:$0xff]   ;;  %v2029_v26 = vmov 1.0|1.0   ;;  %s2031_s11 = smov [#allocation15]  }
  0x4c   :  { %1522 = vmatprep.subr.bf16.mxu1 %v2027_v0  ;;  %1538 = vmatprep.mubr.msk.bf16.mxu1 %vm2028_vm0, %v2027_v0  ;;  %v2148_v6 = vld [vmem:[#allocation11 + $0x8] sm:$0xff]   ;;  %v1859_v7 = vld [vmem:[#allocation9 + $0x20] sm:$0xff]   ;;  %v2153_v8 = vld [vmem:[#allocation11 + $0x10] sm:$0xff]   ;;  %s1224_s12 = sshll.u32 %s2031_s11, 4  ;;  %s2601_s12 = int_to_ptr.vmem [resolvable:$true] %s1224_s12 }
  0x4d   :  { %1503 = vmatpush3.bf16.msra.mxu0 %v1855_v1  ;;  %1523 = vmatpush3.bf16.msra.mxu1 %v2144_v4  ;;  %v1860_v9 = vld [vmem:[#allocation9 + $0x28] sm:$0xff]   ;;  %v2156_v10 = vld [vmem:[#allocation11 + $0x18] sm:$0xff]   ;;  %v1861_v11 = vld [vmem:[#allocation9 + $0x30] sm:$0xff]  }
  0x4e   :  { %1504 = vmatprep.subr.bf16.mxu0 %v2027_v0  ;;  %1524 = vmatprep.subr.bf16.mxu1 %v2027_v0  ;;  %v2163_v12 = vld [vmem:[#allocation11 + $0x20] sm:$0xff]   ;;  %v1862_v13 = vld [vmem:[#allocation9 + $0x38] sm:$0xff]   ;;  %v2168_v14 = vld [vmem:[#allocation11 + $0x28] sm:$0xff]  }
  0x4f   :  { %v88_v15 = vld [vmem:[#allocation6] sm:$0xf]  ;;  %v2172_v16 = vld [vmem:[#allocation11 + $0x30] sm:$0xff]   ;;  %v2267_v53 = vld [vmem:[#allocation12] sm:$0xff]  }
  0x50   :  { %v2180_v17 = vld [vmem:[#allocation11 + $0x38] sm:$0xff]   ;;  %v2273_v54 = vld [vmem:[#allocation12 + $0x8] sm:$0xff]   ;;  %v2282_v55 = vld [vmem:[#allocation12 + $0x10] sm:$0xff]  }
  0x51   :  { %1505 = vmatpush3.bf16.msra.mxu0 %v1856_v2  ;;  %1525 = vmatpush3.bf16.msra.mxu1 %v2148_v6  ;;  %v1242_v18 = vld [vmem:[%s2634_s2] ss:$0 sm:$0xff]  ;;  %v2296_v57 = vld [vmem:[#allocation12 + $0x20] sm:$0xff]   ;;  %v2302_v58 = vld [vmem:[#allocation12 + $0x28] sm:$0xff]  }
  0x52   :  { %1506 = vmatprep.subr.bf16.mxu0 %v2027_v0  ;;  %1526 = vmatprep.subr.bf16.mxu1 %v2027_v0  ;;  %v2290_v56 = vld [vmem:[#allocation12 + $0x18] sm:$0xff]   ;;  %v2308_v59 = vld [vmem:[#allocation12 + $0x30] sm:$0xff]  }
  0x53   :  { %v2314_v60 = vld [vmem:[#allocation12 + $0x38] sm:$0xff]  }
  0x54   :  { %v2408_v61 = vld [vmem:[%s2636_s4] ss:$0 sm:$0xff] }
  0x55   :  { %1507 = vmatpush3.bf16.msra.mxu0 %v1857_v3  ;;  %1527 = vmatpush3.bf16.msra.mxu1 %v2153_v8 }
  0x56   :  { %1508 = vmatprep.subr.bf16.mxu0 %v2027_v0  ;;  %1528 = vmatprep.subr.bf16.mxu1 %v2027_v0 }
  0x59   :  { %1509 = vmatpush3.bf16.msra.mxu0 %v1858_v5  ;;  %1529 = vmatpush3.bf16.msra.mxu1 %v2156_v10 }
  0x5a   :  { %1510 = vmatprep.subr.bf16.mxu0 %v2027_v0  ;;  %1530 = vmatprep.subr.bf16.mxu1 %v2027_v0 }
  0x5d   :  { %1511 = vmatpush3.bf16.msra.mxu0 %v1859_v7  ;;  %1531 = vmatpush3.bf16.msra.mxu1 %v2163_v12 }
  0x5e   :  { %1512 = vmatprep.subr.bf16.mxu0 %v2027_v0  ;;  %1532 = vmatprep.subr.bf16.mxu1 %v2027_v0 }
  0x61   :  { %1513 = vmatpush3.bf16.msra.mxu0 %v1860_v9  ;;  %1533 = vmatpush3.bf16.msra.mxu1 %v2168_v14 }
  0x62   :  { %1514 = vmatprep.subr.bf16.mxu0 %v2027_v0  ;;  %1534 = vmatprep.subr.bf16.mxu1 %v2027_v0 }
  0x65   :  { %1515 = vmatpush3.bf16.msra.mxu0 %v1861_v11  ;;  %1535 = vmatpush3.bf16.msra.mxu1 %v2172_v16 }
  0x66   :  { %1516 = vmatprep.subr.bf16.mxu0 %v2027_v0  ;;  %1536 = vmatprep.subr.bf16.mxu1 %v2027_v0 }
  0x69   :  { %1517 = vmatpush3.bf16.msra.mxu0 %v1862_v13  ;;  %1537 = vmatpush3.bf16.msra.mxu1 %v2180_v17 }
  0x6a   :  { %1542 = vmatprep.subr.bf16.mxu0 %v2027_v0  ;;  %1562 = vmatprep.subr.bf16.mxu1 %v2027_v0 }
  0x6c   :  { %1519 = vmatmul.mubr.bf16.vlgmr.msra.gmra.mrb[0].mxu0 %v88_v15 }
  0x6d   :  { %1558 = vmatprep.mubr.msk.bf16.mxu0 %vm2028_vm0, %v2027_v0  ;;  %1543 = vmatpush3.bf16.msra.mxu0 %v2267_v53 }
  0x6e   :  { %1544 = vmatprep.subr.bf16.mxu0 %v2027_v0 }
  0x71   :  { %1545 = vmatpush3.bf16.msra.mxu0 %v2273_v54 }
  0x72   :  { %1546 = vmatprep.subr.bf16.mxu0 %v2027_v0 }
  0x75   :  { %1547 = vmatpush3.bf16.msra.mxu0 %v2282_v55 }
  0x76   :  { %1548 = vmatprep.subr.bf16.mxu0 %v2027_v0 }
  0x79   :  { %1549 = vmatpush3.bf16.msra.mxu0 %v2290_v56 }
  0x7a   :  { %1550 = vmatprep.subr.bf16.mxu0 %v2027_v0 }
  0x7d   :  { %1551 = vmatpush3.bf16.msra.mxu0 %v2296_v57 }
  0x7e   :  { %1552 = vmatprep.subr.bf16.mxu0 %v2027_v0 }
  0x81   :  { %1553 = vmatpush3.bf16.msra.mxu0 %v2302_v58 }
  0x82   :  { %1554 = vmatprep.subr.bf16.mxu0 %v2027_v0 }
  0x85   :  { %1555 = vmatpush3.bf16.msra.mxu0 %v2308_v59 }
  0x86   :  { %1556 = vmatprep.subr.bf16.mxu0 %v2027_v0 }
  0x89   :  { %1557 = vmatpush3.bf16.msra.mxu0 %v2314_v60 }
  0x8a   :  { %1582 = vmatprep.subr.bf16.mxu0 %v2027_v0 }
 0x13f   :  { %v194_v19 = vpop.f32.mrb[0].mxu0 }
 0x140   :  { %v2187_v20 = vadd.f32 %v1242_v18, %v194_v19  ;;  %v1520_v21 = vpop.f32.mrb[1].mxu0 }
 0x141   :  { %v197_v22 = vpop.f32.mrb[2].mxu0 }
 0x142   :  { %v1521_v23 = vpop.f32.mrb[3].mxu0  ;;  %vm244_vm1 = vcmp.gt.f32.partialorder %v2187_v20, 1.0  ;;  %v1251_v24 = vadd.f32 -1.0, %v2187_v20 }
 0x143   :  { %vm1262_vm2 = vmpackc.low %vm244_vm1, %vm244_vm1 }
 0x144   :  { %v246_v25 = vsel %vm244_vm1, %v1251_v24, %v2187_v20  ;;  %1539 = vmatmul.mubr.msk.bf16.vlgmr.msra.gmra.mrb[0].mxu1 %vm1262_vm2, %v2029_v26 }
 0x145   :  { %v455_v27 = vmul.f32 0.9, %v246_v25  ;;  %1563 = vmatpush3.bf16.msra.mxu1 %v2144_v4  ;;  %1578 = vmatprep.mubr.msk.bf16.mxu1 %vm2028_vm0, %v2027_v0 }
 0x146   :  { %1564 = vmatprep.subr.bf16.mxu1 %v2027_v0 }
 0x147   :  { %v456_v28 = vadd.f32 %v455_v27, %v2187_v20 }
 0x149   :  { %1565 = vmatpush3.bf16.msra.mxu1 %v2148_v6  ;;  %vm457_vm3 = vcmp.gt.f32.partialorder %v456_v28, 1.0  ;;  %v1279_v29 = vadd.f32 -1.0, %v456_v28 }
 0x14a   :  { %1566 = vmatprep.subr.bf16.mxu1 %v2027_v0  ;;  %vm1281_vm7 = vmpackc.low %vm457_vm3, %vm457_vm3 }
 0x14b   :  { %v459_v30 = vsel %vm457_vm3, %v1279_v29, %v456_v28 }
 0x14c   :  { %v562_v31 = vmul.f32 0.9, %v459_v30 }
 0x14d   :  { %1567 = vmatpush3.bf16.msra.mxu1 %v2153_v8 }
 0x14e   :  { %1568 = vmatprep.subr.bf16.mxu1 %v2027_v0  ;;  %v563_v32 = vadd.f32 %v562_v31, %v2187_v20 }
 0x150   :  { %vm564_vm4 = vcmp.gt.f32.partialorder %v563_v32, 1.0  ;;  %v1289_v33 = vadd.f32 -1.0, %v563_v32 }
 0x151   :  { %1569 = vmatpush3.bf16.msra.mxu1 %v2156_v10  ;;  %vm1291_vm10 = vmpackc.low %vm564_vm4, %vm564_vm4 }
 0x152   :  { %1570 = vmatprep.subr.bf16.mxu1 %v2027_v0  ;;  %v566_v34 = vsel %vm564_vm4, %v1289_v33, %v563_v32 }
 0x153   :  { %v669_v35 = vmul.f32 0.9, %v566_v34 }
 0x155   :  { %1571 = vmatpush3.bf16.msra.mxu1 %v2163_v12  ;;  %v2209_v36 = vadd.f32 %v669_v35, %v2187_v20 }
 0x156   :  { %1572 = vmatprep.subr.bf16.mxu1 %v2027_v0 }
 0x157   :  { %vm671_vm5 = vcmp.gt.f32.partialorder %v2209_v36, 1.0  ;;  %v1299_v37 = vadd.f32 -1.0, %v2209_v36 }
 0x158   :  { %vm1301_vm11 = vmpackc.low %vm671_vm5, %vm671_vm5 }
 0x159   :  { %1573 = vmatpush3.bf16.msra.mxu1 %v2168_v14  ;;  %v673_v38 = vsel %vm671_vm5, %v1299_v37, %v2209_v36 }
 0x15a   :  { %1574 = vmatprep.subr.bf16.mxu1 %v2027_v0  ;;  %v776_v39 = vmul.f32 0.9, %v673_v38 }
 0x15c   :  { %v2220_v40 = vadd.f32 %v776_v39, %v2187_v20 }
 0x15d   :  { %1575 = vmatpush3.bf16.msra.mxu1 %v2172_v16 }
 0x15e   :  { %1576 = vmatprep.subr.bf16.mxu1 %v2027_v0  ;;  %vm778_vm6 = vcmp.gt.f32.partialorder %v2220_v40, 1.0  ;;  %v1309_v41 = vadd.f32 -1.0, %v2220_v40 }
 0x15f   :  { %vm1311_vm12 = vmpackc.low %vm778_vm6, %vm778_vm6 }
 0x160   :  { %v780_v42 = vsel %vm778_vm6, %v1309_v41, %v2220_v40 }
 0x161   :  { %1577 = vmatpush3.bf16.msra.mxu1 %v2180_v17  ;;  %v883_v43 = vmul.f32 0.9, %v780_v42 }
 0x162   :  { %1602 = vmatprep.subr.bf16.mxu1 %v2027_v0 }
 0x163   :  { %v2234_v44 = vadd.f32 %v883_v43, %v2187_v20 }
 0x164   :  { %1579 = vmatmul.mubr.msk.bf16.vlgmr.msra.gmra.mrb[4].mxu1 %vm1281_vm7, %v2029_v26 }
 0x165   :  { %1603 = vmatpush3.bf16.msra.mxu1 %v2144_v4  ;;  %1618 = vmatprep.mubr.msk.bf16.mxu1 %vm2028_vm0, %v2027_v0  ;;  %vm885_vm8 = vcmp.gt.f32.partialorder %v2234_v44, 1.0  ;;  %v1319_v45 = vadd.f32 -1.0, %v2234_v44 }
 0x166   :  { %1604 = vmatprep.subr.bf16.mxu1 %v2027_v0  ;;  %vm1321_vm13 = vmpackc.low %vm885_vm8, %vm885_vm8 }
 0x167   :  { %v887_v46 = vsel %vm885_vm8, %v1319_v45, %v2234_v44 }
 0x168   :  { %v990_v47 = vmul.f32 0.9, %v887_v46 }
 0x169   :  { %1605 = vmatpush3.bf16.msra.mxu1 %v2148_v6 }
 0x16a   :  { %1606 = vmatprep.subr.bf16.mxu1 %v2027_v0  ;;  %v2249_v48 = vadd.f32 %v990_v47, %v2187_v20 }
 0x16c   :  { %vm992_vm9 = vcmp.gt.f32.partialorder %v2249_v48, 1.0  ;;  %v1329_v49 = vadd.f32 -1.0, %v2249_v48 }
 0x16d   :  { %1607 = vmatpush3.bf16.msra.mxu1 %v2153_v8  ;;  %vm1331_vm14 = vmpackc.low %vm992_vm9, %vm992_vm9 }
 0x16e   :  { %1608 = vmatprep.subr.bf16.mxu1 %v2027_v0  ;;  %v994_v50 = vsel %vm992_vm9, %v1329_v49, %v2249_v48 }
 0x16f   :  { %v1097_v51 = vmul.f32 0.9, %v994_v50 }
 0x171   :  { %1609 = vmatpush3.bf16.msra.mxu1 %v2156_v10  ;;  %v2260_v52 = vadd.f32 %v1097_v51, %v2187_v20 }
 0x172   :  { %1610 = vmatprep.subr.bf16.mxu1 %v2027_v0 }
 0x173   :  { %vm1099_vm2 = vcmp.gt.f32.partialorder %v2260_v52, 1.0 }
 0x174   :  { %vm1341_vm3 = vmpackc.low %vm1099_vm2, %vm1099_vm2 }
 0x175   :  { %1611 = vmatpush3.bf16.msra.mxu1 %v2163_v12 }
 0x176   :  { %1612 = vmatprep.subr.bf16.mxu1 %v2027_v0 }
 0x179   :  { %1613 = vmatpush3.bf16.msra.mxu1 %v2168_v14 }
 0x17a   :  { %1614 = vmatprep.subr.bf16.mxu1 %v2027_v0 }
 0x17d   :  { %1615 = vmatpush3.bf16.msra.mxu1 %v2172_v16 }
 0x17e   :  { %1616 = vmatprep.subr.bf16.mxu1 %v2027_v0 }
 0x181   :  { %1617 = vmatpush3.bf16.msra.mxu1 %v2180_v17 }
 0x182   :  { %1642 = vmatprep.subr.bf16.mxu1 %v2027_v0 }
 0x184   :  { %1619 = vmatmul.mubr.msk.bf16.vlgmr.msra.gmra.mrb[8].mxu1 %vm1291_vm10, %v2029_v26 }
 0x185   :  { %1643 = vmatpush3.bf16.msra.mxu1 %v2144_v4  ;;  %1658 = vmatprep.mubr.msk.bf16.mxu1 %vm2028_vm0, %v2027_v0 }
 0x186   :  { %1644 = vmatprep.subr.bf16.mxu1 %v2027_v0 }
 0x189   :  { %1645 = vmatpush3.bf16.msra.mxu1 %v2148_v6 }
 0x18a   :  { %1646 = vmatprep.subr.bf16.mxu1 %v2027_v0 }
 0x18d   :  { %1647 = vmatpush3.bf16.msra.mxu1 %v2153_v8 }
 0x18e   :  { %1648 = vmatprep.subr.bf16.mxu1 %v2027_v0 }
 0x191   :  { %1649 = vmatpush3.bf16.msra.mxu1 %v2156_v10 }
 0x192   :  { %1650 = vmatprep.subr.bf16.mxu1 %v2027_v0 }
 0x195   :  { %1651 = vmatpush3.bf16.msra.mxu1 %v2163_v12 }
 0x196   :  { %1652 = vmatprep.subr.bf16.mxu1 %v2027_v0 }
 0x199   :  { %1653 = vmatpush3.bf16.msra.mxu1 %v2168_v14 }
 0x19a   :  { %1654 = vmatprep.subr.bf16.mxu1 %v2027_v0 }
 0x19d   :  { %1655 = vmatpush3.bf16.msra.mxu1 %v2172_v16 }
 0x19e   :  { %1656 = vmatprep.subr.bf16.mxu1 %v2027_v0 }
 0x1a1   :  { %1657 = vmatpush3.bf16.msra.mxu1 %v2180_v17 }
 0x1a2   :  { %1682 = vmatprep.subr.bf16.mxu1 %v2027_v0 }
 0x1a4   :  { %1659 = vmatmul.mubr.msk.bf16.vlgmr.msra.gmra.mrb[12].mxu1 %vm1301_vm11, %v2029_v26 }
 0x1a5   :  { %1683 = vmatpush3.bf16.msra.mxu1 %v2144_v4  ;;  %1698 = vmatprep.mubr.msk.bf16.mxu1 %vm2028_vm0, %v2027_v0 }
 0x1a6   :  { %1684 = vmatprep.subr.bf16.mxu1 %v2027_v0 }
 0x1a9   :  { %1685 = vmatpush3.bf16.msra.mxu1 %v2148_v6 }
 0x1aa   :  { %1686 = vmatprep.subr.bf16.mxu1 %v2027_v0 }
 0x1ad   :  { %1687 = vmatpush3.bf16.msra.mxu1 %v2153_v8 }
 0x1ae   :  { %1688 = vmatprep.subr.bf16.mxu1 %v2027_v0 }
 0x1b1   :  { %1689 = vmatpush3.bf16.msra.mxu1 %v2156_v10 }
 0x1b2   :  { %1690 = vmatprep.subr.bf16.mxu1 %v2027_v0 }
 0x1b5   :  { %1691 = vmatpush3.bf16.msra.mxu1 %v2163_v12 }
 0x1b6   :  { %1692 = vmatprep.subr.bf16.mxu1 %v2027_v0 }
 0x1b9   :  { %1693 = vmatpush3.bf16.msra.mxu1 %v2168_v14 }
 0x1ba   :  { %1694 = vmatprep.subr.bf16.mxu1 %v2027_v0 }
 0x1bd   :  { %1695 = vmatpush3.bf16.msra.mxu1 %v2172_v16 }
 0x1be   :  { %1696 = vmatprep.subr.bf16.mxu1 %v2027_v0 }
 0x1c1   :  { %1697 = vmatpush3.bf16.msra.mxu1 %v2180_v17 }
 0x1c2   :  { %1722 = vmatprep.subr.bf16.mxu1 %v2027_v0 }
 0x1c4   :  { %1699 = vmatmul.mubr.msk.bf16.vlgmr.msra.gmra.mrb[16].mxu1 %vm1311_vm12, %v2029_v26 }
 0x1c5   :  { %1723 = vmatpush3.bf16.msra.mxu1 %v2144_v4  ;;  %1738 = vmatprep.mubr.msk.bf16.mxu1 %vm2028_vm0, %v2027_v0 }
 0x1c6   :  { %1724 = vmatprep.subr.bf16.mxu1 %v2027_v0 }
 0x1c9   :  { %1725 = vmatpush3.bf16.msra.mxu1 %v2148_v6 }
 0x1ca   :  { %1726 = vmatprep.subr.bf16.mxu1 %v2027_v0 }
 0x1cd   :  { %1727 = vmatpush3.bf16.msra.mxu1 %v2153_v8 }
 0x1ce   :  { %1728 = vmatprep.subr.bf16.mxu1 %v2027_v0 }
 0x1d1   :  { %1729 = vmatpush3.bf16.msra.mxu1 %v2156_v10 }
 0x1d2   :  { %1730 = vmatprep.subr.bf16.mxu1 %v2027_v0 }
 0x1d5   :  { %1731 = vmatpush3.bf16.msra.mxu1 %v2163_v12 }
 0x1d6   :  { %1732 = vmatprep.subr.bf16.mxu1 %v2027_v0 }
 0x1d9   :  { %1733 = vmatpush3.bf16.msra.mxu1 %v2168_v14 }
 0x1da   :  { %1734 = vmatprep.subr.bf16.mxu1 %v2027_v0 }
 0x1dd   :  { %1735 = vmatpush3.bf16.msra.mxu1 %v2172_v16 }
 0x1de   :  { %1736 = vmatprep.subr.bf16.mxu1 %v2027_v0 }
 0x1e1   :  { %1737 = vmatpush3.bf16.msra.mxu1 %v2180_v17 }
 0x1e2   :  { %1762 = vmatprep.subr.bf16.mxu1 %v2027_v0 }
 0x1e4   :  { %1739 = vmatmul.mubr.msk.bf16.vlgmr.msra.gmra.mrb[20].mxu1 %vm1321_vm13, %v2029_v26 }
 0x1e5   :  { %1763 = vmatpush3.bf16.msra.mxu1 %v2144_v4  ;;  %1778 = vmatprep.mubr.msk.bf16.mxu1 %vm2028_vm0, %v2027_v0 }
 0x1e6   :  { %1764 = vmatprep.subr.bf16.mxu1 %v2027_v0 }
 0x1e9   :  { %1765 = vmatpush3.bf16.msra.mxu1 %v2148_v6 }
 0x1ea   :  { %1766 = vmatprep.subr.bf16.mxu1 %v2027_v0 }
 0x1ed   :  { %1767 = vmatpush3.bf16.msra.mxu1 %v2153_v8 }
 0x1ee   :  { %1768 = vmatprep.subr.bf16.mxu1 %v2027_v0 }
 0x1f1   :  { %1769 = vmatpush3.bf16.msra.mxu1 %v2156_v10 }
 0x1f2   :  { %1770 = vmatprep.subr.bf16.mxu1 %v2027_v0 }
 0x1f5   :  { %1771 = vmatpush3.bf16.msra.mxu1 %v2163_v12 }
 0x1f6   :  { %1772 = vmatprep.subr.bf16.mxu1 %v2027_v0 }
 0x1f9   :  { %1773 = vmatpush3.bf16.msra.mxu1 %v2168_v14 }
 0x1fa   :  { %1774 = vmatprep.subr.bf16.mxu1 %v2027_v0 }
 0x1fd   :  { %1775 = vmatpush3.bf16.msra.mxu1 %v2172_v16 }
 0x1fe   :  { %1776 = vmatprep.subr.bf16.mxu1 %v2027_v0 }
 0x201   :  { %1777 = vmatpush3.bf16.msra.mxu1 %v2180_v17 }
 0x202   :  { %1802 = vmatprep.subr.bf16.mxu1 %v2027_v0 }
 0x204   :  { %1779 = vmatmul.mubr.msk.bf16.vlgmr.msra.gmra.mrb[24].mxu1 %vm1331_vm14, %v2029_v26 }
 0x205   :  { %1803 = vmatpush3.bf16.msra.mxu1 %v2144_v4  ;;  %1818 = vmatprep.mubr.msk.bf16.mxu1 %vm2028_vm0, %v2027_v0 }
 0x206   :  { %1804 = vmatprep.subr.bf16.mxu1 %v2027_v0 }
 0x209   :  { %1805 = vmatpush3.bf16.msra.mxu1 %v2148_v6 }
 0x20a   :  { %1806 = vmatprep.subr.bf16.mxu1 %v2027_v0 }
 0x20d   :  { %1807 = vmatpush3.bf16.msra.mxu1 %v2153_v8 }
 0x20e   :  { %1808 = vmatprep.subr.bf16.mxu1 %v2027_v0 }
 0x211   :  { %1809 = vmatpush3.bf16.msra.mxu1 %v2156_v10 }
 0x212   :  { %1810 = vmatprep.subr.bf16.mxu1 %v2027_v0 }
 0x215   :  { %1811 = vmatpush3.bf16.msra.mxu1 %v2163_v12 }
 0x216   :  { %1812 = vmatprep.subr.bf16.mxu1 %v2027_v0 }
 0x217   :  { %v338_v62 = vpop.f32.mrb[0].mxu1 }
 0x218   :  { %v339_v63 = vadd.f32 %v2408_v61, %v338_v62  ;;  %v1540_v1 = vpop.f32.mrb[1].mxu1 }
 0x219   :  { %1813 = vmatpush3.bf16.msra.mxu1 %v2168_v14  ;;  %v341_v2 = vpop.f32.mrb[2].mxu1 }
 0x21a   :  { %vm346_vm15 = vcmp.gt.f32.partialorder %v339_v63, 1.0  ;;  %v1541_v3 = vpop.f32.mrb[3].mxu1  ;;  %1814 = vmatprep.subr.bf16.mxu1 %v2027_v0  ;;  %v1264_v4 = vadd.f32 -1.0, %v339_v63 }
 0x21b   :  { %vm1275_vm1 = vmpackc.low %vm346_vm15, %vm346_vm15 }
 0x21c   :  { %1559 = vmatmul.mubr.msk.bf16.vlgmr.msra.gmra.mrb[4].mxu0 %vm1275_vm1, %v2029_v26  ;;  %v348_v5 = vsel %vm346_vm15, %v1264_v4, %v339_v63 }
 0x21d   :  { %1815 = vmatpush3.bf16.msra.mxu1 %v2172_v16  ;;  %1583 = vmatpush3.bf16.msra.mxu0 %v2267_v53  ;;  %v503_v8 = vmul.f32 0.9, %v348_v5 }
 0x21e   :  { %1816 = vmatprep.subr.bf16.mxu1 %v2027_v0  ;;  %1584 = vmatprep.subr.bf16.mxu0 %v2027_v0 }
 0x21f   :  { %1598 = vmatprep.mubr.msk.bf16.mxu0 %vm2028_vm0, %v2027_v0 }
 0x221   :  { %1817 = vmatpush3.bf16.msra.mxu1 %v2180_v17  ;;  %1585 = vmatpush3.bf16.msra.mxu0 %v2273_v54 }
 0x222   :  { %1586 = vmatprep.subr.bf16.mxu0 %v2027_v0 }
 0x224   :  { %1819 = vmatmul.mubr.msk.bf16.vlgmr.msra.gmra.mrb[28].mxu1 %vm1341_vm3, %v2029_v26 }
 0x225   :  { %1587 = vmatpush3.bf16.msra.mxu0 %v2282_v55 }
 0x226   :  { %1588 = vmatprep.subr.bf16.mxu0 %v2027_v0 }
 0x229   :  { %1589 = vmatpush3.bf16.msra.mxu0 %v2290_v56 }
 0x22a   :  { %1590 = vmatprep.subr.bf16.mxu0 %v2027_v0 }
 0x22d   :  { %1591 = vmatpush3.bf16.msra.mxu0 %v2296_v57 }
 0x22e   :  { %1592 = vmatprep.subr.bf16.mxu0 %v2027_v0 }
 0x231   :  { %1593 = vmatpush3.bf16.msra.mxu0 %v2302_v58 }
 0x232   :  { %1594 = vmatprep.subr.bf16.mxu0 %v2027_v0 }
 0x235   :  { %1595 = vmatpush3.bf16.msra.mxu0 %v2308_v59 }
 0x236   :  { %1596 = vmatprep.subr.bf16.mxu0 %v2027_v0 }
 0x237   :  { %v497_v6 = vpop.f32.mrb[4].mxu1 }
 0x238   :  { %v498_v7 = vadd.f32 %v2408_v61, %v497_v6  ;;  %v1580_v9 = vpop.f32.mrb[5].mxu1 }
 0x239   :  { %v500_v10 = vpop.f32.mrb[6].mxu1  ;;  %1597 = vmatpush3.bf16.msra.mxu0 %v2314_v60 }
 0x23a   :  { %v504_v11 = vadd.f32 %v503_v8, %v498_v7  ;;  %v1581_v12 = vpop.f32.mrb[7].mxu1  ;;  %1622 = vmatprep.subr.bf16.mxu0 %v2027_v0 }
 0x23c   :  { %vm505_vm4 = vcmp.gt.f32.partialorder %v504_v11, 1.0  ;;  %v1283_v13 = vadd.f32 -1.0, %v504_v11 }
 0x23d   :  { %vm1285_vm5 = vmpackc.low %vm505_vm4, %vm505_vm4 }
 0x23e   :  { %1599 = vmatmul.mubr.msk.bf16.vlgmr.msra.gmra.mrb[8].mxu0 %vm1285_vm5, %v2029_v26  ;;  %v507_v14 = vsel %vm505_vm4, %v1283_v13, %v504_v11 }
 0x23f   :  { %1623 = vmatpush3.bf16.msra.mxu0 %v2267_v53  ;;  %1638 = vmatprep.mubr.msk.bf16.mxu0 %vm2028_vm0, %v2027_v0  ;;  %v610_v17 = vmul.f32 0.9, %v507_v14 }
 0x240   :  { %1624 = vmatprep.subr.bf16.mxu0 %v2027_v0 }
 0x243   :  { %1625 = vmatpush3.bf16.msra.mxu0 %v2273_v54 }
 0x244   :  { %1626 = vmatprep.subr.bf16.mxu0 %v2027_v0 }
 0x247   :  { %1627 = vmatpush3.bf16.msra.mxu0 %v2282_v55 }
 0x248   :  { %1628 = vmatprep.subr.bf16.mxu0 %v2027_v0 }
 0x24b   :  { %1629 = vmatpush3.bf16.msra.mxu0 %v2290_v56 }
 0x24c   :  { %1630 = vmatprep.subr.bf16.mxu0 %v2027_v0 }
 0x24f   :  { %1631 = vmatpush3.bf16.msra.mxu0 %v2296_v57 }
 0x250   :  { %1632 = vmatprep.subr.bf16.mxu0 %v2027_v0 }
 0x253   :  { %1633 = vmatpush3.bf16.msra.mxu0 %v2302_v58 }
 0x254   :  { %1634 = vmatprep.subr.bf16.mxu0 %v2027_v0 }
 0x257   :  { %v604_v15 = vpop.f32.mrb[8].mxu1  ;;  %1635 = vmatpush3.bf16.msra.mxu0 %v2308_v59 }
 0x258   :  { %v605_v16 = vadd.f32 %v2408_v61, %v604_v15  ;;  %v1620_v18 = vpop.f32.mrb[9].mxu1  ;;  %1636 = vmatprep.subr.bf16.mxu0 %v2027_v0 }
 0x259   :  { %v607_v19 = vpop.f32.mrb[10].mxu1 }
 0x25a   :  { %v611_v20 = vadd.f32 %v610_v17, %v605_v16  ;;  %v1621_v21 = vpop.f32.mrb[11].mxu1 }
 0x25b   :  { %1637 = vmatpush3.bf16.msra.mxu0 %v2314_v60 }
 0x25c   :  { %vm612_vm6 = vcmp.gt.f32.partialorder %v611_v20, 1.0  ;;  %1662 = vmatprep.subr.bf16.mxu0 %v2027_v0  ;;  %v1293_v22 = vadd.f32 -1.0, %v611_v20 }
 0x25d   :  { %vm1295_vm7 = vmpackc.low %vm612_vm6, %vm612_vm6 }
 0x25e   :  { %1639 = vmatmul.mubr.msk.bf16.vlgmr.msra.gmra.mrb[12].mxu0 %vm1295_vm7, %v2029_v26  ;;  %v614_v23 = vsel %vm612_vm6, %v1293_v22, %v611_v20 }
 0x25f   :  { %1663 = vmatpush3.bf16.msra.mxu0 %v2267_v53  ;;  %1678 = vmatprep.mubr.msk.bf16.mxu0 %vm2028_vm0, %v2027_v0  ;;  %v717_v27 = vmul.f32 0.9, %v614_v23 }
 0x260   :  { %1664 = vmatprep.subr.bf16.mxu0 %v2027_v0 }
 0x263   :  { %1665 = vmatpush3.bf16.msra.mxu0 %v2273_v54 }
 0x264   :  { %1666 = vmatprep.subr.bf16.mxu0 %v2027_v0 }
 0x267   :  { %1667 = vmatpush3.bf16.msra.mxu0 %v2282_v55 }
 0x268   :  { %1668 = vmatprep.subr.bf16.mxu0 %v2027_v0 }
 0x26b   :  { %1669 = vmatpush3.bf16.msra.mxu0 %v2290_v56 }
 0x26c   :  { %1670 = vmatprep.subr.bf16.mxu0 %v2027_v0 }
 0x26f   :  { %1671 = vmatpush3.bf16.msra.mxu0 %v2296_v57 }
 0x270   :  { %1672 = vmatprep.subr.bf16.mxu0 %v2027_v0 }
 0x273   :  { %1673 = vmatpush3.bf16.msra.mxu0 %v2302_v58 }
 0x274   :  { %1674 = vmatprep.subr.bf16.mxu0 %v2027_v0 }
 0x277   :  { %v711_v24 = vpop.f32.mrb[12].mxu1  ;;  %1675 = vmatpush3.bf16.msra.mxu0 %v2308_v59 }
 0x278   :  { %v712_v25 = vadd.f32 %v2408_v61, %v711_v24  ;;  %v1660_v28 = vpop.f32.mrb[13].mxu1  ;;  %1676 = vmatprep.subr.bf16.mxu0 %v2027_v0 }
 0x279   :  { %v714_v29 = vpop.f32.mrb[14].mxu1 }
 0x27a   :  { %v718_v30 = vadd.f32 %v717_v27, %v712_v25  ;;  %v1661_v31 = vpop.f32.mrb[15].mxu1 }
 0x27b   :  { %1677 = vmatpush3.bf16.msra.mxu0 %v2314_v60 }
 0x27c   :  { %vm719_vm8 = vcmp.gt.f32.partialorder %v718_v30, 1.0  ;;  %1702 = vmatprep.subr.bf16.mxu0 %v2027_v0  ;;  %v1303_v32 = vadd.f32 -1.0, %v718_v30 }
 0x27d   :  { %vm1305_vm9 = vmpackc.low %vm719_vm8, %vm719_vm8 }
 0x27e   :  { %1679 = vmatmul.mubr.msk.bf16.vlgmr.msra.gmra.mrb[16].mxu0 %vm1305_vm9, %v2029_v26  ;;  %v721_v33 = vsel %vm719_vm8, %v1303_v32, %v718_v30 }
 0x27f   :  { %1703 = vmatpush3.bf16.msra.mxu0 %v2267_v53  ;;  %1718 = vmatprep.mubr.msk.bf16.mxu0 %vm2028_vm0, %v2027_v0  ;;  %v824_v36 = vmul.f32 0.9, %v721_v33 }
 0x280   :  { %1704 = vmatprep.subr.bf16.mxu0 %v2027_v0 }
 0x283   :  { %1705 = vmatpush3.bf16.msra.mxu0 %v2273_v54 }
 0x284   :  { %1706 = vmatprep.subr.bf16.mxu0 %v2027_v0 }
 0x287   :  { %1707 = vmatpush3.bf16.msra.mxu0 %v2282_v55 }
 0x288   :  { %1708 = vmatprep.subr.bf16.mxu0 %v2027_v0 }
 0x28b   :  { %1709 = vmatpush3.bf16.msra.mxu0 %v2290_v56 }
 0x28c   :  { %1710 = vmatprep.subr.bf16.mxu0 %v2027_v0 }
 0x28f   :  { %1711 = vmatpush3.bf16.msra.mxu0 %v2296_v57 }
 0x290   :  { %1712 = vmatprep.subr.bf16.mxu0 %v2027_v0 }
 0x293   :  { %1713 = vmatpush3.bf16.msra.mxu0 %v2302_v58 }
 0x294   :  { %1714 = vmatprep.subr.bf16.mxu0 %v2027_v0 }
 0x297   :  { %v818_v34 = vpop.f32.mrb[16].mxu1  ;;  %1715 = vmatpush3.bf16.msra.mxu0 %v2308_v59 }
 0x298   :  { %v819_v35 = vadd.f32 %v2408_v61, %v818_v34  ;;  %v1700_v37 = vpop.f32.mrb[17].mxu1  ;;  %1716 = vmatprep.subr.bf16.mxu0 %v2027_v0 }
 0x299   :  { %v821_v38 = vpop.f32.mrb[18].mxu1 }
 0x29a   :  { %v825_v39 = vadd.f32 %v824_v36, %v819_v35  ;;  %v1701_v40 = vpop.f32.mrb[19].mxu1 }
 0x29b   :  { %1717 = vmatpush3.bf16.msra.mxu0 %v2314_v60 }
 0x29c   :  { %vm826_vm10 = vcmp.gt.f32.partialorder %v825_v39, 1.0  ;;  %1742 = vmatprep.subr.bf16.mxu0 %v2027_v0  ;;  %v1313_v41 = vadd.f32 -1.0, %v825_v39 }
 0x29d   :  { %vm1315_vm11 = vmpackc.low %vm826_vm10, %vm826_vm10 }
 0x29e   :  { %1719 = vmatmul.mubr.msk.bf16.vlgmr.msra.gmra.mrb[20].mxu0 %vm1315_vm11, %v2029_v26  ;;  %v828_v42 = vsel %vm826_vm10, %v1313_v41, %v825_v39 }
 0x29f   :  { %1743 = vmatpush3.bf16.msra.mxu0 %v2267_v53  ;;  %1758 = vmatprep.mubr.msk.bf16.mxu0 %vm2028_vm0, %v2027_v0  ;;  %v931_v45 = vmul.f32 0.9, %v828_v42 }
 0x2a0   :  { %1744 = vmatprep.subr.bf16.mxu0 %v2027_v0 }
 0x2a3   :  { %1745 = vmatpush3.bf16.msra.mxu0 %v2273_v54 }
 0x2a4   :  { %1746 = vmatprep.subr.bf16.mxu0 %v2027_v0 }
 0x2a7   :  { %1747 = vmatpush3.bf16.msra.mxu0 %v2282_v55 }
 0x2a8   :  { %1748 = vmatprep.subr.bf16.mxu0 %v2027_v0 }
 0x2ab   :  { %1749 = vmatpush3.bf16.msra.mxu0 %v2290_v56 }
 0x2ac   :  { %1750 = vmatprep.subr.bf16.mxu0 %v2027_v0 }
 0x2af   :  { %1751 = vmatpush3.bf16.msra.mxu0 %v2296_v57 }
 0x2b0   :  { %1752 = vmatprep.subr.bf16.mxu0 %v2027_v0 }
 0x2b3   :  { %1753 = vmatpush3.bf16.msra.mxu0 %v2302_v58 }
 0x2b4   :  { %1754 = vmatprep.subr.bf16.mxu0 %v2027_v0 }
 0x2b7   :  { %v925_v43 = vpop.f32.mrb[20].mxu1  ;;  %1755 = vmatpush3.bf16.msra.mxu0 %v2308_v59 }
 0x2b8   :  { %v926_v44 = vadd.f32 %v2408_v61, %v925_v43  ;;  %v1740_v46 = vpop.f32.mrb[21].mxu1  ;;  %1756 = vmatprep.subr.bf16.mxu0 %v2027_v0 }
 0x2b9   :  { %v928_v47 = vpop.f32.mrb[22].mxu1 }
 0x2ba   :  { %v932_v48 = vadd.f32 %v931_v45, %v926_v44  ;;  %v1741_v49 = vpop.f32.mrb[23].mxu1 }
 0x2bb   :  { %1757 = vmatpush3.bf16.msra.mxu0 %v2314_v60 }
 0x2bc   :  { %vm933_vm12 = vcmp.gt.f32.partialorder %v932_v48, 1.0  ;;  %1782 = vmatprep.subr.bf16.mxu0 %v2027_v0  ;;  %v1323_v50 = vadd.f32 -1.0, %v932_v48 }
 0x2bd   :  { %vm1325_vm13 = vmpackc.low %vm933_vm12, %vm933_vm12 }
 0x2be   :  { %1759 = vmatmul.mubr.msk.bf16.vlgmr.msra.gmra.mrb[24].mxu0 %vm1325_vm13, %v2029_v26  ;;  %v935_v51 = vsel %vm933_vm12, %v1323_v50, %v932_v48 }
 0x2bf   :  { %1783 = vmatpush3.bf16.msra.mxu0 %v2267_v53  ;;  %1798 = vmatprep.mubr.msk.bf16.mxu0 %vm2028_vm0, %v2027_v0  ;;  %v1038_v63 = vmul.f32 0.9, %v935_v51 }
 0x2c0   :  { %1784 = vmatprep.subr.bf16.mxu0 %v2027_v0 }
 0x2c3   :  { %1785 = vmatpush3.bf16.msra.mxu0 %v2273_v54 }
 0x2c4   :  { %1786 = vmatprep.subr.bf16.mxu0 %v2027_v0 }
 0x2c7   :  { %1787 = vmatpush3.bf16.msra.mxu0 %v2282_v55 }
 0x2c8   :  { %1788 = vmatprep.subr.bf16.mxu0 %v2027_v0 }
 0x2cb   :  { %1789 = vmatpush3.bf16.msra.mxu0 %v2290_v56 }
 0x2cc   :  { %1790 = vmatprep.subr.bf16.mxu0 %v2027_v0 }
 0x2cf   :  { %1791 = vmatpush3.bf16.msra.mxu0 %v2296_v57 }
 0x2d0   :  { %1792 = vmatprep.subr.bf16.mxu0 %v2027_v0 }
 0x2d3   :  { %1793 = vmatpush3.bf16.msra.mxu0 %v2302_v58 }
 0x2d4   :  { %1794 = vmatprep.subr.bf16.mxu0 %v2027_v0 }
 0x2d7   :  { %v1032_v52 = vpop.f32.mrb[24].mxu1  ;;  %1795 = vmatpush3.bf16.msra.mxu0 %v2308_v59 }
 0x2d8   :  { %v1033_v62 = vadd.f32 %v2408_v61, %v1032_v52  ;;  %v1780_v1 = vpop.f32.mrb[25].mxu1  ;;  %1796 = vmatprep.subr.bf16.mxu0 %v2027_v0 }
 0x2d9   :  { %v1035_v2 = vpop.f32.mrb[26].mxu1 }
 0x2da   :  { %v1039_v3 = vadd.f32 %v1038_v63, %v1033_v62  ;;  %v1781_v4 = vpop.f32.mrb[27].mxu1 }
 0x2db   :  { %1797 = vmatpush3.bf16.msra.mxu0 %v2314_v60 }
 0x2dc   :  { %vm1040_vm14 = vcmp.gt.f32.partialorder %v1039_v3, 1.0  ;;  %1822 = vmatprep.subr.bf16.mxu0 %v2027_v0 }
 0x2dd   :  { %vm1335_vm15 = vmpackc.low %vm1040_vm14, %vm1040_vm14 }
 0x2de   :  { %1799 = vmatmul.mubr.msk.bf16.vlgmr.msra.gmra.mrb[28].mxu0 %vm1335_vm15, %v2029_v26 }
 0x2df   :  { %1823 = vmatpush3.bf16.msra.mxu0 %v2267_v53  ;;  %1838 = vmatprep.mubr.msk.bf16.mxu0 %vm2028_vm0, %v2027_v0  ;;  %v2573_v53 = vld [vmem:[%s2638_s6] ss:$0 sm:$0xff]  ;;  %s2030_s6 = smov [#allocation14]  }
 0x2e0   :  { %1824 = vmatprep.subr.bf16.mxu0 %v2027_v0  ;;  %s1212_s10 = sshll.u32 %s2030_s6, 4  ;;  %s1213_s10 = int_to_ptr.vmem [resolvable:$true] %s1212_s10 }
 0x2e1   :  { %s1967_s13 = scalar_lea.vmem %s1213_s10, 1024  ;;  %p1972_p5 = scmp.lt.s32.totalorder %s1213_s10, %s1213_s10 }
 0x2e2   :  { %p1968_p4 = scmp.ne.s32.totalorder %s1213_s10, %s1967_s13  ;;  %p1973_p6 = scmp.lt.s32.totalorder %s1967_s13, %s1967_s13 }
 0x2e3   :  { %1825 = vmatpush3.bf16.msra.mxu0 %v2273_v54 }
 0x2e4   :  { %1826 = vmatprep.subr.bf16.mxu0 %v2027_v0  ;;  %p1974_p7 = por %p1973_p6, %p1972_p5 }
 0x2e6   :  { %p1975_p8 = pnand %p1974_p7, %p1968_p4 }
 0x2e7   :  { %1827 = vmatpush3.bf16.msra.mxu0 %v2282_v55  ;;  %v1333_v55 = vadd.f32 -1.0, %v1039_v3 }
 0x2e8   :  { %1828 = vmatprep.subr.bf16.mxu0 %v2027_v0 }
 0x2eb   :  { %1829 = vmatpush3.bf16.msra.mxu0 %v2290_v56 }
 0x2ec   :  { %1830 = vmatprep.subr.bf16.mxu0 %v2027_v0 }
 0x2ef   :  { %1831 = vmatpush3.bf16.msra.mxu0 %v2296_v57  ;;  %v440_v5 = vpop.f32.mrb[4].mxu0  ;;  %v1042_v57 = vsel %vm1040_vm14, %v1333_v55, %v1039_v3 }
 0x2f0   :  { %v441_v54 = vadd.f32 %v2573_v53, %v440_v5  ;;  %v1560_v6 = vpop.f32.mrb[5].mxu0  ;;  %1832 = vmatprep.subr.bf16.mxu0 %v2027_v0  ;;  %v1145_v13 = vmul.f32 0.9, %v1042_v57 }
 0x2f1   :  { %v443_v7 = vpop.f32.mrb[6].mxu0 }
 0x2f2   :  { %vm448_vm0 = vcmp.gt.f32.partialorder %v441_v54, 1.0  ;;  %v1277_v8 = vadd.f32 -1.0, %v441_v54  ;;  %v1561_v56 = vpop.f32.mrb[7].mxu0 }
 0x2f3   :  { %v1278_v9 = vsel %vm448_vm0, 1.0, %v2027_v0  ;;  %1833 = vmatpush3.bf16.msra.mxu0 %v2302_v58 }
 0x2f4   :  { %v450_v10 = vsel %vm448_vm0, %v1277_v8, %v441_v54  ;;  %453 = vst [vmem:[#allocation14] sm:$0xff] %v1278_v9  ;;  %1834 = vmatprep.subr.bf16.mxu0 %v2027_v0 }
 0x2f5   :  { %454 = vst [vmem:[#allocation15] sm:$0xff] %v450_v10  ;;  %v551_v19 = vmul.f32 0.9, %v450_v10 }
 0x2f7   :  { %v1139_v11 = vpop.f32.mrb[28].mxu1  ;;  %1835 = vmatpush3.bf16.msra.mxu0 %v2308_v59 }
 0x2f8   :  { %v1140_v12 = vadd.f32 %v2408_v61, %v1139_v11  ;;  %v1820_v14 = vpop.f32.mrb[29].mxu1  ;;  %1836 = vmatprep.subr.bf16.mxu0 %v2027_v0 }
 0x2f9   :  { %v1142_v15 = vpop.f32.mrb[30].mxu1 }
 0x2fa   :  { %v1146_v16 = vadd.f32 %v1145_v13, %v1140_v12  ;;  %v1821_v17 = vpop.f32.mrb[31].mxu1 }
 0x2fb   :  { %1837 = vmatpush3.bf16.msra.mxu0 %v2314_v60 }
 0x2fc   :  { %vm1147_vm1 = vcmp.gt.f32.partialorder %v1146_v16, 1.0 }
 0x2fd   :  { %vm1345_vm2 = vmpackc.low %vm1147_vm1, %vm1147_vm1 }
 0x2fe   :  { %1839 = vmatmul.mubr.msk.bf16.vlgmr.msra.gmra.mrb[32].mxu0 %vm1345_vm2, %v2029_v26 }
 0x311   :  { %v545_v58 = vpop.f32.mrb[8].mxu0 }
 0x312   :  { %v546_v18 = vadd.f32 %v2573_v53, %v545_v58  ;;  %v1600_v59 = vpop.f32.mrb[9].mxu0 }
 0x313   :  { %v548_v20 = vpop.f32.mrb[10].mxu0 }
 0x314   :  { %v552_v61 = vadd.f32 %v551_v19, %v546_v18  ;;  %v1601_v21 = vpop.f32.mrb[11].mxu0 }
 0x316   :  { %vm553_vm3 = vcmp.gt.f32.partialorder %v552_v61, 1.0  ;;  %v1287_v22 = vadd.f32 -1.0, %v552_v61 }
 0x317   :  { %v1288_v23 = vsel %vm553_vm3, 1.0, %v2027_v0 }
 0x318   :  { %559 = vst [vmem:[#allocation14 + $0x8] sm:$0xff] %v1288_v23  ;;  %v555_v24 = vsel %vm553_vm3, %v1287_v22, %v552_v61 }
 0x319   :  { %561 = vst [vmem:[#allocation15 + $0x8] sm:$0xff] %v555_v24  ;;  %v658_v27 = vmul.f32 0.9, %v555_v24 }
 0x331   :  { %v652_v60 = vpop.f32.mrb[12].mxu0 }
 0x332   :  { %v653_v25 = vadd.f32 %v2573_v53, %v652_v60  ;;  %v1640_v26 = vpop.f32.mrb[13].mxu0 }
 0x333   :  { %v655_v28 = vpop.f32.mrb[14].mxu0 }
 0x334   :  { %v659_v29 = vadd.f32 %v658_v27, %v653_v25  ;;  %v1641_v30 = vpop.f32.mrb[15].mxu0 }
 0x336   :  { %vm660_vm4 = vcmp.gt.f32.partialorder %v659_v29, 1.0  ;;  %v1297_v31 = vadd.f32 -1.0, %v659_v29 }
 0x337   :  { %v1298_v32 = vsel %vm660_vm4, 1.0, %v2027_v0 }
 0x338   :  { %666 = vst [vmem:[#allocation14 + $0x10] sm:$0xff] %v1298_v32  ;;  %v662_v33 = vsel %vm660_vm4, %v1297_v31, %v659_v29 }
 0x339   :  { %668 = vst [vmem:[#allocation15 + $0x10] sm:$0xff] %v662_v33  ;;  %v765_v36 = vmul.f32 0.9, %v662_v33 }
 0x351   :  { %v759_v34 = vpop.f32.mrb[16].mxu0 }
 0x352   :  { %v760_v35 = vadd.f32 %v2573_v53, %v759_v34  ;;  %v1680_v37 = vpop.f32.mrb[17].mxu0 }
 0x353   :  { %v762_v38 = vpop.f32.mrb[18].mxu0 }
 0x354   :  { %v766_v39 = vadd.f32 %v765_v36, %v760_v35  ;;  %v1681_v40 = vpop.f32.mrb[19].mxu0 }
 0x356   :  { %vm767_vm5 = vcmp.gt.f32.partialorder %v766_v39, 1.0  ;;  %v1307_v41 = vadd.f32 -1.0, %v766_v39 }
 0x357   :  { %v1308_v42 = vsel %vm767_vm5, 1.0, %v2027_v0 }
 0x358   :  { %773 = vst [vmem:[#allocation14 + $0x18] sm:$0xff] %v1308_v42  ;;  %v769_v43 = vsel %vm767_vm5, %v1307_v41, %v766_v39 }
 0x359   :  { %775 = vst [vmem:[#allocation15 + $0x18] sm:$0xff] %v769_v43  ;;  %v872_v46 = vmul.f32 0.9, %v769_v43 }
 0x371   :  { %v866_v44 = vpop.f32.mrb[20].mxu0 }
 0x372   :  { %v867_v45 = vadd.f32 %v2573_v53, %v866_v44  ;;  %v1720_v47 = vpop.f32.mrb[21].mxu0 }
 0x373   :  { %v869_v48 = vpop.f32.mrb[22].mxu0 }
 0x374   :  { %v873_v49 = vadd.f32 %v872_v46, %v867_v45  ;;  %v1721_v50 = vpop.f32.mrb[23].mxu0 }
 0x376   :  { %vm874_vm6 = vcmp.gt.f32.partialorder %v873_v49, 1.0  ;;  %v1317_v51 = vadd.f32 -1.0, %v873_v49 }
 0x377   :  { %v1318_v52 = vsel %vm874_vm6, 1.0, %v2027_v0 }
 0x378   :  { %880 = vst [vmem:[#allocation14 + $0x20] sm:$0xff] %v1318_v52  ;;  %v876_v62 = vsel %vm874_vm6, %v1317_v51, %v873_v49 }
 0x379   :  { %882 = vst [vmem:[#allocation15 + $0x20] sm:$0xff] %v876_v62  ;;  %v979_v2 = vmul.f32 0.9, %v876_v62 }
 0x391   :  { %v973_v63 = vpop.f32.mrb[24].mxu0 }
 0x392   :  { %v974_v1 = vadd.f32 %v2573_v53, %v973_v63  ;;  %v1760_v3 = vpop.f32.mrb[25].mxu0 }
 0x393   :  { %v976_v4 = vpop.f32.mrb[26].mxu0 }
 0x394   :  { %v980_v5 = vadd.f32 %v979_v2, %v974_v1  ;;  %v1761_v54 = vpop.f32.mrb[27].mxu0 }
 0x396   :  { %vm981_vm7 = vcmp.gt.f32.partialorder %v980_v5, 1.0  ;;  %v1327_v6 = vadd.f32 -1.0, %v980_v5 }
 0x397   :  { %v1328_v55 = vsel %vm981_vm7, 1.0, %v2027_v0 }
 0x398   :  { %987 = vst [vmem:[#allocation14 + $0x28] sm:$0xff] %v1328_v55  ;;  %v983_v7 = vsel %vm981_vm7, %v1327_v6, %v980_v5 }
 0x399   :  { %989 = vst [vmem:[#allocation15 + $0x28] sm:$0xff] %v983_v7  ;;  %v1086_v9 = vmul.f32 0.9, %v983_v7 }
 0x3b1   :  { %v1080_v8 = vpop.f32.mrb[28].mxu0 }
 0x3b2   :  { %v1081_v56 = vadd.f32 %v2573_v53, %v1080_v8  ;;  %v1800_v10 = vpop.f32.mrb[29].mxu0 }
 0x3b3   :  { %v1083_v57 = vpop.f32.mrb[30].mxu0 }
 0x3b4   :  { %v1087_v11 = vadd.f32 %v1086_v9, %v1081_v56  ;;  %v1801_v12 = vpop.f32.mrb[31].mxu0 }
 0x3b6   :  { %vm1088_vm8 = vcmp.gt.f32.partialorder %v1087_v11, 1.0  ;;  %v1337_v13 = vadd.f32 -1.0, %v1087_v11 }
 0x3b7   :  { %v1338_v14 = vsel %vm1088_vm8, 1.0, %v2027_v0 }
 0x3b8   :  { %1094 = vst [vmem:[#allocation14 + $0x30] sm:$0xff] %v1338_v14  ;;  %v1090_v15 = vsel %vm1088_vm8, %v1337_v13, %v1087_v11 }
 0x3b9   :  { %1096 = vst [vmem:[#allocation15 + $0x30] sm:$0xff] %v1090_v15  ;;  %v1193_v58 = vmul.f32 0.9, %v1090_v15 }
 0x3d1   :  { %v1187_v16 = vpop.f32.mrb[32].mxu0 }
 0x3d2   :  { %v1188_v17 = vadd.f32 %v2573_v53, %v1187_v16  ;;  %v1840_v18 = vpop.f32.mrb[33].mxu0 }
 0x3d3   :  { %v1190_v19 = vpop.f32.mrb[34].mxu0 }
 0x3d4   :  { %v1194_v59 = vadd.f32 %v1193_v58, %v1188_v17  ;;  %v1841_v20 = vpop.f32.mrb[35].mxu0 }
 0x3d6   :  { %vm1195_vm9 = vcmp.gt.f32.partialorder %v1194_v59, 1.0  ;;  %v1347_v61 = vadd.f32 -1.0, %v1194_v59 }
 0x3d7   :  { %v1348_v21 = vsel %vm1195_vm9, 1.0, %v2027_v0 }
 0x3d8   :  { %v1197_v22 = vsel %vm1195_vm9, %v1347_v61, %v1194_v59  ;;  %1201 = vst [vmem:[#allocation14 + $0x38] sm:$0xff] %v1348_v21 }
 0x3d9   :  { %1203 = vst [vmem:[#allocation15 + $0x38] sm:$0xff] %v1197_v22 }
 0x3da   :  { %1978 = shalt.err (!%p1975_p8)
}
 0x3db   :  { %s1979_s18 = scalar_lea.hbm %s2639_s7, 1024 }
 0x3dc   :  { %p1980_p9 = scmp.ne.s32.totalorder %s2639_s7, %s1979_s18  ;;  %p1983_p10 = scmp.lt.u32.totalorder %s1979_s18, %s2639_s7 }
 0x3de   :  { %p1985_p11 = pnand %p1983_p10, %p1980_p9 }
 0x3e0   :  { %1988 = shalt.err (!%p1985_p11)
}
 0x3e1   :  { %s2032_s23 = smov 128   ;;  %s2033_s24 = smov 8  }
 0x3e2   :  { %1218 = dma.vmem_to_hbm [thread:$0]  %s1213_s10, 1024, %s2639_s7, [#allocation8], %s2032_s23, %s2032_s23, %s2033_s24  }
 0x3e3   :  { %s1989_s27 = scalar_lea.vmem %s2601_s12, 1024  ;;  %p1994_p13 = scmp.lt.s32.totalorder %s2601_s12, %s2601_s12 }
 0x3e4   :  { %p1990_p12 = scmp.ne.s32.totalorder %s2601_s12, %s1989_s27  ;;  %p1995_p0 = scmp.lt.s32.totalorder %s1989_s27, %s1989_s27 }
 0x3e6   :  { %p1996_p1 = por %p1995_p0, %p1994_p13 }
 0x3e8   :  { %p1997_p2 = pnand %p1996_p1, %p1990_p12 }
 0x3ea   :  { %2000 = shalt.err (!%p1997_p2)
}
 0x3eb   :  { %s2001_s1 = scalar_lea.hbm %s2640_s8, 1024 }
 0x3ec   :  { %p2002_p3 = scmp.ne.s32.totalorder %s2640_s8, %s2001_s1  ;;  %p2005_p4 = scmp.lt.u32.totalorder %s2001_s1, %s2640_s8 }
 0x3ee   :  { %p2007_p5 = pnand %p2005_p4, %p2002_p3 }
 0x3f0   :  { %2010 = shalt.err (!%p2007_p5)
}
 0x3f1   :  { %1230 = dma.vmem_to_hbm [thread:$0]  %s2601_s12, 1024, %s2640_s8, [#allocation16], %s2032_s23, %s2032_s23, %s2033_s24  }
 0x3f2   :  { %2017 = dma.done.wait [#allocation8], 1024  }
 0x3f3   :  { %2018 = vsyncadd [#allocation8], 4294966272 }
 0x3f4   :  { %2019 = dma.done.wait [#allocation16], 1024  }
 0x3f5   :  { %2020 = vsyncadd [#allocation16], 4294966272 }
 0x3f6   :  { %1237 = vsyncpa [#allocation7], 1 }
 0x3f7   :  { %1238 = vsyncpa [#allocation10], 1 }
 0x3f8   :  { %1239 = vsyncpa [#allocation13], 1 }
 0x3f9   :  { %1240 = vsyncpa [#allocation8], 1 }
 0x3fa   :  { %1241 = vsyncpa [#allocation16], 1 }

// kernel: tpu_custom_call.1
= control target key start
LH: loop header
LB: loop body
LE: loop exit
PB: predicated region body
PF: predicated region fallthrough
CT: control target
= control target key end

     0   :  { %14 = vsyncpa [#allocation7], 0  ;;  %s2632_s0 = inlined_call_operand.hbm [shape: bf16[8,128], index: 0, kind: input, shape index: {}]   ;;  %s2633_s1 = inlined_call_operand.hbm [shape: bf16[128,128], index: 1, kind: input, shape index: {}]   ;;  %s2634_s2 = inlined_call_operand.vmem [shape: f32[1,128], index: 2, kind: input, shape index: {}]   ;;  %s2635_s3 = inlined_call_operand.hbm [shape: bf16[128,128], index: 3, kind: input, shape index: {}]   ;;  %s2636_s4 = inlined_call_operand.vmem [shape: f32[1,128], index: 4, kind: input, shape index: {}]   ;;  %s2637_s5 = inlined_call_operand.hbm [shape: bf16[128,128], index: 5, kind: input, shape index: {}]   ;;  %s2638_s6 = inlined_call_operand.vmem [shape: f32[1,128], index: 6, kind: input, shape index: {}]   ;;  %s2639_s7 = inlined_call_operand.hbm [shape: f32[8,8,128], index: 7, kind: output, shape index: {0}]   ;;  %s2640_s8 = inlined_call_operand.hbm [shape: f32[8,8,128], index: 8, kind: output, shape index: {1}]  }
   0x1   :  { %15 = vsyncpa [#allocation10], 0 }
   0x2   :  { %16 = vsyncpa [#allocation13], 0 }
   0x3   :  { %17 = vsyncpa [#allocation8], 0 }
   0x4   :  { %18 = vsyncpa [#allocation16], 0  ;;  %s2021_s27 = smov [#allocation9]   ;;  %s1879_s9 = scalar_lea.hbm %s2633_s1, 1024 }
   0x5   :  { %s34_s28 = sshll.u32 %s2021_s27, 4  ;;  %p1880_p0 = scmp.ne.s32.totalorder %s2633_s1, %s1879_s9  ;;  %s35_s28 = int_to_ptr.vmem [resolvable:$true] %s34_s28 }
   0x6   :  { %p1883_p1 = scmp.lt.u32.totalorder %s1879_s9, %s2633_s1 }
   0x8   :  { %p1885_p2 = pnand %p1883_p1, %p1880_p0 }
   0xa   :  { %1888 = shalt.err (!%p1885_p2)
}
   0xb   :  { %s1889_s14 = scalar_lea.vmem %s35_s28, 1024  ;;  %p1894_p4 = scmp.lt.s32.totalorder %s35_s28, %s35_s28 }
   0xc   :  { %p1890_p3 = scmp.ne.s32.totalorder %s35_s28, %s1889_s14  ;;  %p1895_p5 = scmp.lt.s32.totalorder %s1889_s14, %s1889_s14 }
   0xe   :  { %p1896_p6 = por %p1895_p5, %p1894_p4 }
  0x10   :  { %p1897_p7 = pnand %p1896_p6, %p1890_p3 }
  0x12   :  { %1900 = shalt.err (!%p1897_p7)
}
  0x13   :  { %s2022_s15 = smov 64   ;;  %s2023_s16 = smov 4  }
  0x14   :  { %40 = dma.hbm_to_vmem [thread:$0]  %s2633_s1, 1024, %s35_s28, [#allocation10], %s2022_s15, %s2022_s15, %s2023_s16  }
  0x15   :  { %s2024_s19 = smov [#allocation6]   ;;  %s2025_s21 = smov [#allocation11]  }
  0x16   :  { %s25_s20 = sshll.u32 %s2024_s19, 4  ;;  %s48_s22 = sshll.u32 %s2025_s21, 4  ;;  %s26_s20 = int_to_ptr.vmem [resolvable:$true] %s25_s20  ;;  %s49_s22 = int_to_ptr.vmem [resolvable:$true] %s48_s22 }
  0x17   :  { %s1901_s25 = scalar_lea.hbm %s2632_s0, 64 }
  0x18   :  { %p1902_p8 = scmp.ne.s32.totalorder %s2632_s0, %s1901_s25  ;;  %p1905_p9 = scmp.lt.u32.totalorder %s1901_s25, %s2632_s0 }
  0x1a   :  { %p1907_p10 = pnand %p1905_p9, %p1902_p8 }
  0x1c   :  { %1910 = shalt.err (!%p1907_p10)
}
  0x1d   :  { %s1911_s1 = scalar_lea.vmem %s26_s20, 64  ;;  %p1916_p12 = scmp.lt.s32.totalorder %s26_s20, %s26_s20 }
  0x1e   :  { %p1912_p11 = scmp.ne.s32.totalorder %s26_s20, %s1911_s1  ;;  %p1917_p13 = scmp.lt.s32.totalorder %s1911_s1, %s1911_s1 }
  0x20   :  { %p1918_p0 = por %p1917_p13, %p1916_p12 }
  0x22   :  { %p1919_p1 = pnand %p1918_p0, %p1912_p11 }
  0x24   :  { %1922 = shalt.err (!%p1919_p1)
}
  0x25   :  { %28 = dma.hbm_to_vmem [thread:$0]  %s2632_s0, 64, %s26_s20, [#allocation7]  }
  0x26   :  { %s1923_s12 = scalar_lea.hbm %s2635_s3, 1024 }
  0x27   :  { %p1924_p2 = scmp.ne.s32.totalorder %s2635_s3, %s1923_s12  ;;  %p1927_p3 = scmp.lt.u32.totalorder %s1923_s12, %s2635_s3 }
  0x29   :  { %p1929_p4 = pnand %p1927_p3, %p1924_p2 }
  0x2b   :  { %1932 = shalt.err (!%p1929_p4)
}
  0x2c   :  { %s1933_s19 = scalar_lea.vmem %s49_s22, 1024  ;;  %p1938_p6 = scmp.lt.s32.totalorder %s49_s22, %s49_s22 }
  0x2d   :  { %p1934_p5 = scmp.ne.s32.totalorder %s49_s22, %s1933_s19  ;;  %p1939_p7 = scmp.lt.s32.totalorder %s1933_s19, %s1933_s19 }
  0x2f   :  { %p1940_p8 = por %p1939_p7, %p1938_p6 }
  0x31   :  { %p1941_p9 = pnand %p1940_p8, %p1934_p5 }
  0x33   :  { %1944 = shalt.err (!%p1941_p9)
}
  0x34   :  { %54 = dma.hbm_to_vmem [thread:$0]  %s2635_s3, 1024, %s49_s22, [#allocation10], %s2022_s15, %s2022_s15, %s2023_s16  }
  0x35   :  { %s2026_s21 = smov [#allocation12]   ;;  %s1945_s26 = scalar_lea.hbm %s2637_s5, 1024 }
  0x36   :  { %s62_s23 = sshll.u32 %s2026_s21, 4  ;;  %p1946_p10 = scmp.ne.s32.totalorder %s2637_s5, %s1945_s26  ;;  %s63_s23 = int_to_ptr.vmem [resolvable:$true] %s62_s23 }
  0x37   :  { %p1949_p11 = scmp.lt.u32.totalorder %s1945_s26, %s2637_s5 }
  0x39   :  { %p1951_p12 = pnand %p1949_p11, %p1946_p10 }
  0x3b   :  { %1954 = shalt.err (!%p1951_p12)
}
  0x3c   :  { %s1955_s28 = scalar_lea.vmem %s63_s23, 1024  ;;  %p1960_p0 = scmp.lt.s32.totalorder %s63_s23, %s63_s23 }
  0x3d   :  { %p1956_p13 = scmp.ne.s32.totalorder %s63_s23, %s1955_s28  ;;  %p1961_p1 = scmp.lt.s32.totalorder %s1955_s28, %s1955_s28 }
  0x3f   :  { %p1962_p2 = por %p1961_p1, %p1960_p0 }
  0x41   :  { %p1963_p3 = pnand %p1962_p2, %p1956_p13 }
  0x43   :  { %1966 = shalt.err (!%p1963_p3)
}
  0x44   :  { %68 = dma.hbm_to_vmem [thread:$0]  %s2637_s5, 1024, %s63_s23, [#allocation13], %s2022_s15, %s2022_s15, %s2023_s16  }
  0x45   :  { %2011 = dma.done.wait [#allocation7], 64  }
  0x46   :  { %2012 = vsyncadd [#allocation7], 4294967232 }
  0x47   :  { %2013 = dma.done.wait [#allocation10], 2048  }
  0x48   :  { %2014 = vsyncadd [#allocation10], 4294965248 }
  0x49   :  { %2015 = dma.done.wait [#allocation13], 1024  }
  0x4a   :  { %2016 = vsyncadd [#allocation13], 4294966272  ;;  %v2027_v0 = vmov 0.0   ;;  %vm2028_vm0 = vmmov 0   ;;  %v1855_v1 = vld [vmem:[#allocation9] sm:$0xff]   ;;  %v1856_v2 = vld [vmem:[#allocation9 + $0x8] sm:$0xff]  }
  0x4b   :  { %1502 = vmatprep.subr.bf16.mxu0 %v2027_v0  ;;  %1518 = vmatprep.mubr.msk.bf16.mxu0 %vm2028_vm0, %v2027_v0  ;;  %v1857_v3 = vld [vmem:[#allocation9 + $0x10] sm:$0xff]   ;;  %v2144_v4 = vld [vmem:[#allocation11] sm:$0xff]   ;;  %v1858_v5 = vld [vmem:[#allocation9 + $0x18] sm:$0xff]   ;;  %v2029_v26 = vmov 1.0|1.0   ;;  %s2031_s11 = smov [#allocation15]  }
  0x4c   :  { %1522 = vmatprep.subr.bf16.mxu1 %v2027_v0  ;;  %1538 = vmatprep.mubr.msk.bf16.mxu1 %vm2028_vm0, %v2027_v0  ;;  %v2148_v6 = vld [vmem:[#allocation11 + $0x8] sm:$0xff]   ;;  %v1859_v7 = vld [vmem:[#allocation9 + $0x20] sm:$0xff]   ;;  %v2153_v8 = vld [vmem:[#allocation11 + $0x10] sm:$0xff]   ;;  %s1224_s12 = sshll.u32 %s2031_s11, 4  ;;  %s2601_s12 = int_to_ptr.vmem [resolvable:$true] %s1224_s12 }
  0x4d   :  { %1503 = vmatpush3.bf16.msra.mxu0 %v1855_v1  ;;  %1523 = vmatpush3.bf16.msra.mxu1 %v2144_v4  ;;  %v1860_v9 = vld [vmem:[#allocation9 + $0x28] sm:$0xff]   ;;  %v2156_v10 = vld [vmem:[#allocation11 + $0x18] sm:$0xff]   ;;  %v1861_v11 = vld [vmem:[#allocation9 + $0x30] sm:$0xff]  }
  0x4e   :  { %1504 = vmatprep.subr.bf16.mxu0 %v2027_v0  ;;  %1524 = vmatprep.subr.bf16.mxu1 %v2027_v0  ;;  %v2163_v12 = vld [vmem:[#allocation11 + $0x20] sm:$0xff]   ;;  %v1862_v13 = vld [vmem:[#allocation9 + $0x38] sm:$0xff]   ;;  %v2168_v14 = vld [vmem:[#allocation11 + $0x28] sm:$0xff]  }
  0x4f   :  { %v88_v15 = vld [vmem:[#allocation6] sm:$0xf]  ;;  %v2172_v16 = vld [vmem:[#allocation11 + $0x30] sm:$0xff]   ;;  %v2267_v53 = vld [vmem:[#allocation12] sm:$0xff]  }
  0x50   :  { %v2180_v17 = vld [vmem:[#allocation11 + $0x38] sm:$0xff]   ;;  %v2273_v54 = vld [vmem:[#allocation12 + $0x8] sm:$0xff]   ;;  %v2282_v55 = vld [vmem:[#allocation12 + $0x10] sm:$0xff]  }
  0x51   :  { %1505 = vmatpush3.bf16.msra.mxu0 %v1856_v2  ;;  %1525 = vmatpush3.bf16.msra.mxu1 %v2148_v6  ;;  %v1242_v18 = vld [vmem:[%s2634_s2] ss:$0 sm:$0xff]  ;;  %v2296_v57 = vld [vmem:[#allocation12 + $0x20] sm:$0xff]   ;;  %v2302_v58 = vld [vmem:[#allocation12 + $0x28] sm:$0xff]  }
  0x52   :  { %1506 = vmatprep.subr.bf16.mxu0 %v2027_v0  ;;  %1526 = vmatprep.subr.bf16.mxu1 %v2027_v0  ;;  %v2290_v56 = vld [vmem:[#allocation12 + $0x18] sm:$0xff]   ;;  %v2308_v59 = vld [vmem:[#allocation12 + $0x30] sm:$0xff]  }
  0x53   :  { %v2314_v60 = vld [vmem:[#allocation12 + $0x38] sm:$0xff]  }
  0x54   :  { %v2408_v61 = vld [vmem:[%s2636_s4] ss:$0 sm:$0xff] }
  0x55   :  { %1507 = vmatpush3.bf16.msra.mxu0 %v1857_v3  ;;  %1527 = vmatpush3.bf16.msra.mxu1 %v2153_v8 }
  0x56   :  { %1508 = vmatprep.subr.bf16.mxu0 %v2027_v0  ;;  %1528 = vmatprep.subr.bf16.mxu1 %v2027_v0 }
  0x59   :  { %1509 = vmatpush3.bf16.msra.mxu0 %v1858_v5  ;;  %1529 = vmatpush3.bf16.msra.mxu1 %v2156_v10 }
  0x5a   :  { %1510 = vmatprep.subr.bf16.mxu0 %v2027_v0  ;;  %1530 = vmatprep.subr.bf16.mxu1 %v2027_v0 }
  0x5d   :  { %1511 = vmatpush3.bf16.msra.mxu0 %v1859_v7  ;;  %1531 = vmatpush3.bf16.msra.mxu1 %v2163_v12 }
  0x5e   :  { %1512 = vmatprep.subr.bf16.mxu0 %v2027_v0  ;;  %1532 = vmatprep.subr.bf16.mxu1 %v2027_v0 }
  0x61   :  { %1513 = vmatpush3.bf16.msra.mxu0 %v1860_v9  ;;  %1533 = vmatpush3.bf16.msra.mxu1 %v2168_v14 }
  0x62   :  { %1514 = vmatprep.subr.bf16.mxu0 %v2027_v0  ;;  %1534 = vmatprep.subr.bf16.mxu1 %v2027_v0 }
  0x65   :  { %1515 = vmatpush3.bf16.msra.mxu0 %v1861_v11  ;;  %1535 = vmatpush3.bf16.msra.mxu1 %v2172_v16 }
  0x66   :  { %1516 = vmatprep.subr.bf16.mxu0 %v2027_v0  ;;  %1536 = vmatprep.subr.bf16.mxu1 %v2027_v0 }
  0x69   :  { %1517 = vmatpush3.bf16.msra.mxu0 %v1862_v13  ;;  %1537 = vmatpush3.bf16.msra.mxu1 %v2180_v17 }
  0x6a   :  { %1542 = vmatprep.subr.bf16.mxu0 %v2027_v0  ;;  %1562 = vmatprep.subr.bf16.mxu1 %v2027_v0 }
  0x6c   :  { %1519 = vmatmul.mubr.bf16.vlgmr.msra.gmra.mrb[0].mxu0 %v88_v15 }
  0x6d   :  { %1558 = vmatprep.mubr.msk.bf16.mxu0 %vm2028_vm0, %v2027_v0  ;;  %1543 = vmatpush3.bf16.msra.mxu0 %v2267_v53 }
  0x6e   :  { %1544 = vmatprep.subr.bf16.mxu0 %v2027_v0 }
  0x71   :  { %1545 = vmatpush3.bf16.msra.mxu0 %v2273_v54 }
  0x72   :  { %1546 = vmatprep.subr.bf16.mxu0 %v2027_v0 }
  0x75   :  { %1547 = vmatpush3.bf16.msra.mxu0 %v2282_v55 }
  0x76   :  { %1548 = vmatprep.subr.bf16.mxu0 %v2027_v0 }
  0x79   :  { %1549 = vmatpush3.bf16.msra.mxu0 %v2290_v56 }
  0x7a   :  { %1550 = vmatprep.subr.bf16.mxu0 %v2027_v0 }
  0x7d   :  { %1551 = vmatpush3.bf16.msra.mxu0 %v2296_v57 }
  0x7e   :  { %1552 = vmatprep.subr.bf16.mxu0 %v2027_v0 }
  0x81   :  { %1553 = vmatpush3.bf16.msra.mxu0 %v2302_v58 }
  0x82   :  { %1554 = vmatprep.subr.bf16.mxu0 %v2027_v0 }
  0x85   :  { %1555 = vmatpush3.bf16.msra.mxu0 %v2308_v59 }
  0x86   :  { %1556 = vmatprep.subr.bf16.mxu0 %v2027_v0 }
  0x89   :  { %1557 = vmatpush3.bf16.msra.mxu0 %v2314_v60 }
  0x8a   :  { %1582 = vmatprep.subr.bf16.mxu0 %v2027_v0 }
 0x13f   :  { %v194_v19 = vpop.f32.mrb[0].mxu0 }
 0x140   :  { %v2187_v20 = vadd.f32 %v1242_v18, %v194_v19  ;;  %v1520_v21 = vpop.f32.mrb[1].mxu0 }
 0x141   :  { %v197_v22 = vpop.f32.mrb[2].mxu0 }
 0x142   :  { %v1521_v23 = vpop.f32.mrb[3].mxu0  ;;  %vm244_vm1 = vcmp.gt.f32.partialorder %v2187_v20, 1.0  ;;  %v1251_v24 = vadd.f32 -1.0, %v2187_v20 }
 0x143   :  { %vm1262_vm2 = vmpackc.low %vm244_vm1, %vm244_vm1 }
 0x144   :  { %v246_v25 = vsel %vm244_vm1, %v1251_v24, %v2187_v20  ;;  %1539 = vmatmul.mubr.msk.bf16.vlgmr.msra.gmra.mrb[0].mxu1 %vm1262_vm2, %v2029_v26 }
 0x145   :  { %v455_v27 = vmul.f32 0.9, %v246_v25  ;;  %1563 = vmatpush3.bf16.msra.mxu1 %v2144_v4  ;;  %1578 = vmatprep.mubr.msk.bf16.mxu1 %vm2028_vm0, %v2027_v0 }
 0x146   :  { %1564 = vmatprep.subr.bf16.mxu1 %v2027_v0 }
 0x147   :  { %v456_v28 = vadd.f32 %v455_v27, %v2187_v20 }
 0x149   :  { %1565 = vmatpush3.bf16.msra.mxu1 %v2148_v6  ;;  %vm457_vm3 = vcmp.gt.f32.partialorder %v456_v28, 1.0  ;;  %v1279_v29 = vadd.f32 -1.0, %v456_v28 }
 0x14a   :  { %1566 = vmatprep.subr.bf16.mxu1 %v2027_v0  ;;  %vm1281_vm7 = vmpackc.low %vm457_vm3, %vm457_vm3 }
 0x14b   :  { %v459_v30 = vsel %vm457_vm3, %v1279_v29, %v456_v28 }
 0x14c   :  { %v562_v31 = vmul.f32 0.9, %v459_v30 }
 0x14d   :  { %1567 = vmatpush3.bf16.msra.mxu1 %v2153_v8 }
 0x14e   :  { %1568 = vmatprep.subr.bf16.mxu1 %v2027_v0  ;;  %v563_v32 = vadd.f32 %v562_v31, %v2187_v20 }
 0x150   :  { %vm564_vm4 = vcmp.gt.f32.partialorder %v563_v32, 1.0  ;;  %v1289_v33 = vadd.f32 -1.0, %v563_v32 }
 0x151   :  { %1569 = vmatpush3.bf16.msra.mxu1 %v2156_v10  ;;  %vm1291_vm10 = vmpackc.low %vm564_vm4, %vm564_vm4 }
 0x152   :  { %1570 = vmatprep.subr.bf16.mxu1 %v2027_v0  ;;  %v566_v34 = vsel %vm564_vm4, %v1289_v33, %v563_v32 }
 0x153   :  { %v669_v35 = vmul.f32 0.9, %v566_v34 }
 0x155   :  { %1571 = vmatpush3.bf16.msra.mxu1 %v2163_v12  ;;  %v2209_v36 = vadd.f32 %v669_v35, %v2187_v20 }
 0x156   :  { %1572 = vmatprep.subr.bf16.mxu1 %v2027_v0 }
 0x157   :  { %vm671_vm5 = vcmp.gt.f32.partialorder %v2209_v36, 1.0  ;;  %v1299_v37 = vadd.f32 -1.0, %v2209_v36 }
 0x158   :  { %vm1301_vm11 = vmpackc.low %vm671_vm5, %vm671_vm5 }
 0x159   :  { %1573 = vmatpush3.bf16.msra.mxu1 %v2168_v14  ;;  %v673_v38 = vsel %vm671_vm5, %v1299_v37, %v2209_v36 }
 0x15a   :  { %1574 = vmatprep.subr.bf16.mxu1 %v2027_v0  ;;  %v776_v39 = vmul.f32 0.9, %v673_v38 }
 0x15c   :  { %v2220_v40 = vadd.f32 %v776_v39, %v2187_v20 }
 0x15d   :  { %1575 = vmatpush3.bf16.msra.mxu1 %v2172_v16 }
 0x15e   :  { %1576 = vmatprep.subr.bf16.mxu1 %v2027_v0  ;;  %vm778_vm6 = vcmp.gt.f32.partialorder %v2220_v40, 1.0  ;;  %v1309_v41 = vadd.f32 -1.0, %v2220_v40 }
 0x15f   :  { %vm1311_vm12 = vmpackc.low %vm778_vm6, %vm778_vm6 }
 0x160   :  { %v780_v42 = vsel %vm778_vm6, %v1309_v41, %v2220_v40 }
 0x161   :  { %1577 = vmatpush3.bf16.msra.mxu1 %v2180_v17  ;;  %v883_v43 = vmul.f32 0.9, %v780_v42 }
 0x162   :  { %1602 = vmatprep.subr.bf16.mxu1 %v2027_v0 }
 0x163   :  { %v2234_v44 = vadd.f32 %v883_v43, %v2187_v20 }
 0x164   :  { %1579 = vmatmul.mubr.msk.bf16.vlgmr.msra.gmra.mrb[4].mxu1 %vm1281_vm7, %v2029_v26 }
 0x165   :  { %1603 = vmatpush3.bf16.msra.mxu1 %v2144_v4  ;;  %1618 = vmatprep.mubr.msk.bf16.mxu1 %vm2028_vm0, %v2027_v0  ;;  %vm885_vm8 = vcmp.gt.f32.partialorder %v2234_v44, 1.0  ;;  %v1319_v45 = vadd.f32 -1.0, %v2234_v44 }
 0x166   :  { %1604 = vmatprep.subr.bf16.mxu1 %v2027_v0  ;;  %vm1321_vm13 = vmpackc.low %vm885_vm8, %vm885_vm8 }
 0x167   :  { %v887_v46 = vsel %vm885_vm8, %v1319_v45, %v2234_v44 }
 0x168   :  { %v990_v47 = vmul.f32 0.9, %v887_v46 }
 0x169   :  { %1605 = vmatpush3.bf16.msra.mxu1 %v2148_v6 }
 0x16a   :  { %1606 = vmatprep.subr.bf16.mxu1 %v2027_v0  ;;  %v2249_v48 = vadd.f32 %v990_v47, %v2187_v20 }
 0x16c   :  { %vm992_vm9 = vcmp.gt.f32.partialorder %v2249_v48, 1.0  ;;  %v1329_v49 = vadd.f32 -1.0, %v2249_v48 }
 0x16d   :  { %1607 = vmatpush3.bf16.msra.mxu1 %v2153_v8  ;;  %vm1331_vm14 = vmpackc.low %vm992_vm9, %vm992_vm9 }
 0x16e   :  { %1608 = vmatprep.subr.bf16.mxu1 %v2027_v0  ;;  %v994_v50 = vsel %vm992_vm9, %v1329_v49, %v2249_v48 }
 0x16f   :  { %v1097_v51 = vmul.f32 0.9, %v994_v50 }
 0x171   :  { %1609 = vmatpush3.bf16.msra.mxu1 %v2156_v10  ;;  %v2260_v52 = vadd.f32 %v1097_v51, %v2187_v20 }
 0x172   :  { %1610 = vmatprep.subr.bf16.mxu1 %v2027_v0 }
 0x173   :  { %vm1099_vm2 = vcmp.gt.f32.partialorder %v2260_v52, 1.0 }
 0x174   :  { %vm1341_vm3 = vmpackc.low %vm1099_vm2, %vm1099_vm2 }
 0x175   :  { %1611 = vmatpush3.bf16.msra.mxu1 %v2163_v12 }
 0x176   :  { %1612 = vmatprep.subr.bf16.mxu1 %v2027_v0 }
 0x179   :  { %1613 = vmatpush3.bf16.msra.mxu1 %v2168_v14 }
 0x17a   :  { %1614 = vmatprep.subr.bf16.mxu1 %v2027_v0 }
 0x17d   :  { %1615 = vmatpush3.bf16.msra.mxu1 %v2172_v16 }
 0x17e   :  { %1616 = vmatprep.subr.bf16.mxu1 %v2027_v0 }
 0x181   :  { %1617 = vmatpush3.bf16.msra.mxu1 %v2180_v17 }
 0x182   :  { %1642 = vmatprep.subr.bf16.mxu1 %v2027_v0 }
 0x184   :  { %1619 = vmatmul.mubr.msk.bf16.vlgmr.msra.gmra.mrb[8].mxu1 %vm1291_vm10, %v2029_v26 }
 0x185   :  { %1643 = vmatpush3.bf16.msra.mxu1 %v2144_v4  ;;  %1658 = vmatprep.mubr.msk.bf16.mxu1 %vm2028_vm0, %v2027_v0 }
 0x186   :  { %1644 = vmatprep.subr.bf16.mxu1 %v2027_v0 }
 0x189   :  { %1645 = vmatpush3.bf16.msra.mxu1 %v2148_v6 }
 0x18a   :  { %1646 = vmatprep.subr.bf16.mxu1 %v2027_v0 }
 0x18d   :  { %1647 = vmatpush3.bf16.msra.mxu1 %v2153_v8 }
 0x18e   :  { %1648 = vmatprep.subr.bf16.mxu1 %v2027_v0 }
 0x191   :  { %1649 = vmatpush3.bf16.msra.mxu1 %v2156_v10 }
 0x192   :  { %1650 = vmatprep.subr.bf16.mxu1 %v2027_v0 }
 0x195   :  { %1651 = vmatpush3.bf16.msra.mxu1 %v2163_v12 }
 0x196   :  { %1652 = vmatprep.subr.bf16.mxu1 %v2027_v0 }
 0x199   :  { %1653 = vmatpush3.bf16.msra.mxu1 %v2168_v14 }
 0x19a   :  { %1654 = vmatprep.subr.bf16.mxu1 %v2027_v0 }
 0x19d   :  { %1655 = vmatpush3.bf16.msra.mxu1 %v2172_v16 }
 0x19e   :  { %1656 = vmatprep.subr.bf16.mxu1 %v2027_v0 }
 0x1a1   :  { %1657 = vmatpush3.bf16.msra.mxu1 %v2180_v17 }
 0x1a2   :  { %1682 = vmatprep.subr.bf16.mxu1 %v2027_v0 }
 0x1a4   :  { %1659 = vmatmul.mubr.msk.bf16.vlgmr.msra.gmra.mrb[12].mxu1 %vm1301_vm11, %v2029_v26 }
 0x1a5   :  { %1683 = vmatpush3.bf16.msra.mxu1 %v2144_v4  ;;  %1698 = vmatprep.mubr.msk.bf16.mxu1 %vm2028_vm0, %v2027_v0 }
 0x1a6   :  { %1684 = vmatprep.subr.bf16.mxu1 %v2027_v0 }
 0x1a9   :  { %1685 = vmatpush3.bf16.msra.mxu1 %v2148_v6 }
 0x1aa   :  { %1686 = vmatprep.subr.bf16.mxu1 %v2027_v0 }
 0x1ad   :  { %1687 = vmatpush3.bf16.msra.mxu1 %v2153_v8 }
 0x1ae   :  { %1688 = vmatprep.subr.bf16.mxu1 %v2027_v0 }
 0x1b1   :  { %1689 = vmatpush3.bf16.msra.mxu1 %v2156_v10 }
 0x1b2   :  { %1690 = vmatprep.subr.bf16.mxu1 %v2027_v0 }
 0x1b5   :  { %1691 = vmatpush3.bf16.msra.mxu1 %v2163_v12 }
 0x1b6   :  { %1692 = vmatprep.subr.bf16.mxu1 %v2027_v0 }
 0x1b9   :  { %1693 = vmatpush3.bf16.msra.mxu1 %v2168_v14 }
 0x1ba   :  { %1694 = vmatprep.subr.bf16.mxu1 %v2027_v0 }
 0x1bd   :  { %1695 = vmatpush3.bf16.msra.mxu1 %v2172_v16 }
 0x1be   :  { %1696 = vmatprep.subr.bf16.mxu1 %v2027_v0 }
 0x1c1   :  { %1697 = vmatpush3.bf16.msra.mxu1 %v2180_v17 }
 0x1c2   :  { %1722 = vmatprep.subr.bf16.mxu1 %v2027_v0 }
 0x1c4   :  { %1699 = vmatmul.mubr.msk.bf16.vlgmr.msra.gmra.mrb[16].mxu1 %vm1311_vm12, %v2029_v26 }
 0x1c5   :  { %1723 = vmatpush3.bf16.msra.mxu1 %v2144_v4  ;;  %1738 = vmatprep.mubr.msk.bf16.mxu1 %vm2028_vm0, %v2027_v0 }
 0x1c6   :  { %1724 = vmatprep.subr.bf16.mxu1 %v2027_v0 }
 0x1c9   :  { %1725 = vmatpush3.bf16.msra.mxu1 %v2148_v6 }
 0x1ca   :  { %1726 = vmatprep.subr.bf16.mxu1 %v2027_v0 }
 0x1cd   :  { %1727 = vmatpush3.bf16.msra.mxu1 %v2153_v8 }
 0x1ce   :  { %1728 = vmatprep.subr.bf16.mxu1 %v2027_v0 }
 0x1d1   :  { %1729 = vmatpush3.bf16.msra.mxu1 %v2156_v10 }
 0x1d2   :  { %1730 = vmatprep.subr.bf16.mxu1 %v2027_v0 }
 0x1d5   :  { %1731 = vmatpush3.bf16.msra.mxu1 %v2163_v12 }
 0x1d6   :  { %1732 = vmatprep.subr.bf16.mxu1 %v2027_v0 }
 0x1d9   :  { %1733 = vmatpush3.bf16.msra.mxu1 %v2168_v14 }
 0x1da   :  { %1734 = vmatprep.subr.bf16.mxu1 %v2027_v0 }
 0x1dd   :  { %1735 = vmatpush3.bf16.msra.mxu1 %v2172_v16 }
 0x1de   :  { %1736 = vmatprep.subr.bf16.mxu1 %v2027_v0 }
 0x1e1   :  { %1737 = vmatpush3.bf16.msra.mxu1 %v2180_v17 }
 0x1e2   :  { %1762 = vmatprep.subr.bf16.mxu1 %v2027_v0 }
 0x1e4   :  { %1739 = vmatmul.mubr.msk.bf16.vlgmr.msra.gmra.mrb[20].mxu1 %vm1321_vm13, %v2029_v26 }
 0x1e5   :  { %1763 = vmatpush3.bf16.msra.mxu1 %v2144_v4  ;;  %1778 = vmatprep.mubr.msk.bf16.mxu1 %vm2028_vm0, %v2027_v0 }
 0x1e6   :  { %1764 = vmatprep.subr.bf16.mxu1 %v2027_v0 }
 0x1e9   :  { %1765 = vmatpush3.bf16.msra.mxu1 %v2148_v6 }
 0x1ea   :  { %1766 = vmatprep.subr.bf16.mxu1 %v2027_v0 }
 0x1ed   :  { %1767 = vmatpush3.bf16.msra.mxu1 %v2153_v8 }
 0x1ee   :  { %1768 = vmatprep.subr.bf16.mxu1 %v2027_v0 }
 0x1f1   :  { %1769 = vmatpush3.bf16.msra.mxu1 %v2156_v10 }
 0x1f2   :  { %1770 = vmatprep.subr.bf16.mxu1 %v2027_v0 }
 0x1f5   :  { %1771 = vmatpush3.bf16.msra.mxu1 %v2163_v12 }
 0x1f6   :  { %1772 = vmatprep.subr.bf16.mxu1 %v2027_v0 }
 0x1f9   :  { %1773 = vmatpush3.bf16.msra.mxu1 %v2168_v14 }
 0x1fa   :  { %1774 = vmatprep.subr.bf16.mxu1 %v2027_v0 }
 0x1fd   :  { %1775 = vmatpush3.bf16.msra.mxu1 %v2172_v16 }
 0x1fe   :  { %1776 = vmatprep.subr.bf16.mxu1 %v2027_v0 }
 0x201   :  { %1777 = vmatpush3.bf16.msra.mxu1 %v2180_v17 }
 0x202   :  { %1802 = vmatprep.subr.bf16.mxu1 %v2027_v0 }
 0x204   :  { %1779 = vmatmul.mubr.msk.bf16.vlgmr.msra.gmra.mrb[24].mxu1 %vm1331_vm14, %v2029_v26 }
 0x205   :  { %1803 = vmatpush3.bf16.msra.mxu1 %v2144_v4  ;;  %1818 = vmatprep.mubr.msk.bf16.mxu1 %vm2028_vm0, %v2027_v0 }
 0x206   :  { %1804 = vmatprep.subr.bf16.mxu1 %v2027_v0 }
 0x209   :  { %1805 = vmatpush3.bf16.msra.mxu1 %v2148_v6 }
 0x20a   :  { %1806 = vmatprep.subr.bf16.mxu1 %v2027_v0 }
 0x20d   :  { %1807 = vmatpush3.bf16.msra.mxu1 %v2153_v8 }
 0x20e   :  { %1808 = vmatprep.subr.bf16.mxu1 %v2027_v0 }
 0x211   :  { %1809 = vmatpush3.bf16.msra.mxu1 %v2156_v10 }
 0x212   :  { %1810 = vmatprep.subr.bf16.mxu1 %v2027_v0 }
 0x215   :  { %1811 = vmatpush3.bf16.msra.mxu1 %v2163_v12 }
 0x216   :  { %1812 = vmatprep.subr.bf16.mxu1 %v2027_v0 }
 0x217   :  { %v338_v62 = vpop.f32.mrb[0].mxu1 }
 0x218   :  { %v339_v63 = vadd.f32 %v2408_v61, %v338_v62  ;;  %v1540_v1 = vpop.f32.mrb[1].mxu1 }
 0x219   :  { %1813 = vmatpush3.bf16.msra.mxu1 %v2168_v14  ;;  %v341_v2 = vpop.f32.mrb[2].mxu1 }
 0x21a   :  { %vm346_vm15 = vcmp.gt.f32.partialorder %v339_v63, 1.0  ;;  %v1541_v3 = vpop.f32.mrb[3].mxu1  ;;  %1814 = vmatprep.subr.bf16.mxu1 %v2027_v0  ;;  %v1264_v4 = vadd.f32 -1.0, %v339_v63 }
 0x21b   :  { %vm1275_vm1 = vmpackc.low %vm346_vm15, %vm346_vm15 }
 0x21c   :  { %1559 = vmatmul.mubr.msk.bf16.vlgmr.msra.gmra.mrb[4].mxu0 %vm1275_vm1, %v2029_v26  ;;  %v348_v5 = vsel %vm346_vm15, %v1264_v4, %v339_v63 }
 0x21d   :  { %1815 = vmatpush3.bf16.msra.mxu1 %v2172_v16  ;;  %1583 = vmatpush3.bf16.msra.mxu0 %v2267_v53  ;;  %v503_v8 = vmul.f32 0.9, %v348_v5 }
 0x21e   :  { %1816 = vmatprep.subr.bf16.mxu1 %v2027_v0  ;;  %1584 = vmatprep.subr.bf16.mxu0 %v2027_v0 }
 0x21f   :  { %1598 = vmatprep.mubr.msk.bf16.mxu0 %vm2028_vm0, %v2027_v0 }
 0x221   :  { %1817 = vmatpush3.bf16.msra.mxu1 %v2180_v17  ;;  %1585 = vmatpush3.bf16.msra.mxu0 %v2273_v54 }
 0x222   :  { %1586 = vmatprep.subr.bf16.mxu0 %v2027_v0 }
 0x224   :  { %1819 = vmatmul.mubr.msk.bf16.vlgmr.msra.gmra.mrb[28].mxu1 %vm1341_vm3, %v2029_v26 }
 0x225   :  { %1587 = vmatpush3.bf16.msra.mxu0 %v2282_v55 }
 0x226   :  { %1588 = vmatprep.subr.bf16.mxu0 %v2027_v0 }
 0x229   :  { %1589 = vmatpush3.bf16.msra.mxu0 %v2290_v56 }
 0x22a   :  { %1590 = vmatprep.subr.bf16.mxu0 %v2027_v0 }
 0x22d   :  { %1591 = vmatpush3.bf16.msra.mxu0 %v2296_v57 }
 0x22e   :  { %1592 = vmatprep.subr.bf16.mxu0 %v2027_v0 }
 0x231   :  { %1593 = vmatpush3.bf16.msra.mxu0 %v2302_v58 }
 0x232   :  { %1594 = vmatprep.subr.bf16.mxu0 %v2027_v0 }
 0x235   :  { %1595 = vmatpush3.bf16.msra.mxu0 %v2308_v59 }
 0x236   :  { %1596 = vmatprep.subr.bf16.mxu0 %v2027_v0 }
 0x237   :  { %v497_v6 = vpop.f32.mrb[4].mxu1 }
 0x238   :  { %v498_v7 = vadd.f32 %v2408_v61, %v497_v6  ;;  %v1580_v9 = vpop.f32.mrb[5].mxu1 }
 0x239   :  { %v500_v10 = vpop.f32.mrb[6].mxu1  ;;  %1597 = vmatpush3.bf16.msra.mxu0 %v2314_v60 }
 0x23a   :  { %v504_v11 = vadd.f32 %v503_v8, %v498_v7  ;;  %v1581_v12 = vpop.f32.mrb[7].mxu1  ;;  %1622 = vmatprep.subr.bf16.mxu0 %v2027_v0 }
 0x23c   :  { %vm505_vm4 = vcmp.gt.f32.partialorder %v504_v11, 1.0  ;;  %v1283_v13 = vadd.f32 -1.0, %v504_v11 }
 0x23d   :  { %vm1285_vm5 = vmpackc.low %vm505_vm4, %vm505_vm4 }
 0x23e   :  { %1599 = vmatmul.mubr.msk.bf16.vlgmr.msra.gmra.mrb[8].mxu0 %vm1285_vm5, %v2029_v26  ;;  %v507_v14 = vsel %vm505_vm4, %v1283_v13, %v504_v11 }
 0x23f   :  { %1623 = vmatpush3.bf16.msra.mxu0 %v2267_v53  ;;  %1638 = vmatprep.mubr.msk.bf16.mxu0 %vm2028_vm0, %v2027_v0  ;;  %v610_v17 = vmul.f32 0.9, %v507_v14 }
 0x240   :  { %1624 = vmatprep.subr.bf16.mxu0 %v2027_v0 }
 0x243   :  { %1625 = vmatpush3.bf16.msra.mxu0 %v2273_v54 }
 0x244   :  { %1626 = vmatprep.subr.bf16.mxu0 %v2027_v0 }
 0x247   :  { %1627 = vmatpush3.bf16.msra.mxu0 %v2282_v55 }
 0x248   :  { %1628 = vmatprep.subr.bf16.mxu0 %v2027_v0 }
 0x24b   :  { %1629 = vmatpush3.bf16.msra.mxu0 %v2290_v56 }
 0x24c   :  { %1630 = vmatprep.subr.bf16.mxu0 %v2027_v0 }
 0x24f   :  { %1631 = vmatpush3.bf16.msra.mxu0 %v2296_v57 }
 0x250   :  { %1632 = vmatprep.subr.bf16.mxu0 %v2027_v0 }
 0x253   :  { %1633 = vmatpush3.bf16.msra.mxu0 %v2302_v58 }
 0x254   :  { %1634 = vmatprep.subr.bf16.mxu0 %v2027_v0 }
 0x257   :  { %v604_v15 = vpop.f32.mrb[8].mxu1  ;;  %1635 = vmatpush3.bf16.msra.mxu0 %v2308_v59 }
 0x258   :  { %v605_v16 = vadd.f32 %v2408_v61, %v604_v15  ;;  %v1620_v18 = vpop.f32.mrb[9].mxu1  ;;  %1636 = vmatprep.subr.bf16.mxu0 %v2027_v0 }
 0x259   :  { %v607_v19 = vpop.f32.mrb[10].mxu1 }
 0x25a   :  { %v611_v20 = vadd.f32 %v610_v17, %v605_v16  ;;  %v1621_v21 = vpop.f32.mrb[11].mxu1 }
 0x25b   :  { %1637 = vmatpush3.bf16.msra.mxu0 %v2314_v60 }
 0x25c   :  { %vm612_vm6 = vcmp.gt.f32.partialorder %v611_v20, 1.0  ;;  %1662 = vmatprep.subr.bf16.mxu0 %v2027_v0  ;;  %v1293_v22 = vadd.f32 -1.0, %v611_v20 }
 0x25d   :  { %vm1295_vm7 = vmpackc.low %vm612_vm6, %vm612_vm6 }
 0x25e   :  { %1639 = vmatmul.mubr.msk.bf16.vlgmr.msra.gmra.mrb[12].mxu0 %vm1295_vm7, %v2029_v26  ;;  %v614_v23 = vsel %vm612_vm6, %v1293_v22, %v611_v20 }
 0x25f   :  { %1663 = vmatpush3.bf16.msra.mxu0 %v2267_v53  ;;  %1678 = vmatprep.mubr.msk.bf16.mxu0 %vm2028_vm0, %v2027_v0  ;;  %v717_v27 = vmul.f32 0.9, %v614_v23 }
 0x260   :  { %1664 = vmatprep.subr.bf16.mxu0 %v2027_v0 }
 0x263   :  { %1665 = vmatpush3.bf16.msra.mxu0 %v2273_v54 }
 0x264   :  { %1666 = vmatprep.subr.bf16.mxu0 %v2027_v0 }
 0x267   :  { %1667 = vmatpush3.bf16.msra.mxu0 %v2282_v55 }
 0x268   :  { %1668 = vmatprep.subr.bf16.mxu0 %v2027_v0 }
 0x26b   :  { %1669 = vmatpush3.bf16.msra.mxu0 %v2290_v56 }
 0x26c   :  { %1670 = vmatprep.subr.bf16.mxu0 %v2027_v0 }
 0x26f   :  { %1671 = vmatpush3.bf16.msra.mxu0 %v2296_v57 }
 0x270   :  { %1672 = vmatprep.subr.bf16.mxu0 %v2027_v0 }
 0x273   :  { %1673 = vmatpush3.bf16.msra.mxu0 %v2302_v58 }
 0x274   :  { %1674 = vmatprep.subr.bf16.mxu0 %v2027_v0 }
 0x277   :  { %v711_v24 = vpop.f32.mrb[12].mxu1  ;;  %1675 = vmatpush3.bf16.msra.mxu0 %v2308_v59 }
 0x278   :  { %v712_v25 = vadd.f32 %v2408_v61, %v711_v24  ;;  %v1660_v28 = vpop.f32.mrb[13].mxu1  ;;  %1676 = vmatprep.subr.bf16.mxu0 %v2027_v0 }
 0x279   :  { %v714_v29 = vpop.f32.mrb[14].mxu1 }
 0x27a   :  { %v718_v30 = vadd.f32 %v717_v27, %v712_v25  ;;  %v1661_v31 = vpop.f32.mrb[15].mxu1 }
 0x27b   :  { %1677 = vmatpush3.bf16.msra.mxu0 %v2314_v60 }
 0x27c   :  { %vm719_vm8 = vcmp.gt.f32.partialorder %v718_v30, 1.0  ;;  %1702 = vmatprep.subr.bf16.mxu0 %v2027_v0  ;;  %v1303_v32 = vadd.f32 -1.0, %v718_v30 }
 0x27d   :  { %vm1305_vm9 = vmpackc.low %vm719_vm8, %vm719_vm8 }
 0x27e   :  { %1679 = vmatmul.mubr.msk.bf16.vlgmr.msra.gmra.mrb[16].mxu0 %vm1305_vm9, %v2029_v26  ;;  %v721_v33 = vsel %vm719_vm8, %v1303_v32, %v718_v30 }
 0x27f   :  { %1703 = vmatpush3.bf16.msra.mxu0 %v2267_v53  ;;  %1718 = vmatprep.mubr.msk.bf16.mxu0 %vm2028_vm0, %v2027_v0  ;;  %v824_v36 = vmul.f32 0.9, %v721_v33 }
 0x280   :  { %1704 = vmatprep.subr.bf16.mxu0 %v2027_v0 }
 0x283   :  { %1705 = vmatpush3.bf16.msra.mxu0 %v2273_v54 }
 0x284   :  { %1706 = vmatprep.subr.bf16.mxu0 %v2027_v0 }
 0x287   :  { %1707 = vmatpush3.bf16.msra.mxu0 %v2282_v55 }
 0x288   :  { %1708 = vmatprep.subr.bf16.mxu0 %v2027_v0 }
 0x28b   :  { %1709 = vmatpush3.bf16.msra.mxu0 %v2290_v56 }
 0x28c   :  { %1710 = vmatprep.subr.bf16.mxu0 %v2027_v0 }
 0x28f   :  { %1711 = vmatpush3.bf16.msra.mxu0 %v2296_v57 }
 0x290   :  { %1712 = vmatprep.subr.bf16.mxu0 %v2027_v0 }
 0x293   :  { %1713 = vmatpush3.bf16.msra.mxu0 %v2302_v58 }
 0x294   :  { %1714 = vmatprep.subr.bf16.mxu0 %v2027_v0 }
 0x297   :  { %v818_v34 = vpop.f32.mrb[16].mxu1  ;;  %1715 = vmatpush3.bf16.msra.mxu0 %v2308_v59 }
 0x298   :  { %v819_v35 = vadd.f32 %v2408_v61, %v818_v34  ;;  %v1700_v37 = vpop.f32.mrb[17].mxu1  ;;  %1716 = vmatprep.subr.bf16.mxu0 %v2027_v0 }
 0x299   :  { %v821_v38 = vpop.f32.mrb[18].mxu1 }
 0x29a   :  { %v825_v39 = vadd.f32 %v824_v36, %v819_v35  ;;  %v1701_v40 = vpop.f32.mrb[19].mxu1 }
 0x29b   :  { %1717 = vmatpush3.bf16.msra.mxu0 %v2314_v60 }
 0x29c   :  { %vm826_vm10 = vcmp.gt.f32.partialorder %v825_v39, 1.0  ;;  %1742 = vmatprep.subr.bf16.mxu0 %v2027_v0  ;;  %v1313_v41 = vadd.f32 -1.0, %v825_v39 }
 0x29d   :  { %vm1315_vm11 = vmpackc.low %vm826_vm10, %vm826_vm10 }
 0x29e   :  { %1719 = vmatmul.mubr.msk.bf16.vlgmr.msra.gmra.mrb[20].mxu0 %vm1315_vm11, %v2029_v26  ;;  %v828_v42 = vsel %vm826_vm10, %v1313_v41, %v825_v39 }
 0x29f   :  { %1743 = vmatpush3.bf16.msra.mxu0 %v2267_v53  ;;  %1758 = vmatprep.mubr.msk.bf16.mxu0 %vm2028_vm0, %v2027_v0  ;;  %v931_v45 = vmul.f32 0.9, %v828_v42 }
 0x2a0   :  { %1744 = vmatprep.subr.bf16.mxu0 %v2027_v0 }
 0x2a3   :  { %1745 = vmatpush3.bf16.msra.mxu0 %v2273_v54 }
 0x2a4   :  { %1746 = vmatprep.subr.bf16.mxu0 %v2027_v0 }
 0x2a7   :  { %1747 = vmatpush3.bf16.msra.mxu0 %v2282_v55 }
 0x2a8   :  { %1748 = vmatprep.subr.bf16.mxu0 %v2027_v0 }
 0x2ab   :  { %1749 = vmatpush3.bf16.msra.mxu0 %v2290_v56 }
 0x2ac   :  { %1750 = vmatprep.subr.bf16.mxu0 %v2027_v0 }
 0x2af   :  { %1751 = vmatpush3.bf16.msra.mxu0 %v2296_v57 }
 0x2b0   :  { %1752 = vmatprep.subr.bf16.mxu0 %v2027_v0 }
 0x2b3   :  { %1753 = vmatpush3.bf16.msra.mxu0 %v2302_v58 }
 0x2b4   :  { %1754 = vmatprep.subr.bf16.mxu0 %v2027_v0 }
 0x2b7   :  { %v925_v43 = vpop.f32.mrb[20].mxu1  ;;  %1755 = vmatpush3.bf16.msra.mxu0 %v2308_v59 }
 0x2b8   :  { %v926_v44 = vadd.f32 %v2408_v61, %v925_v43  ;;  %v1740_v46 = vpop.f32.mrb[21].mxu1  ;;  %1756 = vmatprep.subr.bf16.mxu0 %v2027_v0 }
 0x2b9   :  { %v928_v47 = vpop.f32.mrb[22].mxu1 }
 0x2ba   :  { %v932_v48 = vadd.f32 %v931_v45, %v926_v44  ;;  %v1741_v49 = vpop.f32.mrb[23].mxu1 }
 0x2bb   :  { %1757 = vmatpush3.bf16.msra.mxu0 %v2314_v60 }
 0x2bc   :  { %vm933_vm12 = vcmp.gt.f32.partialorder %v932_v48, 1.0  ;;  %1782 = vmatprep.subr.bf16.mxu0 %v2027_v0  ;;  %v1323_v50 = vadd.f32 -1.0, %v932_v48 }
 0x2bd   :  { %vm1325_vm13 = vmpackc.low %vm933_vm12, %vm933_vm12 }
 0x2be   :  { %1759 = vmatmul.mubr.msk.bf16.vlgmr.msra.gmra.mrb[24].mxu0 %vm1325_vm13, %v2029_v26  ;;  %v935_v51 = vsel %vm933_vm12, %v1323_v50, %v932_v48 }
 0x2bf   :  { %1783 = vmatpush3.bf16.msra.mxu0 %v2267_v53  ;;  %1798 = vmatprep.mubr.msk.bf16.mxu0 %vm2028_vm0, %v2027_v0  ;;  %v1038_v63 = vmul.f32 0.9, %v935_v51 }
 0x2c0   :  { %1784 = vmatprep.subr.bf16.mxu0 %v2027_v0 }
 0x2c3   :  { %1785 = vmatpush3.bf16.msra.mxu0 %v2273_v54 }
 0x2c4   :  { %1786 = vmatprep.subr.bf16.mxu0 %v2027_v0 }
 0x2c7   :  { %1787 = vmatpush3.bf16.msra.mxu0 %v2282_v55 }
 0x2c8   :  { %1788 = vmatprep.subr.bf16.mxu0 %v2027_v0 }
 0x2cb   :  { %1789 = vmatpush3.bf16.msra.mxu0 %v2290_v56 }
 0x2cc   :  { %1790 = vmatprep.subr.bf16.mxu0 %v2027_v0 }
 0x2cf   :  { %1791 = vmatpush3.bf16.msra.mxu0 %v2296_v57 }
 0x2d0   :  { %1792 = vmatprep.subr.bf16.mxu0 %v2027_v0 }
 0x2d3   :  { %1793 = vmatpush3.bf16.msra.mxu0 %v2302_v58 }
 0x2d4   :  { %1794 = vmatprep.subr.bf16.mxu0 %v2027_v0 }
 0x2d7   :  { %v1032_v52 = vpop.f32.mrb[24].mxu1  ;;  %1795 = vmatpush3.bf16.msra.mxu0 %v2308_v59 }
 0x2d8   :  { %v1033_v62 = vadd.f32 %v2408_v61, %v1032_v52  ;;  %v1780_v1 = vpop.f32.mrb[25].mxu1  ;;  %1796 = vmatprep.subr.bf16.mxu0 %v2027_v0 }
 0x2d9   :  { %v1035_v2 = vpop.f32.mrb[26].mxu1 }
 0x2da   :  { %v1039_v3 = vadd.f32 %v1038_v63, %v1033_v62  ;;  %v1781_v4 = vpop.f32.mrb[27].mxu1 }
 0x2db   :  { %1797 = vmatpush3.bf16.msra.mxu0 %v2314_v60 }
 0x2dc   :  { %vm1040_vm14 = vcmp.gt.f32.partialorder %v1039_v3, 1.0  ;;  %1822 = vmatprep.subr.bf16.mxu0 %v2027_v0 }
 0x2dd   :  { %vm1335_vm15 = vmpackc.low %vm1040_vm14, %vm1040_vm14 }
 0x2de   :  { %1799 = vmatmul.mubr.msk.bf16.vlgmr.msra.gmra.mrb[28].mxu0 %vm1335_vm15, %v2029_v26 }
 0x2df   :  { %1823 = vmatpush3.bf16.msra.mxu0 %v2267_v53  ;;  %1838 = vmatprep.mubr.msk.bf16.mxu0 %vm2028_vm0, %v2027_v0  ;;  %v2573_v53 = vld [vmem:[%s2638_s6] ss:$0 sm:$0xff]  ;;  %s2030_s6 = smov [#allocation14]  }
 0x2e0   :  { %1824 = vmatprep.subr.bf16.mxu0 %v2027_v0  ;;  %s1212_s10 = sshll.u32 %s2030_s6, 4  ;;  %s1213_s10 = int_to_ptr.vmem [resolvable:$true] %s1212_s10 }
 0x2e1   :  { %s1967_s13 = scalar_lea.vmem %s1213_s10, 1024  ;;  %p1972_p5 = scmp.lt.s32.totalorder %s1213_s10, %s1213_s10 }
 0x2e2   :  { %p1968_p4 = scmp.ne.s32.totalorder %s1213_s10, %s1967_s13  ;;  %p1973_p6 = scmp.lt.s32.totalorder %s1967_s13, %s1967_s13 }
 0x2e3   :  { %1825 = vmatpush3.bf16.msra.mxu0 %v2273_v54 }
 0x2e4   :  { %1826 = vmatprep.subr.bf16.mxu0 %v2027_v0  ;;  %p1974_p7 = por %p1973_p6, %p1972_p5 }
 0x2e6   :  { %p1975_p8 = pnand %p1974_p7, %p1968_p4 }
 0x2e7   :  { %1827 = vmatpush3.bf16.msra.mxu0 %v2282_v55  ;;  %v1333_v55 = vadd.f32 -1.0, %v1039_v3 }
 0x2e8   :  { %1828 = vmatprep.subr.bf16.mxu0 %v2027_v0 }
 0x2eb   :  { %1829 = vmatpush3.bf16.msra.mxu0 %v2290_v56 }
 0x2ec   :  { %1830 = vmatprep.subr.bf16.mxu0 %v2027_v0 }
 0x2ef   :  { %1831 = vmatpush3.bf16.msra.mxu0 %v2296_v57  ;;  %v440_v5 = vpop.f32.mrb[4].mxu0  ;;  %v1042_v57 = vsel %vm1040_vm14, %v1333_v55, %v1039_v3 }
 0x2f0   :  { %v441_v54 = vadd.f32 %v2573_v53, %v440_v5  ;;  %v1560_v6 = vpop.f32.mrb[5].mxu0  ;;  %1832 = vmatprep.subr.bf16.mxu0 %v2027_v0  ;;  %v1145_v13 = vmul.f32 0.9, %v1042_v57 }
 0x2f1   :  { %v443_v7 = vpop.f32.mrb[6].mxu0 }
 0x2f2   :  { %vm448_vm0 = vcmp.gt.f32.partialorder %v441_v54, 1.0  ;;  %v1277_v8 = vadd.f32 -1.0, %v441_v54  ;;  %v1561_v56 = vpop.f32.mrb[7].mxu0 }
 0x2f3   :  { %v1278_v9 = vsel %vm448_vm0, 1.0, %v2027_v0  ;;  %1833 = vmatpush3.bf16.msra.mxu0 %v2302_v58 }
 0x2f4   :  { %v450_v10 = vsel %vm448_vm0, %v1277_v8, %v441_v54  ;;  %453 = vst [vmem:[#allocation14] sm:$0xff] %v1278_v9  ;;  %1834 = vmatprep.subr.bf16.mxu0 %v2027_v0 }
 0x2f5   :  { %454 = vst [vmem:[#allocation15] sm:$0xff] %v450_v10  ;;  %v551_v19 = vmul.f32 0.9, %v450_v10 }
 0x2f7   :  { %v1139_v11 = vpop.f32.mrb[28].mxu1  ;;  %1835 = vmatpush3.bf16.msra.mxu0 %v2308_v59 }
 0x2f8   :  { %v1140_v12 = vadd.f32 %v2408_v61, %v1139_v11  ;;  %v1820_v14 = vpop.f32.mrb[29].mxu1  ;;  %1836 = vmatprep.subr.bf16.mxu0 %v2027_v0 }
 0x2f9   :  { %v1142_v15 = vpop.f32.mrb[30].mxu1 }
 0x2fa   :  { %v1146_v16 = vadd.f32 %v1145_v13, %v1140_v12  ;;  %v1821_v17 = vpop.f32.mrb[31].mxu1 }
 0x2fb   :  { %1837 = vmatpush3.bf16.msra.mxu0 %v2314_v60 }
 0x2fc   :  { %vm1147_vm1 = vcmp.gt.f32.partialorder %v1146_v16, 1.0 }
 0x2fd   :  { %vm1345_vm2 = vmpackc.low %vm1147_vm1, %vm1147_vm1 }
 0x2fe   :  { %1839 = vmatmul.mubr.msk.bf16.vlgmr.msra.gmra.mrb[32].mxu0 %vm1345_vm2, %v2029_v26 }
 0x311   :  { %v545_v58 = vpop.f32.mrb[8].mxu0 }
 0x312   :  { %v546_v18 = vadd.f32 %v2573_v53, %v545_v58  ;;  %v1600_v59 = vpop.f32.mrb[9].mxu0 }
 0x313   :  { %v548_v20 = vpop.f32.mrb[10].mxu0 }
 0x314   :  { %v552_v61 = vadd.f32 %v551_v19, %v546_v18  ;;  %v1601_v21 = vpop.f32.mrb[11].mxu0 }
 0x316   :  { %vm553_vm3 = vcmp.gt.f32.partialorder %v552_v61, 1.0  ;;  %v1287_v22 = vadd.f32 -1.0, %v552_v61 }
 0x317   :  { %v1288_v23 = vsel %vm553_vm3, 1.0, %v2027_v0 }
 0x318   :  { %559 = vst [vmem:[#allocation14 + $0x8] sm:$0xff] %v1288_v23  ;;  %v555_v24 = vsel %vm553_vm3, %v1287_v22, %v552_v61 }
 0x319   :  { %561 = vst [vmem:[#allocation15 + $0x8] sm:$0xff] %v555_v24  ;;  %v658_v27 = vmul.f32 0.9, %v555_v24 }
 0x331   :  { %v652_v60 = vpop.f32.mrb[12].mxu0 }
 0x332   :  { %v653_v25 = vadd.f32 %v2573_v53, %v652_v60  ;;  %v1640_v26 = vpop.f32.mrb[13].mxu0 }
 0x333   :  { %v655_v28 = vpop.f32.mrb[14].mxu0 }
 0x334   :  { %v659_v29 = vadd.f32 %v658_v27, %v653_v25  ;;  %v1641_v30 = vpop.f32.mrb[15].mxu0 }
 0x336   :  { %vm660_vm4 = vcmp.gt.f32.partialorder %v659_v29, 1.0  ;;  %v1297_v31 = vadd.f32 -1.0, %v659_v29 }
 0x337   :  { %v1298_v32 = vsel %vm660_vm4, 1.0, %v2027_v0 }
 0x338   :  { %666 = vst [vmem:[#allocation14 + $0x10] sm:$0xff] %v1298_v32  ;;  %v662_v33 = vsel %vm660_vm4, %v1297_v31, %v659_v29 }
 0x339   :  { %668 = vst [vmem:[#allocation15 + $0x10] sm:$0xff] %v662_v33  ;;  %v765_v36 = vmul.f32 0.9, %v662_v33 }
 0x351   :  { %v759_v34 = vpop.f32.mrb[16].mxu0 }
 0x352   :  { %v760_v35 = vadd.f32 %v2573_v53, %v759_v34  ;;  %v1680_v37 = vpop.f32.mrb[17].mxu0 }
 0x353   :  { %v762_v38 = vpop.f32.mrb[18].mxu0 }
 0x354   :  { %v766_v39 = vadd.f32 %v765_v36, %v760_v35  ;;  %v1681_v40 = vpop.f32.mrb[19].mxu0 }
 0x356   :  { %vm767_vm5 = vcmp.gt.f32.partialorder %v766_v39, 1.0  ;;  %v1307_v41 = vadd.f32 -1.0, %v766_v39 }
 0x357   :  { %v1308_v42 = vsel %vm767_vm5, 1.0, %v2027_v0 }
 0x358   :  { %773 = vst [vmem:[#allocation14 + $0x18] sm:$0xff] %v1308_v42  ;;  %v769_v43 = vsel %vm767_vm5, %v1307_v41, %v766_v39 }
 0x359   :  { %775 = vst [vmem:[#allocation15 + $0x18] sm:$0xff] %v769_v43  ;;  %v872_v46 = vmul.f32 0.9, %v769_v43 }
 0x371   :  { %v866_v44 = vpop.f32.mrb[20].mxu0 }
 0x372   :  { %v867_v45 = vadd.f32 %v2573_v53, %v866_v44  ;;  %v1720_v47 = vpop.f32.mrb[21].mxu0 }
 0x373   :  { %v869_v48 = vpop.f32.mrb[22].mxu0 }
 0x374   :  { %v873_v49 = vadd.f32 %v872_v46, %v867_v45  ;;  %v1721_v50 = vpop.f32.mrb[23].mxu0 }
 0x376   :  { %vm874_vm6 = vcmp.gt.f32.partialorder %v873_v49, 1.0  ;;  %v1317_v51 = vadd.f32 -1.0, %v873_v49 }
 0x377   :  { %v1318_v52 = vsel %vm874_vm6, 1.0, %v2027_v0 }
 0x378   :  { %880 = vst [vmem:[#allocation14 + $0x20] sm:$0xff] %v1318_v52  ;;  %v876_v62 = vsel %vm874_vm6, %v1317_v51, %v873_v49 }
 0x379   :  { %882 = vst [vmem:[#allocation15 + $0x20] sm:$0xff] %v876_v62  ;;  %v979_v2 = vmul.f32 0.9, %v876_v62 }
 0x391   :  { %v973_v63 = vpop.f32.mrb[24].mxu0 }
 0x392   :  { %v974_v1 = vadd.f32 %v2573_v53, %v973_v63  ;;  %v1760_v3 = vpop.f32.mrb[25].mxu0 }
 0x393   :  { %v976_v4 = vpop.f32.mrb[26].mxu0 }
 0x394   :  { %v980_v5 = vadd.f32 %v979_v2, %v974_v1  ;;  %v1761_v54 = vpop.f32.mrb[27].mxu0 }
 0x396   :  { %vm981_vm7 = vcmp.gt.f32.partialorder %v980_v5, 1.0  ;;  %v1327_v6 = vadd.f32 -1.0, %v980_v5 }
 0x397   :  { %v1328_v55 = vsel %vm981_vm7, 1.0, %v2027_v0 }
 0x398   :  { %987 = vst [vmem:[#allocation14 + $0x28] sm:$0xff] %v1328_v55  ;;  %v983_v7 = vsel %vm981_vm7, %v1327_v6, %v980_v5 }
 0x399   :  { %989 = vst [vmem:[#allocation15 + $0x28] sm:$0xff] %v983_v7  ;;  %v1086_v9 = vmul.f32 0.9, %v983_v7 }
 0x3b1   :  { %v1080_v8 = vpop.f32.mrb[28].mxu0 }
 0x3b2   :  { %v1081_v56 = vadd.f32 %v2573_v53, %v1080_v8  ;;  %v1800_v10 = vpop.f32.mrb[29].mxu0 }
 0x3b3   :  { %v1083_v57 = vpop.f32.mrb[30].mxu0 }
 0x3b4   :  { %v1087_v11 = vadd.f32 %v1086_v9, %v1081_v56  ;;  %v1801_v12 = vpop.f32.mrb[31].mxu0 }
 0x3b6   :  { %vm1088_vm8 = vcmp.gt.f32.partialorder %v1087_v11, 1.0  ;;  %v1337_v13 = vadd.f32 -1.0, %v1087_v11 }
 0x3b7   :  { %v1338_v14 = vsel %vm1088_vm8, 1.0, %v2027_v0 }
 0x3b8   :  { %1094 = vst [vmem:[#allocation14 + $0x30] sm:$0xff] %v1338_v14  ;;  %v1090_v15 = vsel %vm1088_vm8, %v1337_v13, %v1087_v11 }
 0x3b9   :  { %1096 = vst [vmem:[#allocation15 + $0x30] sm:$0xff] %v1090_v15  ;;  %v1193_v58 = vmul.f32 0.9, %v1090_v15 }
 0x3d1   :  { %v1187_v16 = vpop.f32.mrb[32].mxu0 }
 0x3d2   :  { %v1188_v17 = vadd.f32 %v2573_v53, %v1187_v16  ;;  %v1840_v18 = vpop.f32.mrb[33].mxu0 }
 0x3d3   :  { %v1190_v19 = vpop.f32.mrb[34].mxu0 }
 0x3d4   :  { %v1194_v59 = vadd.f32 %v1193_v58, %v1188_v17  ;;  %v1841_v20 = vpop.f32.mrb[35].mxu0 }
 0x3d6   :  { %vm1195_vm9 = vcmp.gt.f32.partialorder %v1194_v59, 1.0  ;;  %v1347_v61 = vadd.f32 -1.0, %v1194_v59 }
 0x3d7   :  { %v1348_v21 = vsel %vm1195_vm9, 1.0, %v2027_v0 }
 0x3d8   :  { %v1197_v22 = vsel %vm1195_vm9, %v1347_v61, %v1194_v59  ;;  %1201 = vst [vmem:[#allocation14 + $0x38] sm:$0xff] %v1348_v21 }
 0x3d9   :  { %1203 = vst [vmem:[#allocation15 + $0x38] sm:$0xff] %v1197_v22 }
 0x3da   :  { %1978 = shalt.err (!%p1975_p8)
}
 0x3db   :  { %s1979_s18 = scalar_lea.hbm %s2639_s7, 1024 }
 0x3dc   :  { %p1980_p9 = scmp.ne.s32.totalorder %s2639_s7, %s1979_s18  ;;  %p1983_p10 = scmp.lt.u32.totalorder %s1979_s18, %s2639_s7 }
 0x3de   :  { %p1985_p11 = pnand %p1983_p10, %p1980_p9 }
 0x3e0   :  { %1988 = shalt.err (!%p1985_p11)
}
 0x3e1   :  { %s2032_s23 = smov 128   ;;  %s2033_s24 = smov 8  }
 0x3e2   :  { %1218 = dma.vmem_to_hbm [thread:$0]  %s1213_s10, 1024, %s2639_s7, [#allocation8], %s2032_s23, %s2032_s23, %s2033_s24  }
 0x3e3   :  { %s1989_s27 = scalar_lea.vmem %s2601_s12, 1024  ;;  %p1994_p13 = scmp.lt.s32.totalorder %s2601_s12, %s2601_s12 }
 0x3e4   :  { %p1990_p12 = scmp.ne.s32.totalorder %s2601_s12, %s1989_s27  ;;  %p1995_p0 = scmp.lt.s32.totalorder %s1989_s27, %s1989_s27 }
 0x3e6   :  { %p1996_p1 = por %p1995_p0, %p1994_p13 }
 0x3e8   :  { %p1997_p2 = pnand %p1996_p1, %p1990_p12 }
 0x3ea   :  { %2000 = shalt.err (!%p1997_p2)
}
 0x3eb   :  { %s2001_s1 = scalar_lea.hbm %s2640_s8, 1024 }
 0x3ec   :  { %p2002_p3 = scmp.ne.s32.totalorder %s2640_s8, %s2001_s1  ;;  %p2005_p4 = scmp.lt.u32.totalorder %s2001_s1, %s2640_s8 }
 0x3ee   :  { %p2007_p5 = pnand %p2005_p4, %p2002_p3 }
 0x3f0   :  { %2010 = shalt.err (!%p2007_p5)
}
 0x3f1   :  { %1230 = dma.vmem_to_hbm [thread:$0]  %s2601_s12, 1024, %s2640_s8, [#allocation16], %s2032_s23, %s2032_s23, %s2033_s24  }
 0x3f2   :  { %2017 = dma.done.wait [#allocation8], 1024  }
 0x3f3   :  { %2018 = vsyncadd [#allocation8], 4294966272 }
 0x3f4   :  { %2019 = dma.done.wait [#allocation16], 1024  }
 0x3f5   :  { %2020 = vsyncadd [#allocation16], 4294966272 }
 0x3f6   :  { %1237 = vsyncpa [#allocation7], 1 }
 0x3f7   :  { %1238 = vsyncpa [#allocation10], 1 }
 0x3f8   :  { %1239 = vsyncpa [#allocation13], 1 }
 0x3f9   :  { %1240 = vsyncpa [#allocation8], 1 }
 0x3fa   :  { %1241 = vsyncpa [#allocation16], 1 }

</bundles_post_ra>
